<compile_context>
chip_gen: v7x
topology: tpu7x:2x2x1
jax: 0.10.0
libtpu: 0.0.40
codegen_flags: <defaults>
</compile_context>

<pallas_src>
import numpy as np
import jax
import jax.numpy as jnp
from jax.experimental import pallas as pl
from jax.experimental.pallas import tpu as pltpu

_BN_EPS = 1e-5


def _round_up(x, m):
    return (x + m - 1) // m * m


# ------------------------- static plan (numpy, one-time) -------------------- #

def build_plan(config, n_batch):
    """Static geometry only (no dense selection matrices).

    Activation layout: 2-D (rows, channels) with row = (h*W + w)*N + n, so a
    conv tap (i, j) is a *contiguous* row slice shifted by (i*W + j)*N, the
    full stride-1 conv is one GEMM, and the stride-s subsample is a tiny
    row-gather described by an integer index vector.
    """
    n = n_batch
    cin = config["history_length"]
    h, w = config["in_height"], config["in_width"]

    layers = []
    for (cout, k, s) in config["cnn_archi"]:
        oh = (h - k) // s + 1
        ow = (w - k) // s + 1
        rfull = (h - k + 1) * w * n                  # full stride-1 grid rows
        rfull_pad = _round_up(rfull, 8)
        max_off = ((k - 1) * w + (k - 1)) * n        # largest tap row shift
        layers.append(dict(
            k=k, s=s, h_in=h, w_in=w, oh=oh, ow=ow,
            cin_true=cin, cin_pad=_round_up(cin, 8),
            cout_true=cout, cout_pad=_round_up(cout, 8),
            m_true=oh * ow * n, rfull=rfull, rfull_pad=rfull_pad,
            in_req=max_off + rfull_pad))             # rows needed in its input
        cin, h, w = cout, oh, ow

    hw = h * w
    mfc_pad = max(8, _round_up(n, 8))                # FC-stage row count
    flat_req = (hw - 1) * n + mfc_pad                # rows read by flatten

    for li, cl in enumerate(layers):
        nxt_req = layers[li + 1]["in_req"] if li + 1 < len(layers) else flat_req
        cl["m_pad"] = _round_up(max(cl["m_true"], nxt_req), 8)
        # Subsample gather targets: output row r -> full-grid row tgt[r]
        # (-1 for padded rows -> exactly-zero selection rows).
        tgt = np.full((cl["m_pad"], 1), -1, np.int32)
        for p in range(cl["oh"]):
            for q in range(cl["ow"]):
                for b in range(n):
                    r = (p * cl["ow"] + q) * n + b
                    tgt[r, 0] = ((cl["s"] * p) * cl["w_in"] + cl["s"] * q) * n + b
        cl["tgt"] = tgt

    in_rows_true = config["in_height"] * config["in_width"] * n
    return dict(
        n=n, cin0=config["history_length"],
        in_rows_true=in_rows_true,
        in_rows_pad=_round_up(max(in_rows_true, layers[0]["in_req"]), 8),
        in_cols_pad=layers[0]["cin_pad"],
        conv=layers, hw=hw, mfc_pad=mfc_pad,
        cin_last_true=layers[-1]["cout_true"],
        cin_last_pad=layers[-1]["cout_pad"],
        n_extra_linear=len(config["fc_archi"]),
        out_rows_pad=mfc_pad,
        out_cols_pad=max(128, _round_up(config["output_size"], 128)),
    )


def pack_params(params, config, plan):
    """One-time weight repacking - entirely off the hot path."""
    packed = []
    for (w, _bias, gamma, beta), cl in zip(params["conv"], plan["conv"]):
        # Conv bias dropped: training-mode BN mean-subtraction cancels it.
        k = cl["k"]
        wt = jnp.transpose(w, (2, 3, 1, 0)).reshape(
            k * k, cl["cin_true"], cl["cout_true"])
        wt = jnp.pad(wt, ((0, 0),
                          (0, cl["cin_pad"] - cl["cin_true"]),
                          (0, cl["cout_pad"] - cl["cout_true"])))
        w_stack = wt.reshape(k * k * cl["cin_pad"],
                             cl["cout_pad"]).astype(jnp.bfloat16)
        pad_c = cl["cout_pad"] - cl["cout_true"]
        bn = jnp.stack([jnp.pad(gamma, (0, pad_c)),
                        jnp.pad(beta, (0, pad_c))]).astype(jnp.float32)
        packed += [w_stack, bn, jnp.asarray(cl["tgt"], jnp.int32)]

    lin = list(params["fc"]) + [params["head"]]
    w0, b0 = lin[0]
    hw, cpad, ctrue = plan["hw"], plan["cin_last_pad"], plan["cin_last_true"]
    d0 = w0.shape[0]
    # PyTorch NCHW flatten index is c*HW + t; fold that permutation into the
    # first FC weight rows:  V[t*Cpad + c, d] = w0[d, c*HW + t].
    v = jnp.transpose(w0.reshape(d0, ctrue, hw), (2, 1, 0))
    v = jnp.pad(v, ((0, 0), (0, cpad - ctrue), (0, 0))).reshape(hw * cpad, d0)
    packed += [v.astype(jnp.bfloat16), b0.reshape(1, -1).astype(jnp.float32)]
    for idx, (w, b) in enumerate(lin[1:]):
        wt = jnp.transpose(w, (1, 0))
        bt = b.reshape(1, -1)
        if idx == len(lin) - 2:   # head: lane-pad so the final store is dense
            pad_o = plan["out_cols_pad"] - wt.shape[1]
            wt = jnp.pad(wt, ((0, 0), (0, pad_o)))
            bt = jnp.pad(bt, ((0, 0), (0, pad_o)))
        packed += [wt.astype(jnp.bfloat16), bt.astype(jnp.float32)]
    return packed


# ------------------------------ fused kernel -------------------------------- #

def make_forward(config, plan):
    out_features = config["output_size"]
    n = plan["n"]
    conv_plans = plan["conv"]
    hw = plan["hw"]
    mfc_pad = plan["mfc_pad"]
    n_extra = plan["n_extra_linear"]
    out_rows_pad, out_cols_pad = plan["out_rows_pad"], plan["out_cols_pad"]

    def kernel(*refs):
        it = iter(refs)
        a = next(it)[...]                       # (rows0_pad, cin0_pad) f32

        # conv -> BatchNorm2d (training-mode batch stats) -> ReLU
        for cl in conv_plans:
            w = next(it)[...]                   # (k*k*cin_pad, cout_pad) bf16
            bn = next(it)[...]                  # (2, cout_pad) f32
            tgt = next(it)[...]                 # (m_pad, 1) int32
            k, W, rf, m_pad = cl["k"], cl["w_in"], cl["rfull_pad"], cl["m_pad"]

            # im2col: k*k contiguous shifted row slices, concatenated on the
            # lane axis (lane width k*k*cin_pad = 72) -> ONE GEMM, K = 72.
            pieces = []
            for i in range(k):
                for j in range(k):
                    off = (i * W + j) * n
                    pieces.append(a[off:off + rf, :])
            p = jnp.concatenate(pieces, axis=1).astype(jnp.bfloat16)
            y_full = jnp.dot(p, w, preferred_element_type=jnp.float32)

            # Stride-s subsample of the full stride-1 grid: 0/1 selection
            # built on the fly from an iota compare (exact in bf16, no HBM).
            col = jax.lax.broadcasted_iota(jnp.int32, (m_pad, rf), 1)
            sel = jnp.where(col == tgt, 1.0, 0.0).astype(jnp.bfloat16)
            y = jnp.dot(sel, y_full.astype(jnp.bfloat16),
                        preferred_element_type=jnp.float32)   # (m_pad, cout_pad)

            # BatchNorm (batch statistics), masked two-pass, all f32.
            row = jax.lax.broadcasted_iota(jnp.int32, (m_pad, 1), 0)
            rmask = jnp.where(row < cl["m_true"], 1.0, 0.0)
            inv_m = 1.0 / float(cl["m_true"])
            ym = y * rmask
            mean = jnp.sum(ym, axis=0, keepdims=True) * inv_m
            d = (ym - mean) * rmask
            var = jnp.sum(d * d, axis=0, keepdims=True) * inv_m
            scale = bn[0:1, :] * jax.lax.rsqrt(var + _BN_EPS)
            a = jnp.maximum((ym - mean) * scale + bn[1:2, :], 0.0)
            # Padded rows of `a` are non-zero but provably never read by any
            # valid downstream output (slices/stats only touch true rows).

        # Flatten (NCHW order folded into packed weight) + first Linear:
        # one contiguous slice per remaining spatial position, lane-concat to
        # K = hw*cin_pad = 144, one GEMM.
        v = next(it)[...]
        b = next(it)[...]
        pieces = [a[t * n:t * n + mfc_pad, :] for t in range(hw)]
        p = jnp.concatenate(pieces, axis=1).astype(jnp.bfloat16)
        h = jnp.dot(p, v, preferred_element_type=jnp.float32) + b

        # Remaining Linear layers (incl. head) - plain GEMMs, bf16 operands.
        for _ in range(n_extra):
            w = next(it)[...]
            b = next(it)[...]
            h = jnp.dot(h.astype(jnp.bfloat16), w,
                        preferred_element_type=jnp.float32) + b

        o_ref = next(it)
        o_ref[...] = h                          # dense (8, 128) store

    # Advisory cost estimate (real + selection GEMM flops).
    flops = 0
    for cl in conv_plans:
        kk = cl["k"] * cl["k"]
        flops += 2 * cl["rfull_pad"] * kk * cl["cin_pad"] * cl["cout_pad"]
        flops += 2 * cl["m_pad"] * cl["rfull_pad"] * cl["cout_pad"]
    kdim = hw * plan["cin_last_pad"]
    for dnext in list(config["fc_archi"]) + [out_features]:
        flops += 2 * mfc_pad * kdim * dnext
        kdim = dnext
    trans = sum(cl["cout_pad"] for cl in conv_plans)

    vmem = pl.BlockSpec(memory_space=pltpu.MemorySpace.VMEM)

    @jax.jit
    def forward(x_nchw, packed):
        h0, w0 = x_nchw.shape[2], x_nchw.shape[3]
        # (N,C,H,W) -> rows (h*W+w)*N + n, cols = channels; pad to plan sizes
        # (extra rows cover the largest tap shift of the first conv).
        a0 = jnp.transpose(x_nchw, (2, 3, 0, 1)).reshape(h0 * w0 * n,
                                                         plan["cin0"])
        a0 = jnp.pad(a0, ((0, plan["in_rows_pad"] - h0 * w0 * n),
                          (0, plan["in_cols_pad"] - plan["cin0"])))
        args = (a0.astype(jnp.float32), *packed)
        bytes_accessed = (out_rows_pad * out_cols_pad * 4 +
                          sum(int(t.size) * t.dtype.itemsize for t in args))
        out = pl.pallas_call(
            kernel,
            out_shape=jax.ShapeDtypeStruct((out_rows_pad, out_cols_pad),
                                           jnp.float32),
            in_specs=[vmem] * len(args),
            out_specs=vmem,
            compiler_params=pltpu.CompilerParams(
                vmem_limit_bytes=32 * 1024 * 1024),
            cost_estimate=pl.CostEstimate(flops=int(flops),
                                          transcendentals=int(trans),
                                          bytes_accessed=int(bytes_accessed)),
        )(*args)
        return out[:n, :out_features]

    return forward


# ----------------------------- reference & init ----------------------------- #

def reference_forward(x, params, config):
    """Pure-JAX reference (training-mode BatchNorm) - validation only."""
    hp = jax.lax.Precision.HIGHEST
    h = x
    for (w, b, gamma, beta), (_, _k, s) in zip(params["conv"],
                                               config["cnn_archi"]):
        h = jax.lax.conv_general_dilated(
            h, w, window_strides=(s, s), padding="VALID",
            dimension_numbers=("NCHW", "OIHW", "NCHW"), precision=hp)
        h = h + b[None, :, None, None]
        mean = jnp.mean(h, axis=(0, 2, 3), keepdims=True)
        var = jnp.mean((h - mean) ** 2, axis=(0, 2, 3), keepdims=True)
        h = (h - mean) * jax.lax.rsqrt(var + _BN_EPS)
        h = h * gamma[None, :, None, None] + beta[None, :, None, None]
        h = jnp.maximum(h, 0.0)
    h = h.reshape(h.shape[0], -1)
    for (w, b) in params["fc"]:
        h = jnp.dot(h, w.T, precision=hp) + b
    w, b = params["head"]
    return jnp.dot(h, w.T, precision=hp) + b


def init_params(key, config):
    """Deterministic synthetic params with the same shapes as the module."""
    params = {"conv": [], "fc": []}
    cin = config["history_length"]
    convw, convh = config["in_width"], config["in_height"]
    num_filters = 1
    for (num_filters, k, s) in config["cnn_archi"]:
        key, kw_, kb_ = jax.random.split(key, 3)
        w = 0.1 * jax.random.normal(kw_, (num_filters, cin, k, k), jnp.float32)
        b = 0.1 * jax.random.normal(kb_, (num_filters,), jnp.float32)
        gamma = jnp.ones((num_filters,), jnp.float32)
        beta = jnp.zeros((num_filters,), jnp.float32)
        params["conv"].append((w, b, gamma, beta))
        cin = num_filters
        convw = (convw - (k - 1) - 1) // s + 1
        convh = (convh - (k - 1) - 1) // s + 1
    lin_in = convw * convh * num_filters
    for dim in config["fc_archi"]:
        key, kw_, kb_ = jax.random.split(key, 3)
        w = 0.1 * jax.random.normal(kw_, (dim, lin_in), jnp.float32)
        b = 0.1 * jax.random.normal(kb_, (dim,), jnp.float32)
        params["fc"].append((w, b))
        lin_in = dim
    key, kw_, kb_ = jax.random.split(key, 3)
    params["head"] = (
        0.1 * jax.random.normal(kw_, (config["output_size"], lin_in), jnp.float32),
        0.1 * jax.random.normal(kb_, (config["output_size"],), jnp.float32),
    )
    return params


if __name__ == "__main__":
    config = dict(
        history_length=4,
        in_width=16,
        in_height=16,
        cnn_archi=[(8, 3, 2), (16, 3, 2)],   # (num_filters, kernel_size, stride)
        fc_archi=[32],
        output_size=6,
    )
    key = jax.random.PRNGKey(0)
    k_x, k_p = jax.random.split(key)
    batch = 2
    x = jax.random.normal(k_x, (batch, config["history_length"],
                                config["in_height"], config["in_width"]),
                          jnp.float32)
    params = init_params(k_p, config)

    plan = build_plan(config, batch)                 # static, one-time
    packed = pack_params(params, config, plan)       # weight repacking, one-time
    forward = make_forward(config, plan)

    out = jax.block_until_ready(forward(x, packed))
    assert out.shape == (batch, config["output_size"]), out.shape
    assert bool(jnp.all(jnp.isfinite(out)))

    ref = reference_forward(x, params, config)
    err = float(jnp.max(jnp.abs(out - ref)))
    # bf16 GEMM operands (f32 accumulation) vs. an all-f32 reference.
    assert err < 3e-2, f"max abs err vs reference: {err}"
    print("KERNEL_OK")
</pallas_src>

<mosaic_0001>
module attributes {stable_mosaic.version = 11 : i64} {
  func.func @kernel(%arg0: memref<520x8xf32, #tpu.memory_space<vmem>>, %arg1: memref<72x8xbf16, #tpu.memory_space<vmem>>, %arg2: memref<2x8xf32, #tpu.memory_space<vmem>>, %arg3: memref<104x1xi32, #tpu.memory_space<vmem>>, %arg4: memref<72x16xbf16, #tpu.memory_space<vmem>>, %arg5: memref<2x16xf32, #tpu.memory_space<vmem>>, %arg6: memref<24x1xi32, #tpu.memory_space<vmem>>, %arg7: memref<144x32xbf16, #tpu.memory_space<vmem>>, %arg8: memref<1x32xf32, #tpu.memory_space<vmem>>, %arg9: memref<32x128xbf16, #tpu.memory_space<vmem>>, %arg10: memref<1x128xf32, #tpu.memory_space<vmem>>, %arg11: memref<8x128xf32, #tpu.memory_space<vmem>>) attributes {dimension_semantics = [], scalar_prefetch = 0 : i64, scratch_operands = 0 : i64, tpu.core_type = #tpu.core_type<tc>} {
    %c0 = arith.constant 0 : index
    %c0_0 = arith.constant 0 : index
    %0 = vector.load %arg0[%c0, %c0_0] : memref<520x8xf32, #tpu.memory_space<vmem>>, vector<520x8xf32>
    %c0_1 = arith.constant 0 : index
    %c0_2 = arith.constant 0 : index
    %1 = vector.load %arg1[%c0_1, %c0_2] : memref<72x8xbf16, #tpu.memory_space<vmem>>, vector<72x8xbf16>
    %c0_3 = arith.constant 0 : index
    %c0_4 = arith.constant 0 : index
    %2 = vector.load %arg2[%c0_3, %c0_4] : memref<2x8xf32, #tpu.memory_space<vmem>>, vector<2x8xf32>
    %c0_5 = arith.constant 0 : index
    %c0_6 = arith.constant 0 : index
    %3 = vector.load %arg3[%c0_5, %c0_6] : memref<104x1xi32, #tpu.memory_space<vmem>>, vector<104x1xi32>
    %4 = vector.extract_strided_slice %0 {offsets = [0, 0], sizes = [448, 8], strides = [1, 1]} : vector<520x8xf32> to vector<448x8xf32>
    %5 = vector.extract_strided_slice %0 {offsets = [2, 0], sizes = [448, 8], strides = [1, 1]} : vector<520x8xf32> to vector<448x8xf32>
    %6 = vector.extract_strided_slice %0 {offsets = [4, 0], sizes = [448, 8], strides = [1, 1]} : vector<520x8xf32> to vector<448x8xf32>
    %7 = vector.extract_strided_slice %0 {offsets = [32, 0], sizes = [448, 8], strides = [1, 1]} : vector<520x8xf32> to vector<448x8xf32>
    %8 = vector.extract_strided_slice %0 {offsets = [34, 0], sizes = [448, 8], strides = [1, 1]} : vector<520x8xf32> to vector<448x8xf32>
    %9 = vector.extract_strided_slice %0 {offsets = [36, 0], sizes = [448, 8], strides = [1, 1]} : vector<520x8xf32> to vector<448x8xf32>
    %10 = vector.extract_strided_slice %0 {offsets = [64, 0], sizes = [448, 8], strides = [1, 1]} : vector<520x8xf32> to vector<448x8xf32>
    %11 = vector.extract_strided_slice %0 {offsets = [66, 0], sizes = [448, 8], strides = [1, 1]} : vector<520x8xf32> to vector<448x8xf32>
    %12 = vector.extract_strided_slice %0 {offsets = [68, 0], sizes = [448, 8], strides = [1, 1]} : vector<520x8xf32> to vector<448x8xf32>
    %13 = tpu.concatenate %4, %5, %6, %7, %8, %9, %10, %11, %12 in 1 : vector<448x8xf32>, vector<448x8xf32>, vector<448x8xf32>, vector<448x8xf32>, vector<448x8xf32>, vector<448x8xf32>, vector<448x8xf32>, vector<448x8xf32>, vector<448x8xf32> -> vector<448x72xf32>
    %14 = arith.truncf %13 : vector<448x72xf32> to vector<448x72xbf16>
    %cst = arith.constant dense<0.000000e+00> : vector<448x8xf32>
    %15 = tpu.matmul %14, %1, %cst {dimension_numbers = #tpu.dot_dimension_numbers<[1], [0], [0], [1], [0, 0, 1, 1], [], []>} : vector<448x72xbf16>, vector<72x8xbf16>, vector<448x8xf32> -> vector<448x8xf32>
    %16 = tpu.iota {dimensions = array<i32: 1>} : vector<104x448xi32>
    %17 = vector.broadcast %3 : vector<104x1xi32> to vector<104x448xi32>
    %18 = arith.cmpi eq, %16, %17 : vector<104x448xi32>
    %cst_7 = arith.constant 1.000000e+00 : f32
    %cst_8 = arith.constant 0.000000e+00 : f32
    %19 = vector.broadcast %cst_7 : f32 to vector<104x448xf32>
    %20 = vector.broadcast %cst_8 : f32 to vector<104x448xf32>
    %21 = arith.select %18, %19, %20 : vector<104x448xi1>, vector<104x448xf32>
    %22 = arith.truncf %21 : vector<104x448xf32> to vector<104x448xbf16>
    %23 = arith.truncf %15 : vector<448x8xf32> to vector<448x8xbf16>
    %cst_9 = arith.constant dense<0.000000e+00> : vector<104x8xf32>
    %24 = tpu.matmul %22, %23, %cst_9 {dimension_numbers = #tpu.dot_dimension_numbers<[1], [0], [0], [1], [0, 0, 1, 1], [], []>} : vector<104x448xbf16>, vector<448x8xbf16>, vector<104x8xf32> -> vector<104x8xf32>
    %25 = tpu.iota {dimensions = array<i32: 0>} : vector<104x1xi32>
    %c98_i32 = arith.constant 98 : i32
    %26 = vector.broadcast %c98_i32 : i32 to vector<104x1xi32>
    %27 = arith.cmpi slt, %25, %26 : vector<104x1xi32>
    %cst_10 = arith.constant 1.000000e+00 : f32
    %cst_11 = arith.constant 0.000000e+00 : f32
    %28 = vector.broadcast %cst_10 : f32 to vector<104x1xf32>
    %29 = vector.broadcast %cst_11 : f32 to vector<104x1xf32>
    %30 = arith.select %27, %28, %29 : vector<104x1xi1>, vector<104x1xf32>
    %31 = vector.broadcast %30 : vector<104x1xf32> to vector<104x8xf32>
    %32 = arith.mulf %24, %31 : vector<104x8xf32>
    %cst_12 = arith.constant dense<0.000000e+00> : vector<8xf32>
    %33 = vector.multi_reduction <add>, %32, %cst_12 [0] : vector<104x8xf32> to vector<8xf32>
    %34 = vector.shape_cast %33 : vector<8xf32> to vector<1x8xf32>
    %cst_13 = arith.constant 0.0102040814 : f32
    %35 = vector.broadcast %cst_13 : f32 to vector<1x8xf32>
    %36 = arith.mulf %34, %35 : vector<1x8xf32>
    %37 = vector.broadcast %36 : vector<1x8xf32> to vector<104x8xf32>
    %38 = arith.subf %32, %37 : vector<104x8xf32>
    %39 = vector.broadcast %30 : vector<104x1xf32> to vector<104x8xf32>
    %40 = arith.mulf %38, %39 : vector<104x8xf32>
    %41 = arith.mulf %40, %40 : vector<104x8xf32>
    %cst_14 = arith.constant dense<0.000000e+00> : vector<8xf32>
    %42 = vector.multi_reduction <add>, %41, %cst_14 [0] : vector<104x8xf32> to vector<8xf32>
    %43 = vector.shape_cast %42 : vector<8xf32> to vector<1x8xf32>
    %cst_15 = arith.constant 0.0102040814 : f32
    %44 = vector.broadcast %cst_15 : f32 to vector<1x8xf32>
    %45 = arith.mulf %43, %44 : vector<1x8xf32>
    %46 = vector.extract_strided_slice %2 {offsets = [0, 0], sizes = [1, 8], strides = [1, 1]} : vector<2x8xf32> to vector<1x8xf32>
    %cst_16 = arith.constant 9.99999974E-6 : f32
    %47 = vector.broadcast %cst_16 : f32 to vector<1x8xf32>
    %48 = arith.addf %45, %47 : vector<1x8xf32>
    %49 = math.rsqrt %48 : vector<1x8xf32>
    %50 = arith.mulf %46, %49 : vector<1x8xf32>
    %51 = vector.broadcast %36 : vector<1x8xf32> to vector<104x8xf32>
    %52 = arith.subf %32, %51 : vector<104x8xf32>
    %53 = vector.broadcast %50 : vector<1x8xf32> to vector<104x8xf32>
    %54 = arith.mulf %52, %53 : vector<104x8xf32>
    %55 = vector.extract_strided_slice %2 {offsets = [1, 0], sizes = [1, 8], strides = [1, 1]} : vector<2x8xf32> to vector<1x8xf32>
    %56 = vector.broadcast %55 : vector<1x8xf32> to vector<104x8xf32>
    %57 = arith.addf %54, %56 : vector<104x8xf32>
    %cst_17 = arith.constant 0.000000e+00 : f32
    %58 = vector.broadcast %cst_17 : f32 to vector<104x8xf32>
    %59 = arith.maximumf %57, %58 : vector<104x8xf32>
    %c0_18 = arith.constant 0 : index
    %c0_19 = arith.constant 0 : index
    %60 = vector.load %arg4[%c0_18, %c0_19] : memref<72x16xbf16, #tpu.memory_space<vmem>>, vector<72x16xbf16>
    %c0_20 = arith.constant 0 : index
    %c0_21 = arith.constant 0 : index
    %61 = vector.load %arg5[%c0_20, %c0_21] : memref<2x16xf32, #tpu.memory_space<vmem>>, vector<2x16xf32>
    %c0_22 = arith.constant 0 : index
    %c0_23 = arith.constant 0 : index
    %62 = vector.load %arg6[%c0_22, %c0_23] : memref<24x1xi32, #tpu.memory_space<vmem>>, vector<24x1xi32>
    %63 = vector.extract_strided_slice %59 {offsets = [0, 0], sizes = [72, 8], strides = [1, 1]} : vector<104x8xf32> to vector<72x8xf32>
    %64 = vector.extract_strided_slice %59 {offsets = [2, 0], sizes = [72, 8], strides = [1, 1]} : vector<104x8xf32> to vector<72x8xf32>
    %65 = vector.extract_strided_slice %59 {offsets = [4, 0], sizes = [72, 8], strides = [1, 1]} : vector<104x8xf32> to vector<72x8xf32>
    %66 = vector.extract_strided_slice %59 {offsets = [14, 0], sizes = [72, 8], strides = [1, 1]} : vector<104x8xf32> to vector<72x8xf32>
    %67 = vector.extract_strided_slice %59 {offsets = [16, 0], sizes = [72, 8], strides = [1, 1]} : vector<104x8xf32> to vector<72x8xf32>
    %68 = vector.extract_strided_slice %59 {offsets = [18, 0], sizes = [72, 8], strides = [1, 1]} : vector<104x8xf32> to vector<72x8xf32>
    %69 = vector.extract_strided_slice %59 {offsets = [28, 0], sizes = [72, 8], strides = [1, 1]} : vector<104x8xf32> to vector<72x8xf32>
    %70 = vector.extract_strided_slice %59 {offsets = [30, 0], sizes = [72, 8], strides = [1, 1]} : vector<104x8xf32> to vector<72x8xf32>
    %71 = vector.extract_strided_slice %59 {offsets = [32, 0], sizes = [72, 8], strides = [1, 1]} : vector<104x8xf32> to vector<72x8xf32>
    %72 = tpu.concatenate %63, %64, %65, %66, %67, %68, %69, %70, %71 in 1 : vector<72x8xf32>, vector<72x8xf32>, vector<72x8xf32>, vector<72x8xf32>, vector<72x8xf32>, vector<72x8xf32>, vector<72x8xf32>, vector<72x8xf32>, vector<72x8xf32> -> vector<72x72xf32>
    %73 = arith.truncf %72 : vector<72x72xf32> to vector<72x72xbf16>
    %cst_24 = arith.constant dense<0.000000e+00> : vector<72x16xf32>
    %74 = tpu.matmul %73, %60, %cst_24 {dimension_numbers = #tpu.dot_dimension_numbers<[1], [0], [0], [1], [0, 0, 1, 1], [], []>} : vector<72x72xbf16>, vector<72x16xbf16>, vector<72x16xf32> -> vector<72x16xf32>
    %75 = tpu.iota {dimensions = array<i32: 1>} : vector<24x72xi32>
    %76 = vector.broadcast %62 : vector<24x1xi32> to vector<24x72xi32>
    %77 = arith.cmpi eq, %75, %76 : vector<24x72xi32>
    %cst_25 = arith.constant 1.000000e+00 : f32
    %cst_26 = arith.constant 0.000000e+00 : f32
    %78 = vector.broadcast %cst_25 : f32 to vector<24x72xf32>
    %79 = vector.broadcast %cst_26 : f32 to vector<24x72xf32>
    %80 = arith.select %77, %78, %79 : vector<24x72xi1>, vector<24x72xf32>
    %81 = arith.truncf %80 : vector<24x72xf32> to vector<24x72xbf16>
    %82 = arith.truncf %74 : vector<72x16xf32> to vector<72x16xbf16>
    %cst_27 = arith.constant dense<0.000000e+00> : vector<24x16xf32>
    %83 = tpu.matmul %81, %82, %cst_27 {dimension_numbers = #tpu.dot_dimension_numbers<[1], [0], [0], [1], [0, 0, 1, 1], [], []>} : vector<24x72xbf16>, vector<72x16xbf16>, vector<24x16xf32> -> vector<24x16xf32>
    %84 = tpu.iota {dimensions = array<i32: 0>} : vector<24x1xi32>
    %c18_i32 = arith.constant 18 : i32
    %85 = vector.broadcast %c18_i32 : i32 to vector<24x1xi32>
    %86 = arith.cmpi slt, %84, %85 : vector<24x1xi32>
    %cst_28 = arith.constant 1.000000e+00 : f32
    %cst_29 = arith.constant 0.000000e+00 : f32
    %87 = vector.broadcast %cst_28 : f32 to vector<24x1xf32>
    %88 = vector.broadcast %cst_29 : f32 to vector<24x1xf32>
    %89 = arith.select %86, %87, %88 : vector<24x1xi1>, vector<24x1xf32>
    %90 = vector.broadcast %89 : vector<24x1xf32> to vector<24x16xf32>
    %91 = arith.mulf %83, %90 : vector<24x16xf32>
    %cst_30 = arith.constant dense<0.000000e+00> : vector<16xf32>
    %92 = vector.multi_reduction <add>, %91, %cst_30 [0] : vector<24x16xf32> to vector<16xf32>
    %93 = vector.shape_cast %92 : vector<16xf32> to vector<1x16xf32>
    %cst_31 = arith.constant 0.055555556 : f32
    %94 = vector.broadcast %cst_31 : f32 to vector<1x16xf32>
    %95 = arith.mulf %93, %94 : vector<1x16xf32>
    %96 = vector.broadcast %95 : vector<1x16xf32> to vector<24x16xf32>
    %97 = arith.subf %91, %96 : vector<24x16xf32>
    %98 = vector.broadcast %89 : vector<24x1xf32> to vector<24x16xf32>
    %99 = arith.mulf %97, %98 : vector<24x16xf32>
    %100 = arith.mulf %99, %99 : vector<24x16xf32>
    %cst_32 = arith.constant dense<0.000000e+00> : vector<16xf32>
    %101 = vector.multi_reduction <add>, %100, %cst_32 [0] : vector<24x16xf32> to vector<16xf32>
    %102 = vector.shape_cast %101 : vector<16xf32> to vector<1x16xf32>
    %cst_33 = arith.constant 0.055555556 : f32
    %103 = vector.broadcast %cst_33 : f32 to vector<1x16xf32>
    %104 = arith.mulf %102, %103 : vector<1x16xf32>
    %105 = vector.extract_strided_slice %61 {offsets = [0, 0], sizes = [1, 16], strides = [1, 1]} : vector<2x16xf32> to vector<1x16xf32>
    %cst_34 = arith.constant 9.99999974E-6 : f32
    %106 = vector.broadcast %cst_34 : f32 to vector<1x16xf32>
    %107 = arith.addf %104, %106 : vector<1x16xf32>
    %108 = math.rsqrt %107 : vector<1x16xf32>
    %109 = arith.mulf %105, %108 : vector<1x16xf32>
    %110 = vector.broadcast %95 : vector<1x16xf32> to vector<24x16xf32>
    %111 = arith.subf %91, %110 : vector<24x16xf32>
    %112 = vector.broadcast %109 : vector<1x16xf32> to vector<24x16xf32>
    %113 = arith.mulf %111, %112 : vector<24x16xf32>
    %114 = vector.extract_strided_slice %61 {offsets = [1, 0], sizes = [1, 16], strides = [1, 1]} : vector<2x16xf32> to vector<1x16xf32>
    %115 = vector.broadcast %114 : vector<1x16xf32> to vector<24x16xf32>
    %116 = arith.addf %113, %115 : vector<24x16xf32>
    %cst_35 = arith.constant 0.000000e+00 : f32
    %117 = vector.broadcast %cst_35 : f32 to vector<24x16xf32>
    %118 = arith.maximumf %116, %117 : vector<24x16xf32>
    %c0_36 = arith.constant 0 : index
    %c0_37 = arith.constant 0 : index
    %119 = vector.load %arg7[%c0_36, %c0_37] : memref<144x32xbf16, #tpu.memory_space<vmem>>, vector<144x32xbf16>
    %c0_38 = arith.constant 0 : index
    %c0_39 = arith.constant 0 : index
    %120 = vector.load %arg8[%c0_38, %c0_39] : memref<1x32xf32, #tpu.memory_space<vmem>>, vector<1x32xf32>
    %121 = vector.extract_strided_slice %118 {offsets = [0, 0], sizes = [8, 16], strides = [1, 1]} : vector<24x16xf32> to vector<8x16xf32>
    %122 = vector.extract_strided_slice %118 {offsets = [2, 0], sizes = [8, 16], strides = [1, 1]} : vector<24x16xf32> to vector<8x16xf32>
    %123 = vector.extract_strided_slice %118 {offsets = [4, 0], sizes = [8, 16], strides = [1, 1]} : vector<24x16xf32> to vector<8x16xf32>
    %124 = vector.extract_strided_slice %118 {offsets = [6, 0], sizes = [8, 16], strides = [1, 1]} : vector<24x16xf32> to vector<8x16xf32>
    %125 = vector.extract_strided_slice %118 {offsets = [8, 0], sizes = [8, 16], strides = [1, 1]} : vector<24x16xf32> to vector<8x16xf32>
    %126 = vector.extract_strided_slice %118 {offsets = [10, 0], sizes = [8, 16], strides = [1, 1]} : vector<24x16xf32> to vector<8x16xf32>
    %127 = vector.extract_strided_slice %118 {offsets = [12, 0], sizes = [8, 16], strides = [1, 1]} : vector<24x16xf32> to vector<8x16xf32>
    %128 = vector.extract_strided_slice %118 {offsets = [14, 0], sizes = [8, 16], strides = [1, 1]} : vector<24x16xf32> to vector<8x16xf32>
    %129 = vector.extract_strided_slice %118 {offsets = [16, 0], sizes = [8, 16], strides = [1, 1]} : vector<24x16xf32> to vector<8x16xf32>
    %130 = tpu.concatenate %121, %122, %123, %124, %125, %126, %127, %128, %129 in 1 : vector<8x16xf32>, vector<8x16xf32>, vector<8x16xf32>, vector<8x16xf32>, vector<8x16xf32>, vector<8x16xf32>, vector<8x16xf32>, vector<8x16xf32>, vector<8x16xf32> -> vector<8x144xf32>
    %131 = arith.truncf %130 : vector<8x144xf32> to vector<8x144xbf16>
    %cst_40 = arith.constant dense<0.000000e+00> : vector<8x32xf32>
    %132 = tpu.matmul %131, %119, %cst_40 {dimension_numbers = #tpu.dot_dimension_numbers<[1], [0], [0], [1], [0, 0, 1, 1], [], []>} : vector<8x144xbf16>, vector<144x32xbf16>, vector<8x32xf32> -> vector<8x32xf32>
    %133 = vector.broadcast %120 : vector<1x32xf32> to vector<8x32xf32>
    %134 = arith.addf %132, %133 : vector<8x32xf32>
    %c0_41 = arith.constant 0 : index
    %c0_42 = arith.constant 0 : index
    %135 = vector.load %arg9[%c0_41, %c0_42] : memref<32x128xbf16, #tpu.memory_space<vmem>>, vector<32x128xbf16>
    %c0_43 = arith.constant 0 : index
    %c0_44 = arith.constant 0 : index
    %136 = vector.load %arg10[%c0_43, %c0_44] : memref<1x128xf32, #tpu.memory_space<vmem>>, vector<1x128xf32>
    %137 = arith.truncf %134 : vector<8x32xf32> to vector<8x32xbf16>
    %cst_45 = arith.constant dense<0.000000e+00> : vector<8x128xf32>
    %138 = tpu.matmul %137, %135, %cst_45 {dimension_numbers = #tpu.dot_dimension_numbers<[1], [0], [0], [1], [0, 0, 1, 1], [], []>} : vector<8x32xbf16>, vector<32x128xbf16>, vector<8x128xf32> -> vector<8x128xf32>
    %139 = vector.broadcast %136 : vector<1x128xf32> to vector<8x128xf32>
    %140 = arith.addf %138, %139 : vector<8x128xf32>
    %c0_46 = arith.constant 0 : index
    %c0_47 = arith.constant 0 : index
    %141 = vector.load %arg11[%c0_46, %c0_47] : memref<8x128xf32, #tpu.memory_space<vmem>>, vector<8x128xf32>
    tpu.vector_store %arg11[%c0_46, %c0_47], %140 {strides = array<i32>} : memref<8x128xf32, #tpu.memory_space<vmem>>, vector<8x128xf32>,
    return
  }
}

</mosaic_0001>

<bundles_post_ra>
// kernel: forward.1
= control target key start
LH: loop header
LB: loop body
LE: loop exit
PB: predicated region body
PF: predicated region fallthrough
CT: control target
= control target key end

     0   :  { %vm9395_vm0 = vcmask 1043456   ;;  %vm9396_vm1 = vcmask 1045504   ;;  %s5863_s16 = smov 16   ;;  %s5864_s17 = smov 8   ;;  %vm9397_vm2 = vcmask 64512   ;;  %vm9394_vm3 = vcmask 130048   ;;  %s9376_s0 = inlined_call_operand.vmem [shape: f32[520,8], index: 0, kind: input, shape index: {}]   ;;  %s9377_s1 = inlined_call_operand.vmem [shape: bf16[72,8], index: 1, kind: input, shape index: {}]   ;;  %s9378_s3 = inlined_call_operand.vmem [shape: s32[104,1], index: 3, kind: input, shape index: {}]   ;;  %s9379_s4 = inlined_call_operand.vmem [shape: bf16[72,16], index: 4, kind: input, shape index: {}]   ;;  %s9380_s2 = inlined_call_operand.vmem [shape: f32[2,8], index: 2, kind: input, shape index: {}]   ;;  %s9381_s6 = inlined_call_operand.vmem [shape: s32[24,1], index: 6, kind: input, shape index: {}]   ;;  %s9382_s7 = inlined_call_operand.vmem [shape: bf16[144,32], index: 7, kind: input, shape index: {}]   ;;  %s9383_s5 = inlined_call_operand.vmem [shape: f32[2,16], index: 5, kind: input, shape index: {}]   ;;  %s9384_s9 = inlined_call_operand.vmem [shape: bf16[32,128], index: 9, kind: input, shape index: {}]   ;;  %s9385_s8 = inlined_call_operand.vmem [shape: f32[1,32], index: 8, kind: input, shape index: {}]   ;;  %s9386_s10 = inlined_call_operand.vmem [shape: f32[1,128], index: 10, kind: input, shape index: {}]   ;;  %s9387_s11 = inlined_call_operand.vmem [shape: f32[8,128], index: 11, kind: output, shape index: {}]  }
   0x1   :  { %v5941_v0 = vld [vmem:[%s9376_s0] sm:$0xff]  ;;  %v5946_v1 = vld [vmem:[%s9376_s0 + $0x8] sm:$0xff]  ;;  %v5951_v2 = vld [vmem:[%s9376_s0 + $0x10] sm:$0xff]  ;;  %s5865_s22 = smov 24   ;;  %s5866_s14 = smov 32   ;;  %vm9393_vm4 = vcmask 195584  }
   0x2   :  { %v467_v3 = vrot.slane %v5941_v0, 4  ;;  %v468_v4 = vrot.slane %v5946_v1, 4  ;;  %v470_v5 = vrot.slane %v5951_v2, 4  ;;  %v185_v6 = vrot.slane %v5941_v0, 2  ;;  %v5960_v7 = vld [vmem:[%s9376_s0 + $0x18] sm:$0xff]  ;;  %v5965_v8 = vld [vmem:[%s9376_s0 + $0x20] sm:$0xff] }
   0x3   :  { %v186_v9 = vrot.slane %v5946_v1, 2  ;;  %v188_v10 = vrot.slane %v5951_v2, 2  ;;  %v472_v11 = vrot.slane %v5960_v7, 4  ;;  %v474_v12 = vrot.slane %v5965_v8, 4  ;;  %v5981_v21 = vld [vmem:[%s9376_s0 + $0x30] sm:$0xff]  ;;  %v5986_v22 = vld [vmem:[%s9376_s0 + $0x38] sm:$0xff] }
   0x4   :  { %v469_v13 = vsel %vm9395_vm0, %v467_v3, %v468_v4  ;;  %v471_v14 = vsel %vm9395_vm0, %v468_v4, %v470_v5  ;;  %v190_v15 = vrot.slane %v5960_v7, 2  ;;  %v192_v16 = vrot.slane %v5965_v8, 2  ;;  %v5991_v23 = vld [vmem:[%s9376_s0 + $0x40] sm:$0xff]  ;;  %v5999_v28 = vld [vmem:[%s9376_s0 + $0x28] sm:$0xff]  ;;  %v49_v53 = vld [vmem:[%s9376_s0 + $0x50] sm:$0xff]  ;;  %s5867_s19 = smov 40  }
   0x5   :  { %v4523_v17 = vpack.i.bf16 %v471_v14, %v469_v13  ;;  %v187_v18 = vsel %vm9396_vm1, %v185_v6, %v186_v9  ;;  %v189_v19 = vsel %vm9396_vm1, %v186_v9, %v188_v10  ;;  %v473_v20 = vsel %vm9395_vm0, %v470_v5, %v472_v11  ;;  %v5790_v39 = vld [vmem:[%s9377_s1] sm:$0xff]   ;;  %v5791_v46 = vld [vmem:[%s9377_s1 + $0x8] sm:$0xff]   ;;  %v50_v54 = vld [vmem:[%s9376_s0 + $0x58] sm:$0xff]  ;;  %s5868_s23 = smov 48   ;;  %s5869_s24 = smov 56  }
   0x6   :  { %v4508_v24 = vpack.i.bf16 %v189_v19, %v187_v18  ;;  %v475_v25 = vsel %vm9395_vm0, %v472_v11, %v474_v12  ;;  %v191_v26 = vsel %vm9396_vm1, %v188_v10, %v190_v15  ;;  %v193_v27 = vsel %vm9396_vm1, %v190_v15, %v192_v16  ;;  %4373 = vmatprep.subr.bf16.mxu0 %v5790_v39  ;;  %v6042_v55 = vld [vmem:[%s9376_s0 + $0x60] sm:$0xff]  ;;  %v48_v56 = vld [vmem:[%s9376_s0 + $0x48] sm:$0xff]  ;;  %v5792_v57 = vld [vmem:[%s9377_s1 + $0x10] sm:$0xff]  }
   0x7   :  { %4524 = vrot.lane.b32.xlu1 %v4523_v17, %s5863_s16  ;;  %v4528_v29 = vpack.i.bf16 %v475_v25, %v473_v20  ;;  %v4513_v30 = vpack.i.bf16 %v193_v27, %v191_v26  ;;  %v196_v31 = vrot.slane %v5981_v21, 2  ;;  %v198_v32 = vrot.slane %v5986_v22, 2  ;;  %4374 = vmatpush3.bf16.msra.mxu0 %v5790_v39  ;;  %v5793_v3 = vld [vmem:[%s9377_s1 + $0x18] sm:$0xff]   ;;  %v5794_v14 = vld [vmem:[%s9377_s1 + $0x20] ss:$0 sps:$4 sm:$0xff]   ;;  %s5870_s1 = smov 64  }
   0x8   :  { %4509 = vrot.lane.b32.xlu0 %v4508_v24, %s5864_s17  ;;  %v200_v33 = vrot.slane %v5991_v23, 2  ;;  %v194_v34 = vrot.slane %v5999_v28, 2  ;;  %v478_v35 = vrot.slane %v5981_v21, 4  ;;  %v480_v36 = vrot.slane %v5986_v22, 4  ;;  %4375 = vmatprep.subr.bf16.mxu0 %v5791_v46 }
   0x9   :  { %v4533_v37 = vpack.i.bf16 %v5986_v22, %v5981_v21  ;;  %v482_v38 = vrot.slane %v5991_v23, 4  ;;  %v4518_v40 = vpack.i.bf16 %v5999_v28, %v5965_v8  ;;  %v199_v41 = vsel %vm9396_vm1, %v196_v31, %v198_v32 }
   0xa   :  { %v201_v42 = vsel %vm9396_vm1, %v198_v32, %v200_v33  ;;  %v195_v43 = vsel %vm9396_vm1, %v192_v16, %v194_v34  ;;  %v197_v44 = vsel %vm9396_vm1, %v194_v34, %v196_v31  ;;  %v476_v45 = vrot.slane %v5999_v28, 4  ;;  %v6096_v31 = vld [vmem:[%s9376_s0 + $0x80] sm:$0xff]  ;;  %v52_v32 = vld [vmem:[%s9376_s0 + $0x68] sm:$0xff] }
   0xb   :  { %4529 = vrot.lane.b32.xlu1 %v4528_v29, %s5863_s16  ;;  %v4543_v47 = vpack.i.bf16 %v201_v42, %v199_v41  ;;  %v4538_v48 = vpack.i.bf16 %v197_v44, %v195_v43  ;;  %v481_v49 = vsel %vm9395_vm0, %v478_v35, %v480_v36  ;;  %v483_v50 = vsel %vm9395_vm0, %v480_v36, %v482_v38  ;;  %v53_v29 = vld [vmem:[%s9376_s0 + $0x70] sm:$0xff] }
   0xc   :  { %4514 = vrot.lane.b32.xlu0 %v4513_v30, %s5864_s17  ;;  %v477_v51 = vsel %vm9395_vm0, %v474_v12, %v476_v45  ;;  %v479_v52 = vsel %vm9395_vm0, %v476_v45, %v478_v35  ;;  %4376 = vmatpush3.bf16.msra.mxu0 %v5791_v46  ;;  %v4553_v58 = vpack.i.bf16 %v483_v50, %v481_v49  ;;  %v204_v60 = vrot.slane %v49_v53, 2  ;;  %v54_v30 = vld [vmem:[%s9376_s0 + $0x78] sm:$0xff] }
   0xd   :  { %v4548_v59 = vpack.i.bf16 %v479_v52, %v477_v51  ;;  %v206_v61 = vrot.slane %v50_v54, 2  ;;  %v208_v62 = vrot.slane %v6042_v55, 2  ;;  %v202_v63 = vrot.slane %v48_v56, 2  ;;  %4377 = vmatprep.subr.bf16.mxu0 %v5792_v57 }
   0xe   :  { %v4563_v4 = vpack.i.bf16 %v50_v54, %v49_v53  ;;  %v4558_v5 = vpack.i.bf16 %v48_v56, %v5991_v23  ;;  %v484_v12 = vrot.slane %v48_v56, 4  ;;  %v486_v13 = vrot.slane %v49_v53, 4  ;;  %v58_v56 = vld [vmem:[%s9376_s0 + $0x98] sm:$0xff] }
   0xf   :  { %4534 = vrot.lane.b32.xlu1 %v4533_v37, %s5865_s22  ;;  %v207_v6 = vsel %vm9396_vm1, %v204_v60, %v206_v61  ;;  %v209_v9 = vsel %vm9396_vm1, %v206_v61, %v208_v62  ;;  %v203_v10 = vsel %vm9396_vm1, %v200_v33, %v202_v63  ;;  %v205_v11 = vsel %vm9396_vm1, %v202_v63, %v204_v60 }
  0x10   :  { %4519 = vrot.lane.b32.xlu0 %v4518_v40, %s5865_s22  ;;  %4378 = vmatpush3.bf16.msra.mxu0 %v5792_v57  ;;  %v4573_v15 = vpack.i.bf16 %v209_v9, %v207_v6  ;;  %v4568_v16 = vpack.i.bf16 %v205_v11, %v203_v10  ;;  %v485_v17 = vsel %vm9395_vm0, %v482_v38, %v484_v12  ;;  %v488_v19 = vrot.slane %v50_v54, 4  ;;  %v6139_v57 = vld [vmem:[%s9376_s0 + $0xa0] sm:$0xff] }
  0x11   :  { %4379 = vmatprep.subr.bf16.mxu0 %v5793_v3  ;;  %v487_v18 = vsel %vm9395_vm0, %v484_v12, %v486_v13  ;;  %v490_v20 = vrot.slane %v6042_v55, 4  ;;  %v2393_v27 = vsel %vm9395_vm0, %v5794_v14, 0  ;;  %v212_v33 = vrot.slane %v53_v29, 2 }
  0x12   :  { %v4578_v23 = vpack.i.bf16 %v487_v18, %v485_v17  ;;  %v489_v24 = vsel %vm9395_vm0, %v486_v13, %v488_v19  ;;  %v214_v34 = vrot.slane %v54_v30, 2  ;;  %v216_v35 = vrot.slane %v6096_v31, 2 }
  0x13   :  { %4544 = vrot.lane.b32.xlu1 %v4543_v47, %s5866_s14  ;;  %v491_v25 = vsel %vm9395_vm0, %v488_v19, %v490_v20  ;;  %v210_v36 = vrot.slane %v52_v32, 2  ;;  %v4643_v37 = vpack.i.bf16 %v54_v30, %v53_v29  ;;  %v4638_v38 = vpack.i.bf16 %v52_v32, %v6042_v55  ;;  %v57_v55 = vld [vmem:[%s9376_s0 + $0x90] sm:$0xff] }
  0x14   :  { %4539 = vrot.lane.b32.xlu0 %v4538_v48, %s5866_s14  ;;  %4380 = vmatpush3.bf16.msra.mxu0 %v5793_v3  ;;  %v4588_v26 = vpack.i.bf16 %v491_v25, %v489_v24  ;;  %v215_v39 = vsel %vm9396_vm1, %v212_v33, %v214_v34  ;;  %v217_v40 = vsel %vm9396_vm1, %v214_v34, %v216_v35  ;;  %v492_v43 = vrot.slane %v52_v32, 4  ;;  %v61_v24 = vld [vmem:[%s9376_s0 + $0xb0] sm:$0xff]  ;;  %v62_v25 = vld [vmem:[%s9376_s0 + $0xb8] sm:$0xff] }
  0x15   :  { %4491 = vmatprep.subr.msk.bf16.mxu0 %vm9395_vm0, %v5794_v14  ;;  %v211_v41 = vsel %vm9396_vm1, %v208_v62, %v210_v36  ;;  %v213_v42 = vsel %vm9396_vm1, %v210_v36, %v212_v33  ;;  %v494_v44 = vrot.slane %v53_v29, 4  ;;  %v4653_v45 = vpack.i.bf16 %v217_v40, %v215_v39 }
  0x16   :  { %v4648_v46 = vpack.i.bf16 %v213_v42, %v211_v41  ;;  %v496_v49 = vrot.slane %v54_v30, 4  ;;  %v498_v50 = vrot.slane %v6096_v31, 4  ;;  %v222_v60 = vrot.slane %v58_v56, 2 }
  0x17   :  { %4554 = vrot.lane.b32.xlu1 %v4553_v58, %s5867_s19  ;;  %v224_v61 = vrot.slane %v6139_v57, 2  ;;  %v4723_v63 = vpack.i.bf16 %v58_v56, %v57_v55  ;;  %v502_v11 = vrot.slane %v57_v55, 4  ;;  %v506_v17 = vrot.slane %v6139_v57, 4 }
  0x18   :  { %4549 = vrot.lane.b32.xlu0 %v4548_v59, %s5867_s19  ;;  %4382 = vmatpush3.bf16.msra.mxu0 %v2393_v27  ;;  %v497_v52 = vsel %vm9395_vm0, %v494_v44, %v496_v49  ;;  %v499_v53 = vsel %vm9395_vm0, %v496_v49, %v498_v50  ;;  %v60_v27 = vld [vmem:[%s9376_s0 + $0xa8] sm:$0xff]  ;;  %v228_v29 = vrot.slane %v61_v24, 2  ;;  %v230_v30 = vrot.slane %v62_v25, 2 }
  0x19   :  { %v4668_v54 = vpack.i.bf16 %v499_v53, %v497_v52  ;;  %v226_v32 = vrot.slane %v60_v27, 2  ;;  %v6200_v33 = vpack.i.bf16 %v62_v25, %v61_v24  ;;  %v6205_v34 = vpack.i.bf16 %v60_v27, %v6139_v57 }
  0x1a   :  { %v508_v40 = vrot.slane %v60_v27, 4  ;;  %v510_v41 = vrot.slane %v61_v24, 4  ;;  %vm9392_vm5 = vcmask 261120   ;;  %vm9391_vm6 = vcmask 326656  }
  0x1b   :  { %4564 = vrot.lane.b32.xlu1 %v4563_v4, %s5868_s23  ;;  %v229_v39 = vsel %vm9396_vm1, %v226_v32, %v228_v29  ;;  %vm9390_vm7 = vcmask 392192   ;;  %vm9389_vm8 = vcmask 457728   ;;  %vm9398_vm9 = vcmask 523264  }
  0x1c   :  { %4559 = vrot.lane.b32.xlu0 %v4558_v5, %s5868_s23  ;;  %vm9388_vm10 = vcmask 588800  }
  0x1f   :  { %4574 = vrot.lane.b32.xlu1 %v4573_v15, %s5869_s24 }
  0x20   :  { %4569 = vrot.lane.b32.xlu0 %v4568_v16, %s5869_s24 }
  0x23   :  { %4584 = vrot.lane.b32.xlu1 %v4538_v48, %s5864_s17  ;;  %v495_v48 = vsel %vm9395_vm0, %v492_v43, %v494_v44 }
  0x24   :  { %4579 = vrot.lane.b32.xlu0 %v4578_v23, %s5870_s1 }
  0x27   :  { %4594 = vrot.lane.b32.xlu1 %v4543_v47, %s5864_s17  ;;  %v493_v47 = vsel %vm9395_vm0, %v490_v20, %v492_v43 }
  0x28   :  { %4589 = vrot.lane.b32.xlu0 %v4588_v26, %s5870_s1  ;;  %v4658_v51 = vpack.i.bf16 %v495_v48, %v493_v47  ;;  %v511_v47 = vsel %vm9395_vm0, %v508_v40, %v510_v41  ;;  %v512_v48 = vrot.slane %v62_v25, 4 }
  0x2a   :  { %v513_v53 = vsel %vm9395_vm0, %v510_v41, %v512_v48 }
  0x2b   :  { %4604 = vrot.lane.b32.xlu1 %v4553_v58, %s5863_s16  ;;  %v56_v58 = vld [vmem:[%s9376_s0 + $0x88] sm:$0xff] }
  0x2c   :  { %4599 = vrot.lane.b32.xlu0 %v4548_v59, %s5863_s16  ;;  %v220_v59 = vrot.slane %v57_v55, 2  ;;  %v218_v62 = vrot.slane %v56_v58, 2  ;;  %v4718_v3 = vpack.i.bf16 %v56_v58, %v6096_v31  ;;  %v500_v10 = vrot.slane %v56_v58, 4  ;;  %v6252_v58 = vld [vmem:[%s9376_s0 + $0xd0] sm:$0xff] }
  0x2e   :  { %v219_v6 = vsel %vm9396_vm1, %v216_v35, %v218_v62  ;;  %v221_v9 = vsel %vm9396_vm1, %v218_v62, %v220_v59  ;;  %v501_v14 = vsel %vm9395_vm0, %v498_v50, %v500_v10  ;;  %v231_v35 = vsel %vm9396_vm1, %v228_v29, %v230_v30  ;;  %v6273_v62 = vld [vmem:[%s9376_s0 + $0xc8] sm:$0xff] }
  0x2f   :  { %4614 = vrot.lane.b32.xlu1 %v4563_v4, %s5865_s22  ;;  %v223_v4 = vsel %vm9396_vm1, %v220_v59, %v222_v60  ;;  %v4728_v13 = vpack.i.bf16 %v221_v9, %v219_v6  ;;  %v6257_v59 = vld [vmem:[%s9376_s0 + $0xd8] sm:$0xff] }
  0x30   :  { %4609 = vrot.lane.b32.xlu0 %v4558_v5, %s5865_s22  ;;  %v225_v5 = vsel %vm9396_vm1, %v222_v60, %v224_v61  ;;  %v6262_v60 = vld [vmem:[%s9376_s0 + $0xe0] sm:$0xff] }
  0x31   :  { %v6155_v12 = vpack.i.bf16 %v225_v5, %v223_v4  ;;  %v240_v4 = vrot.slane %v6262_v60, 2 }
  0x33   :  { %4624 = vrot.lane.b32.xlu1 %v4573_v15, %s5866_s14 }
  0x34   :  { %4619 = vrot.lane.b32.xlu0 %v4568_v16, %s5866_s14 }
  0x37   :  { %4634 = vrot.lane.b32.xlu1 %v4588_v26, %s5867_s19 }
  0x38   :  { %4629 = vrot.lane.b32.xlu0 %v4578_v23, %s5867_s19 }
  0x3b   :  { %4644 = vrot.lane.b32.xlu1 %v4643_v37, %s5868_s23 }
  0x3c   :  { %4639 = vrot.lane.b32.xlu0 %v4638_v38, %s5868_s23 }
  0x3f   :  { %4654 = vrot.lane.b32.xlu1 %v4653_v45, %s5869_s24 }
  0x40   :  { %4649 = vrot.lane.b32.xlu0 %v4648_v46, %s5869_s24 }
  0x43   :  { %4664 = vrot.lane.b32.xlu1 %v4568_v16, %s5864_s17  ;;  %v504_v16 = vrot.slane %v58_v56, 4 }
  0x44   :  { %4659 = vrot.lane.b32.xlu0 %v4658_v51, %s5870_s1 }
  0x45   :  { %v505_v19 = vsel %vm9395_vm0, %v502_v11, %v504_v16  ;;  %v507_v20 = vsel %vm9395_vm0, %v504_v16, %v506_v17  ;;  %v516_v16 = vrot.slane %v6273_v62, 4 }
  0x47   :  { %4674 = vrot.lane.b32.xlu1 %v4573_v15, %s5864_s17  ;;  %v503_v15 = vsel %vm9395_vm0, %v500_v10, %v502_v11 }
  0x48   :  { %4669 = vrot.lane.b32.xlu0 %v4668_v54, %s5870_s1  ;;  %v6164_v18 = vpack.i.bf16 %v503_v15, %v501_v14  ;;  %v234_v15 = vrot.slane %v6273_v62, 2 }
  0x4b   :  { %4684 = vrot.lane.b32.xlu1 %v4588_v26, %s5863_s16  ;;  %v6189_v26 = vld [vmem:[%s9376_s0 + $0xc0] sm:$0xff] }
  0x4c   :  { %4679 = vrot.lane.b32.xlu0 %v4578_v23, %s5863_s16  ;;  %v6171_v23 = vpack.i.bf16 %v507_v20, %v505_v19  ;;  %v232_v31 = vrot.slane %v6189_v26, 2  ;;  %v514_v49 = vrot.slane %v6189_v26, 4  ;;  %v6290_v14 = vpack.i.bf16 %v6273_v62, %v6189_v26 }
  0x4e   :  { %v233_v36 = vsel %vm9396_vm1, %v230_v30, %v232_v31 }
  0x4f   :  { %4694 = vrot.lane.b32.xlu1 %v4643_v37, %s5865_s22  ;;  %v6217_v43 = vpack.i.bf16 %v233_v36, %v231_v35 }
  0x50   :  { %4689 = vrot.lane.b32.xlu0 %v4638_v38, %s5865_s22  ;;  %v227_v38 = vsel %vm9396_vm1, %v224_v61, %v226_v32 }
  0x51   :  { %v6221_v44 = vpack.i.bf16 %v229_v39, %v227_v38 }
  0x53   :  { %4704 = vrot.lane.b32.xlu1 %v4653_v45, %s5866_s14 }
  0x54   :  { %4699 = vrot.lane.b32.xlu0 %v4648_v46, %s5866_s14 }
  0x57   :  { %4714 = vrot.lane.b32.xlu1 %v4668_v54, %s5867_s19 }
  0x58   :  { %4709 = vrot.lane.b32.xlu0 %v4658_v51, %s5867_s19 }
  0x5b   :  { %4724 = vrot.lane.b32.xlu1 %v4723_v63, %s5868_s23 }
  0x5c   :  { %4719 = vrot.lane.b32.xlu0 %v4718_v3, %s5868_s23 }
  0x5f   :  { %4734 = vrot.lane.b32.xlu1 %v6155_v12, %s5869_s24 }
  0x60   :  { %4729 = vrot.lane.b32.xlu0 %v4728_v13, %s5869_s24 }
  0x63   :  { %4744 = vrot.lane.b32.xlu1 %v4648_v46, %s5864_s17  ;;  %v509_v46 = vsel %vm9395_vm0, %v506_v17, %v508_v40  ;;  %v235_v40 = vsel %vm9396_vm1, %v232_v31, %v234_v15 }
  0x64   :  { %4739 = vrot.lane.b32.xlu0 %v6164_v18, %s5870_s1 }
  0x67   :  { %4754 = vrot.lane.b32.xlu1 %v4653_v45, %s5864_s17 }
  0x68   :  { %4749 = vrot.lane.b32.xlu0 %v6171_v23, %s5870_s1 }
  0x6b   :  { %4764 = vrot.lane.b32.xlu1 %v4668_v54, %s5863_s16  ;;  %v515_v54 = vsel %vm9395_vm0, %v512_v48, %v514_v49 }
  0x6c   :  { %4759 = vrot.lane.b32.xlu0 %v4658_v51, %s5863_s16  ;;  %v6232_v51 = vpack.i.bf16 %v511_v47, %v509_v46  ;;  %v6245_v56 = vpack.i.bf16 %v515_v54, %v513_v53 }
  0x6f   :  { %4774 = vrot.lane.b32.xlu1 %v4723_v63, %s5865_s22  ;;  %v236_v63 = vrot.slane %v6252_v58, 2 }
  0x70   :  { %4769 = vrot.lane.b32.xlu0 %v4718_v3, %s5865_s22  ;;  %v238_v3 = vrot.slane %v6257_v59, 2 }
  0x71   :  { %v237_v41 = vsel %vm9396_vm1, %v234_v15, %v236_v63 }
  0x72   :  { %v239_v20 = vsel %vm9396_vm1, %v236_v63, %v238_v3  ;;  %v6387_v26 = vpack.i.bf16 %v237_v41, %v235_v40 }
  0x73   :  { %4784 = vrot.lane.b32.xlu1 %v6155_v12, %s5866_s14 }
  0x74   :  { %4779 = vrot.lane.b32.xlu0 %v4728_v13, %s5866_s14 }
  0x77   :  { %4794 = vrot.lane.b32.xlu1 %v6171_v23, %s5867_s19 }
  0x78   :  { %4789 = vrot.lane.b32.xlu0 %v6164_v18, %s5867_s19 }
  0x79   :  { %v6211_v37 = vpop.permute.xlu1 %4524 }
  0x7a   :  { %v4510_v42 = vpop.permute.xlu0 %4509  ;;  %v4527_v17 = vunpack.i.h.bf16 %v6211_v37  ;;  %v4526_v19 = vunpack.i.l.bf16 %v6211_v37 }
  0x7b   :  { %4804 = vrot.lane.b32.xlu1 %v6200_v33, %s5868_s23  ;;  %v4512_v5 = vunpack.i.h.bf16 %v4510_v42  ;;  %v4511_v6 = vunpack.i.l.bf16 %v4510_v42 }
  0x7c   :  { %4799 = vrot.lane.b32.xlu0 %v6205_v34, %s5868_s23 }
  0x7d   :  { %v6223_v45 = vpop.permute.xlu1 %4529  ;;  %v1798_v24 = vsel %vm9397_vm2, %v5946_v1, %v4512_v5  ;;  %v1797_v25 = vsel %vm9397_vm2, %v5941_v0, %v4511_v6 }
  0x7e   :  { %v4515_v50 = vpop.permute.xlu0 %4514  ;;  %v4532_v27 = vunpack.i.h.bf16 %v6223_v45  ;;  %v4531_v29 = vunpack.i.l.bf16 %v6223_v45  ;;  %v1854_v39 = vsel %vm9394_vm3, %v1797_v25, %v4526_v19 }
  0x7f   :  { %4814 = vrot.lane.b32.xlu1 %v6217_v43, %s5869_s24  ;;  %v4517_v10 = vunpack.i.h.bf16 %v4515_v50  ;;  %v4516_v11 = vunpack.i.l.bf16 %v4515_v50 }
  0x80   :  { %4809 = vrot.lane.b32.xlu0 %v6221_v44, %s5869_s24 }
  0x81   :  { %v6234_v52 = vpop.permute.xlu1 %4534  ;;  %v1799_v32 = vsel %vm9397_vm2, %v5951_v2, %v4516_v11  ;;  %v1855_v2 = vsel %vm9394_vm3, %v1798_v24, %v4527_v17 }
  0x82   :  { %v6240_v55 = vpop.permute.xlu0 %4519  ;;  %v4537_v35 = vunpack.i.h.bf16 %v6234_v52  ;;  %v4536_v1 = vunpack.i.l.bf16 %v6234_v52  ;;  %v1856_v42 = vsel %vm9394_vm3, %v1799_v32, %v4531_v29 }
  0x83   :  { %4824 = vrot.lane.b32.xlu1 %v4728_v13, %s5864_s17  ;;  %v6286_v13 = vpack.i.bf16 %v6257_v59, %v6252_v58  ;;  %v4522_v0 = vunpack.i.h.bf16 %v6240_v55  ;;  %v4521_v37 = vunpack.i.l.bf16 %v6240_v55 }
  0x84   :  { %4819 = vrot.lane.b32.xlu0 %v6232_v51, %s5870_s1  ;;  %v1913_v48 = vsel %vm9393_vm4, %v1856_v42, %v4536_v1 }
  0x85   :  { %v6247_v57 = vpop.permute.xlu1 %4544  ;;  %v1911_v53 = vsel %vm9393_vm4, %v1854_v39, %v4521_v37  ;;  %v1912_v54 = vsel %vm9393_vm4, %v1855_v2, %v4522_v0 }
  0x86   :  { %v6264_v61 = vpop.permute.xlu0 %4539 }
  0x87   :  { %4834 = vrot.lane.b32.xlu1 %v6155_v12, %s5864_s17  ;;  %v4542_v45 = vunpack.i.h.bf16 %v6264_v61  ;;  %v4541_v46 = vunpack.i.l.bf16 %v6264_v61  ;;  %v4547_v61 = vunpack.i.h.bf16 %v6247_v57 }
  0x88   :  { %4829 = vrot.lane.b32.xlu0 %v6245_v56, %s5870_s1 }
  0x89   :  { %v6278_v9 = vpop.permute.xlu1 %4554  ;;  %v1969_v11 = vsel %vm9392_vm5, %v1912_v54, %v4542_v45 }
  0x8a   :  { %v6280_v12 = vpop.permute.xlu0 %4549  ;;  %v4556_v15 = vunpack.i.l.bf16 %v6278_v9 }
  0x8b   :  { %4844 = vrot.lane.b32.xlu1 %v6171_v23, %s5863_s16  ;;  %v241_v23 = vsel %vm9396_vm1, %v238_v3, %v240_v4  ;;  %v4552_v50 = vunpack.i.h.bf16 %v6280_v12  ;;  %v4551_v31 = vunpack.i.l.bf16 %v6280_v12  ;;  %v4546_v3 = vunpack.i.l.bf16 %v6247_v57 }
  0x8c   :  { %4839 = vrot.lane.b32.xlu0 %v6164_v18, %s5863_s16  ;;  %v1800_v18 = vsel %vm9397_vm2, %v5960_v7, %v4517_v10  ;;  %v6320_v38 = vpack.i.bf16 %v241_v23, %v239_v20  ;;  %v518_v7 = vrot.slane %v6252_v58, 4  ;;  %v1968_v10 = vsel %vm9392_vm5, %v1911_v53, %v4541_v46  ;;  %v6429_v58 = vld [vmem:[%s9376_s0 + $0xf8] sm:$0xff] }
  0x8d   :  { %v6308_v30 = vpop.permute.xlu1 %4564  ;;  %v4557_v12 = vunpack.i.h.bf16 %v6278_v9  ;;  %v2025_v19 = vsel %vm9391_vm6, %v1968_v10, %v4551_v31  ;;  %v2026_v20 = vsel %vm9391_vm6, %v1969_v11, %v4552_v50  ;;  %v517_v46 = vsel %vm9395_vm0, %v514_v49, %v516_v16  ;;  %v6439_v10 = vld [vmem:[%s9376_s0 + $0x100] sm:$0xff] }
  0x8e   :  { %v4560_v36 = vpop.permute.xlu0 %4559  ;;  %v4567_v57 = vunpack.i.h.bf16 %v6308_v30  ;;  %v4566_v23 = vunpack.i.l.bf16 %v6308_v30  ;;  %v1970_v30 = vsel %vm9392_vm5, %v1913_v48, %v4546_v3  ;;  %v520_v49 = vrot.slane %v6257_v59, 4 }
  0x8f   :  { %4854 = vrot.lane.b32.xlu1 %v6200_v33, %s5865_s22  ;;  %v1857_v33 = vsel %vm9394_vm3, %v1800_v18, %v4532_v27  ;;  %v4562_v55 = vunpack.i.h.bf16 %v4560_v36  ;;  %v4561_v63 = vunpack.i.l.bf16 %v4560_v36  ;;  %v2027_v2 = vsel %vm9391_vm6, %v1970_v30, %v4556_v15 }
  0x90   :  { %4849 = vrot.lane.b32.xlu0 %v6205_v34, %s5865_s22  ;;  %v1914_v34 = vsel %vm9393_vm4, %v1857_v33, %v4537_v35  ;;  %v521_v62 = vsel %vm9395_vm0, %v518_v7, %v520_v49 }
  0x91   :  { %v4575_v47 = vpop.permute.xlu1 %4574  ;;  %v2082_v29 = vsel %vm9390_vm7, %v2025_v19, %v4561_v63  ;;  %v2083_v9 = vsel %vm9390_vm7, %v2026_v20, %v4562_v55  ;;  %v1971_v36 = vsel %vm9392_vm5, %v1914_v34, %v4547_v61  ;;  %v519_v63 = vsel %vm9395_vm0, %v516_v16, %v518_v7  ;;  %v6434_v7 = vld [vmem:[%s9376_s0 + $0xe8] sm:$0xff] }
  0x92   :  { %v4570_v52 = vpop.permute.xlu0 %4569  ;;  %v4577_v18 = vunpack.i.h.bf16 %v4575_v47  ;;  %v4576_v32 = vunpack.i.l.bf16 %v4575_v47  ;;  %v2028_v42 = vsel %vm9391_vm6, %v1971_v36, %v4557_v12  ;;  %v2084_v47 = vsel %vm9390_vm7, %v2027_v2, %v4566_v23 }
  0x93   :  { %4864 = vrot.lane.b32.xlu1 %v6217_v43, %s5866_s14  ;;  %v4572_v5 = vunpack.i.h.bf16 %v4570_v52  ;;  %v4571_v6 = vunpack.i.l.bf16 %v4570_v52  ;;  %v2085_v48 = vsel %vm9390_vm7, %v2028_v42, %v4567_v57  ;;  %v522_v61 = vrot.slane %v6262_v60, 4 }
  0x94   :  { %4859 = vrot.lane.b32.xlu0 %v6221_v44, %s5866_s14  ;;  %v2141_v31 = vsel %vm9389_vm8, %v2084_v47, %v4576_v32  ;;  %v2142_v52 = vsel %vm9389_vm8, %v2085_v48, %v4577_v18  ;;  %v6407_v59 = vpack.i.bf16 %v519_v63, %v517_v46  ;;  %v246_v19 = vrot.slane %v6429_v58, 2 }
  0x95   :  { %v6351_v17 = vpop.permute.xlu1 %4584  ;;  %v2139_v35 = vsel %vm9389_vm8, %v2082_v29, %v4571_v6  ;;  %v2140_v1 = vsel %vm9389_vm8, %v2083_v9, %v4572_v5  ;;  %v523_v16 = vsel %vm9395_vm0, %v520_v49, %v522_v61  ;;  %v6422_v6 = vld [vmem:[%s9376_s0 + $0xf0] sm:$0xff]  ;;  %v248_v20 = vrot.slane %v6439_v10, 2 }
  0x96   :  { %v4580_v24 = vpop.permute.xlu0 %4579  ;;  %v6443_v11 = vpack.i.bf16 %v523_v16, %v521_v62  ;;  %v244_v15 = vrot.slane %v6422_v6, 2  ;;  %v242_v57 = vrot.slane %v6434_v7, 2  ;;  %v6475_v32 = vpack.i.bf16 %v6429_v58, %v6422_v6 }
  0x97   :  { %v4582_v25 = vunpack.i.h.bf16 %v4580_v24  ;;  %v4581_v27 = vunpack.i.l.bf16 %v4580_v24  ;;  %4874 = vrot.lane.b32.xlu1 %v6245_v56, %s5867_s19  ;;  %v526_v46 = vrot.slane %v6422_v6, 4  ;;  %v6611_v6 = vld [vmem:[%s9376_s0 + $0x118] sm:$0xff] }
  0x98   :  { %4869 = vrot.lane.b32.xlu0 %v6232_v51, %s5867_s19  ;;  %v243_v29 = vsel %vm9396_vm1, %v240_v4, %v242_v57  ;;  %v245_v9 = vsel %vm9396_vm1, %v242_v57, %v244_v15  ;;  %v4586_v4 = vunpack.i.l.bf16 %v6351_v17 }
  0x99   :  { %v6367_v0 = vpop.permute.xlu1 %4594  ;;  %v2196_v37 = vsel %vm9398_vm9, %v2139_v35, %v4581_v27  ;;  %v2197_v39 = vsel %vm9398_vm9, %v2140_v1, %v4582_v25  ;;  %v247_v25 = vsel %vm9396_vm1, %v244_v15, %v246_v19  ;;  %v249_v27 = vsel %vm9396_vm1, %v246_v19, %v248_v20 }
  0x9a   :  { %v4590_v33 = vpop.permute.xlu0 %4589  ;;  %v2252_v45 = vpack.c.bf16 %v2197_v39, %v2196_v37  ;;  %v4596_v18 = vunpack.i.l.bf16 %v6367_v0  ;;  %v6479_v35 = vpack.i.bf16 %v6434_v7, %v6262_v60  ;;  %v4587_v1 = vunpack.i.h.bf16 %v6351_v17 }
  0x9b   :  { %v4592_v34 = vunpack.i.h.bf16 %v4590_v33  ;;  %v4591_v50 = vunpack.i.l.bf16 %v4590_v33  ;;  %4884 = vrot.lane.b32.xlu1 %v6286_v13, %s5868_s23  ;;  %v6491_v39 = vpack.i.bf16 %v249_v27, %v247_v25  ;;  %v6493_v2 = vpack.i.bf16 %v245_v9, %v243_v29 }
  0x9c   :  { %4879 = vrot.lane.b32.xlu0 %v6290_v14, %s5868_s23  ;;  %4383 = vmatprep.mubr.msk.bf16.mxu0 %vm9388_vm10, %v2252_v45  ;;  %v524_v45 = vrot.slane %v6434_v7, 4  ;;  %v1803_v47 = vsel %vm9397_vm2, %v5981_v21, %v4596_v18 }
  0x9d   :  { %v2198_v53 = vsel %vm9398_vm9, %v2141_v31, %v4591_v50  ;;  %v2199_v54 = vsel %vm9398_vm9, %v2142_v52, %v4592_v34  ;;  %v6392_v55 = vpop.permute.xlu1 %4604  ;;  %v1802_v50 = vsel %vm9397_vm2, %v5999_v28, %v4587_v1  ;;  %v1801_v31 = vsel %vm9397_vm2, %v5965_v8, %v4586_v4 }
  0x9e   :  { %v6400_v3 = vpop.permute.xlu0 %4599  ;;  %v2253_v40 = vpack.c.bf16 %v2199_v54, %v2198_v53  ;;  %v4607_v30 = vunpack.i.h.bf16 %v6392_v55  ;;  %v4606_v36 = vunpack.i.l.bf16 %v6392_v55  ;;  %v527_v60 = vsel %vm9395_vm0, %v524_v45, %v526_v46 }
  0x9f   :  { %4894 = vrot.lane.b32.xlu1 %v6320_v38, %s5869_s24 }
  0xa0   :  { %4889 = vrot.lane.b32.xlu0 %v6387_v26, %s5869_s24  ;;  %4384 = vmatmul.mubr.msk.bf16.vlgmr.msra.gmra.mrb[0].mxu0 %vm9388_vm10, %v2253_v40  ;;  %v1860_v52 = vsel %vm9394_vm3, %v1803_v47, %v4606_v36 }
  0xa1   :  { %v6409_v41 = vpop.permute.xlu1 %4614 }
  0xa2   :  { %v6417_v5 = vpop.permute.xlu0 %4609  ;;  %v4617_v42 = vunpack.i.h.bf16 %v6409_v41  ;;  %v4616_v17 = vunpack.i.l.bf16 %v6409_v41 }
  0xa3   :  { %4904 = vrot.lane.b32.xlu1 %v6221_v44, %s5864_s17  ;;  %v4612_v48 = vunpack.i.h.bf16 %v6417_v5  ;;  %v4611_v34 = vunpack.i.l.bf16 %v6417_v5 }
  0xa4   :  { %4899 = vrot.lane.b32.xlu0 %v6407_v59, %s5870_s1  ;;  %v1917_v28 = vsel %vm9393_vm4, %v1860_v52, %v4616_v17  ;;  %v525_v52 = vsel %vm9395_vm0, %v522_v61, %v524_v45 }
  0xa5   :  { %v6445_v44 = vpop.permute.xlu1 %4624  ;;  %v6589_v7 = vpack.i.bf16 %v527_v60, %v525_v52 }
  0xa6   :  { %v6447_v12 = vpop.permute.xlu0 %4619  ;;  %v4627_v16 = vunpack.i.h.bf16 %v6445_v44  ;;  %v4626_v5 = vunpack.i.l.bf16 %v6445_v44 }
  0xa7   :  { %4914 = vrot.lane.b32.xlu1 %v6217_v43, %s5864_s17  ;;  %v4597_v43 = vunpack.i.h.bf16 %v6367_v0  ;;  %v4601_v0 = vunpack.i.l.bf16 %v6400_v3  ;;  %v4622_v53 = vunpack.i.h.bf16 %v6447_v12 }
  0xa8   :  { %4909 = vrot.lane.b32.xlu0 %v6443_v11, %s5870_s1 }
  0xa9   :  { %v6457_v23 = vpop.permute.xlu1 %4634  ;;  %v1858_v49 = vsel %vm9394_vm3, %v1801_v31, %v4601_v0 }
  0xaa   :  { %v6459_v24 = vpop.permute.xlu0 %4629  ;;  %v4636_v25 = vunpack.i.l.bf16 %v6457_v23 }
  0xab   :  { %4924 = vrot.lane.b32.xlu1 %v6245_v56, %s5863_s16  ;;  %v4602_v56 = vunpack.i.h.bf16 %v6400_v3  ;;  %v4632_v55 = vunpack.i.h.bf16 %v6459_v24  ;;  %v4631_v63 = vunpack.i.l.bf16 %v6459_v24  ;;  %v4637_v24 = vunpack.i.h.bf16 %v6457_v23 }
  0xac   :  { %4919 = vrot.lane.b32.xlu0 %v6232_v51, %s5863_s16  ;;  %v1804_v51 = vsel %vm9397_vm2, %v5986_v22, %v4597_v43 }
  0xad   :  { %v6489_v37 = vpop.permute.xlu1 %4644  ;;  %v1861_v22 = vsel %vm9394_vm3, %v1804_v51, %v4607_v30  ;;  %v1859_v21 = vsel %vm9394_vm3, %v1802_v50, %v4602_v56 }
  0xae   :  { %v4640_v33 = vpop.permute.xlu0 %4639  ;;  %v1918_v8 = vsel %vm9393_vm4, %v1861_v22, %v4617_v42  ;;  %v1916_v40 = vsel %vm9393_vm4, %v1859_v21, %v4612_v48  ;;  %v4647_v44 = vunpack.i.h.bf16 %v6489_v37  ;;  %v4646_v43 = vunpack.i.l.bf16 %v6489_v37 }
  0xaf   :  { %4934 = vrot.lane.b32.xlu1 %v6286_v13, %s5865_s22  ;;  %v4621_v13 = vunpack.i.l.bf16 %v6447_v12  ;;  %v4642_v41 = vunpack.i.h.bf16 %v4640_v33  ;;  %v4641_v62 = vunpack.i.l.bf16 %v4640_v33  ;;  %v1973_v57 = vsel %vm9392_vm5, %v1916_v40, %v4622_v53 }
  0xb0   :  { %4929 = vrot.lane.b32.xlu0 %v6290_v14, %s5865_s22  ;;  %v1915_v14 = vsel %vm9393_vm4, %v1858_v49, %v4611_v34  ;;  %v2030_v9 = vsel %vm9391_vm6, %v1973_v57, %v4632_v55  ;;  %v1974_v37 = vsel %vm9392_vm5, %v1917_v28, %v4626_v5  ;;  %v1975_v17 = vsel %vm9392_vm5, %v1918_v8, %v4627_v16  ;;  %v6621_v16 = vld [vmem:[%s9376_s0 + $0x120] sm:$0xff] }
  0xb1   :  { %v4655_v54 = vpop.permute.xlu1 %4654  ;;  %v1972_v19 = vsel %vm9392_vm5, %v1915_v14, %v4621_v13  ;;  %v2087_v4 = vsel %vm9390_vm7, %v2030_v9, %v4642_v41  ;;  %v2031_v48 = vsel %vm9391_vm6, %v1974_v37, %v4636_v25  ;;  %v2032_v34 = vsel %vm9391_vm6, %v1975_v17, %v4637_v24 }
  0xb2   :  { %v4650_v3 = vpop.permute.xlu0 %4649  ;;  %v2029_v29 = vsel %vm9391_vm6, %v1972_v19, %v4631_v63  ;;  %v4657_v23 = vunpack.i.h.bf16 %v4655_v54  ;;  %v4656_v56 = vunpack.i.l.bf16 %v4655_v54  ;;  %v2088_v22 = vsel %vm9390_vm7, %v2031_v48, %v4646_v43 }
  0xb3   :  { %4944 = vrot.lane.b32.xlu1 %v6320_v38, %s5866_s14  ;;  %v4652_v12 = vunpack.i.h.bf16 %v4650_v3  ;;  %v4651_v15 = vunpack.i.l.bf16 %v4650_v3  ;;  %v2086_v1 = vsel %vm9390_vm7, %v2029_v29, %v4641_v62  ;;  %v2089_v21 = vsel %vm9390_vm7, %v2032_v34, %v4647_v44  ;;  %v6604_v62 = vld [vmem:[%s9376_s0 + $0x110] sm:$0xff] }
  0xb4   :  { %4939 = vrot.lane.b32.xlu0 %v6387_v26, %s5866_s14  ;;  %v2145_v13 = vsel %vm9389_vm8, %v2088_v22, %v4656_v56  ;;  %v2146_v54 = vsel %vm9389_vm8, %v2089_v21, %v4657_v23  ;;  %v528_v55 = vrot.slane %v6429_v58, 4  ;;  %v530_v63 = vrot.slane %v6439_v10, 4  ;;  %v5817_v21 = vld [vmem:[%s9376_s0 + $0x48] sm:$0xff] }
  0xb5   :  { %v6535_v27 = vpop.permute.xlu1 %4664  ;;  %v2143_v0 = vsel %vm9389_vm8, %v2086_v1, %v4651_v15  ;;  %v2144_v42 = vsel %vm9389_vm8, %v2087_v4, %v4652_v12  ;;  %v252_v15 = vrot.slane %v6604_v62, 2  ;;  %v254_v19 = vrot.slane %v6611_v6, 2 }
  0xb6   :  { %v4660_v18 = vpop.permute.xlu0 %4659  ;;  %v529_v58 = vsel %vm9395_vm0, %v526_v46, %v528_v55  ;;  %v531_v40 = vsel %vm9395_vm0, %v528_v55, %v530_v63  ;;  %v6616_v46 = vld [vmem:[%s9376_s0 + $0x108] sm:$0xff]  ;;  %v256_v57 = vrot.slane %v6621_v16, 2  ;;  %v6657_v4 = vpack.i.bf16 %v6611_v6, %v6604_v62 }
  0xb7   :  { %v4662_v30 = vunpack.i.h.bf16 %v4660_v18  ;;  %v4661_v36 = vunpack.i.l.bf16 %v4660_v18  ;;  %4954 = vrot.lane.b32.xlu1 %v6443_v11, %s5867_s19  ;;  %v6625_v5 = vpack.i.bf16 %v531_v40, %v529_v58  ;;  %v250_v24 = vrot.slane %v6616_v46, 2 }
  0xb8   :  { %4949 = vrot.lane.b32.xlu0 %v6407_v59, %s5867_s19  ;;  %v255_v9 = vsel %vm9396_vm1, %v252_v15, %v254_v19  ;;  %v257_v44 = vsel %vm9396_vm1, %v254_v19, %v256_v57  ;;  %v534_v48 = vrot.slane %v6604_v62, 4  ;;  %v6802_v62 = vld [vmem:[%s9376_s0 + $0x140] sm:$0xff] }
  0xb9   :  { %v2200_v33 = vsel %vm9398_vm9, %v2143_v0, %v4661_v36  ;;  %v2201_v51 = vsel %vm9398_vm9, %v2144_v42, %v4662_v30  ;;  %v6553_v47 = vpop.permute.xlu1 %4674  ;;  %v251_v43 = vsel %vm9396_vm1, %v248_v20, %v250_v24  ;;  %v253_v18 = vsel %vm9396_vm1, %v250_v24, %v252_v15 }
  0xba   :  { %v4670_v50 = vpop.permute.xlu0 %4669  ;;  %v2254_v31 = vpack.c.bf16 %v2201_v51, %v2200_v33  ;;  %v4676_v1 = vunpack.i.l.bf16 %v6553_v47  ;;  %v6661_v30 = vpack.i.bf16 %v6616_v46, %v6439_v10  ;;  %v4667_v36 = vunpack.i.h.bf16 %v6535_v27 }
  0xbb   :  { %v4672_v49 = vunpack.i.h.bf16 %v4670_v50  ;;  %v4671_v53 = vunpack.i.l.bf16 %v4670_v50  ;;  %4964 = vrot.lane.b32.xlu1 %v6475_v32, %s5868_s23  ;;  %v4666_v20 = vunpack.i.l.bf16 %v6535_v27  ;;  %v6673_v37 = vpack.i.bf16 %v257_v44, %v255_v9  ;;  %v5816_v50 = vld [vmem:[%s9376_s0 + $0x50] sm:$0xff] }
  0xbc   :  { %4959 = vrot.lane.b32.xlu0 %v6479_v35, %s5868_s23  ;;  %4387 = vmatprep.mubr.msk.bf16.mxu0 %vm9388_vm10, %v2254_v31  ;;  %v6675_v17 = vpack.i.bf16 %v253_v18, %v251_v43  ;;  %v1807_v31 = vsel %vm9397_vm2, %v5816_v50, %v4676_v1 }
  0xbd   :  { %v2203_v61 = vsel %vm9398_vm9, %v2146_v54, %v4672_v49  ;;  %v2202_v28 = vsel %vm9398_vm9, %v2145_v13, %v4671_v53  ;;  %v6578_v8 = vpop.permute.xlu1 %4684  ;;  %v1806_v49 = vsel %vm9397_vm2, %v5817_v21, %v4667_v36  ;;  %v5818_v53 = vld [vmem:[%s9376_s0 + $0x40] sm:$0xff] }
  0xbe   :  { %v6582_v3 = vpop.permute.xlu0 %4679  ;;  %v2255_v14 = vpack.c.bf16 %v2203_v61, %v2202_v28  ;;  %v4687_v23 = vunpack.i.h.bf16 %v6578_v8  ;;  %v4686_v56 = vunpack.i.l.bf16 %v6578_v8  ;;  %v1805_v13 = vsel %vm9397_vm2, %v5818_v53, %v4666_v20 }
  0xbf   :  { %4974 = vrot.lane.b32.xlu1 %v6491_v39, %s5869_s24  ;;  %v4681_v0 = vunpack.i.l.bf16 %v6582_v3 }
  0xc0   :  { %4969 = vrot.lane.b32.xlu0 %v6493_v2, %s5869_s24  ;;  %4388 = vmatmul.mubr.msk.bf16.gmra.mrb[4].mxu0 %vm9388_vm10, %v2255_v14  ;;  %v1864_v54 = vsel %vm9394_vm3, %v1807_v31, %v4686_v56 }
  0xc1   :  { %v6591_v45 = vpop.permute.xlu1 %4694  ;;  %v1862_v61 = vsel %vm9394_vm3, %v1805_v13, %v4681_v0 }
  0xc2   :  { %v6599_v41 = vpop.permute.xlu0 %4689  ;;  %v4697_v33 = vunpack.i.h.bf16 %v6591_v45  ;;  %v4696_v27 = vunpack.i.l.bf16 %v6591_v45 }
  0xc3   :  { %4984 = vrot.lane.b32.xlu1 %v6387_v26, %s5864_s17  ;;  %v4692_v52 = vunpack.i.h.bf16 %v6599_v41  ;;  %v4691_v22 = vunpack.i.l.bf16 %v6599_v41 }
  0xc4   :  { %4979 = vrot.lane.b32.xlu0 %v6589_v7, %s5870_s1 }
  0xc5   :  { %v6627_v26 = vpop.permute.xlu1 %4704 }
  0xc6   :  { %v6629_v12 = vpop.permute.xlu0 %4699  ;;  %v4706_v24 = vunpack.i.l.bf16 %v6627_v26 }
  0xc7   :  { %4994 = vrot.lane.b32.xlu1 %v6320_v38, %s5864_s17  ;;  %v4677_v38 = vunpack.i.h.bf16 %v6553_v47  ;;  %v532_v47 = vrot.slane %v6616_v46, 4  ;;  %v4702_v28 = vunpack.i.h.bf16 %v6629_v12  ;;  %v4701_v8 = vunpack.i.l.bf16 %v6629_v12 }
  0xc8   :  { %4989 = vrot.lane.b32.xlu0 %v6625_v5, %s5870_s1  ;;  %v4707_v12 = vunpack.i.h.bf16 %v6627_v26 }
  0xc9   :  { %v6639_v25 = vpop.permute.xlu1 %4714  ;;  %v535_v10 = vsel %vm9395_vm0, %v532_v47, %v534_v48 }
  0xca   :  { %v6641_v29 = vpop.permute.xlu0 %4709  ;;  %v4717_v18 = vunpack.i.h.bf16 %v6639_v25 }
  0xcb   :  { %5004 = vrot.lane.b32.xlu1 %v6443_v11, %s5863_s16  ;;  %v4682_v11 = vunpack.i.h.bf16 %v6582_v3  ;;  %v1921_v3 = vsel %vm9393_vm4, %v1864_v54, %v4696_v27  ;;  %v4712_v45 = vunpack.i.h.bf16 %v6641_v29  ;;  %v4711_v58 = vunpack.i.l.bf16 %v6641_v29 }
  0xcc   :  { %4999 = vrot.lane.b32.xlu0 %v6407_v59, %s5863_s16  ;;  %v5815_v59 = vld [vmem:[%s9376_s0 + $0x58] sm:$0xff]  ;;  %v533_v54 = vsel %vm9395_vm0, %v530_v63, %v532_v47 }
  0xcd   :  { %v6671_v42 = vpop.permute.xlu1 %4724  ;;  %v1808_v34 = vsel %vm9397_vm2, %v5815_v59, %v4677_v38  ;;  %v4716_v38 = vunpack.i.l.bf16 %v6639_v25  ;;  %v6779_v46 = vpack.i.bf16 %v535_v10, %v533_v54  ;;  %v5820_v54 = vld [vmem:[%s9376_s0 + $0x70] sm:$0xff] }
  0xce   :  { %v4720_v51 = vpop.permute.xlu0 %4719  ;;  %v1865_v60 = vsel %vm9394_vm3, %v1808_v34, %v4687_v23  ;;  %v4727_v26 = vunpack.i.h.bf16 %v6671_v42  ;;  %v4726_v23 = vunpack.i.l.bf16 %v6671_v42  ;;  %v1978_v42 = vsel %vm9392_vm5, %v1921_v3, %v4706_v24 }
  0xcf   :  { %5014 = vrot.lane.b32.xlu1 %v6475_v32, %s5865_s22  ;;  %v1863_v32 = vsel %vm9394_vm3, %v1806_v49, %v4682_v11  ;;  %v1922_v14 = vsel %vm9393_vm4, %v1865_v60, %v4697_v33  ;;  %v4722_v15 = vunpack.i.h.bf16 %v4720_v51  ;;  %v4721_v19 = vunpack.i.l.bf16 %v4720_v51 }
  0xd0   :  { %5009 = vrot.lane.b32.xlu0 %v6479_v35, %s5865_s22  ;;  %v1919_v35 = vsel %vm9393_vm4, %v1862_v61, %v4691_v22  ;;  %v1920_v41 = vsel %vm9393_vm4, %v1863_v32, %v4692_v52  ;;  %v1979_v50 = vsel %vm9392_vm5, %v1922_v14, %v4707_v12  ;;  %v2035_v21 = vsel %vm9391_vm6, %v1978_v42, %v4716_v38  ;;  %v6811_v12 = vld [vmem:[%s9376_s0 + $0x128] sm:$0xff] }
  0xd1   :  { %v4735_v55 = vpop.permute.xlu1 %4734  ;;  %v1976_v29 = vsel %vm9392_vm5, %v1919_v35, %v4701_v8  ;;  %v1977_v43 = vsel %vm9392_vm5, %v1920_v41, %v4702_v28  ;;  %v2036_v49 = vsel %vm9391_vm6, %v1979_v50, %v4717_v18  ;;  %v2092_v60 = vsel %vm9390_vm7, %v2035_v21, %v4726_v23 }
  0xd2   :  { %v4730_v40 = vpop.permute.xlu0 %4729  ;;  %v2033_v36 = vsel %vm9391_vm6, %v1976_v29, %v4711_v58  ;;  %v2034_v20 = vsel %vm9391_vm6, %v1977_v43, %v4712_v45  ;;  %v4737_v25 = vunpack.i.h.bf16 %v4735_v55  ;;  %v4736_v51 = vunpack.i.l.bf16 %v4735_v55 }
  0xd3   :  { %5024 = vrot.lane.b32.xlu1 %v6491_v39, %s5866_s14  ;;  %v4732_v9 = vunpack.i.h.bf16 %v4730_v40  ;;  %v4731_v44 = vunpack.i.l.bf16 %v4730_v40  ;;  %v2090_v11 = vsel %vm9390_vm7, %v2033_v36, %v4721_v19  ;;  %v2091_v0 = vsel %vm9390_vm7, %v2034_v20, %v4722_v15  ;;  %v6792_v15 = vld [vmem:[%s9376_s0 + $0x130] sm:$0xff]  ;;  %v6797_v19 = vld [vmem:[%s9376_s0 + $0x138] sm:$0xff] }
  0xd4   :  { %5019 = vrot.lane.b32.xlu0 %v6493_v2, %s5866_s14  ;;  %v2093_v32 = vsel %vm9390_vm7, %v2036_v49, %v4727_v26  ;;  %v2149_v8 = vsel %vm9389_vm8, %v2092_v60, %v4736_v51  ;;  %v536_v45 = vrot.slane %v6611_v6, 4  ;;  %v538_v58 = vrot.slane %v6621_v16, 4 }
  0xd5   :  { %v6725_v1 = vpop.permute.xlu1 %4744  ;;  %v2147_v59 = vsel %vm9389_vm8, %v2090_v11, %v4731_v44  ;;  %v2148_v34 = vsel %vm9389_vm8, %v2091_v0, %v4732_v9  ;;  %v2150_v55 = vsel %vm9389_vm8, %v2093_v32, %v4737_v25  ;;  %v260_v9 = vrot.slane %v6792_v15, 2 }
  0xd6   :  { %v4740_v56 = vpop.permute.xlu0 %4739  ;;  %v537_v6 = vsel %vm9395_vm0, %v534_v48, %v536_v45  ;;  %v539_v41 = vsel %vm9395_vm0, %v536_v45, %v538_v58  ;;  %v262_v44 = vrot.slane %v6797_v19, 2  ;;  %v264_v29 = vrot.slane %v6802_v62, 2 }
  0xd7   :  { %v4742_v33 = vunpack.i.h.bf16 %v4740_v56  ;;  %v4741_v27 = vunpack.i.l.bf16 %v4740_v56  ;;  %5034 = vrot.lane.b32.xlu1 %v6625_v5, %s5867_s19  ;;  %v6815_v24 = vpack.i.bf16 %v539_v41, %v537_v6  ;;  %v6839_v23 = vpack.i.bf16 %v6797_v19, %v6792_v15 }
  0xd8   :  { %5029 = vrot.lane.b32.xlu0 %v6589_v7, %s5867_s19  ;;  %v263_v38 = vsel %vm9396_vm1, %v260_v9, %v262_v44  ;;  %v265_v36 = vsel %vm9396_vm1, %v262_v44, %v264_v29  ;;  %v542_v25 = vrot.slane %v6792_v15, 4  ;;  %v4747_v51 = vunpack.i.h.bf16 %v6725_v1 }
  0xd9   :  { %v2204_v31 = vsel %vm9398_vm9, %v2147_v59, %v4741_v27  ;;  %v2205_v52 = vsel %vm9398_vm9, %v2148_v34, %v4742_v33  ;;  %v6743_v22 = vpop.permute.xlu1 %4754  ;;  %v6853_v27 = vpack.i.bf16 %v265_v36, %v263_v38  ;;  %v4746_v59 = vunpack.i.l.bf16 %v6725_v1 }
  0xda   :  { %v4750_v53 = vpop.permute.xlu0 %4749  ;;  %v2256_v13 = vpack.c.bf16 %v2205_v52, %v2204_v31  ;;  %v4757_v0 = vunpack.i.h.bf16 %v6743_v22  ;;  %v4756_v33 = vunpack.i.l.bf16 %v6743_v22  ;;  %v544_v52 = vrot.slane %v6797_v19, 4 }
  0xdb   :  { %v4752_v61 = vunpack.i.h.bf16 %v4750_v53  ;;  %v4751_v28 = vunpack.i.l.bf16 %v4750_v53  ;;  %5044 = vrot.lane.b32.xlu1 %v6657_v4, %s5868_s23  ;;  %v546_v49 = vrot.slane %v6802_v62, 4  ;;  %v540_v53 = vrot.slane %v6811_v12, 4 }
  0xdc   :  { %5039 = vrot.lane.b32.xlu0 %v6661_v30, %s5868_s23  ;;  %4391 = vmatprep.mubr.msk.bf16.mxu0 %vm9388_vm10, %v2256_v13  ;;  %v1811_v60 = vsel %vm9397_vm2, %v5820_v54, %v4756_v33 }
  0xdd   :  { %v2207_v63 = vsel %vm9398_vm9, %v2150_v55, %v4752_v61  ;;  %v2206_v3 = vsel %vm9398_vm9, %v2149_v8, %v4751_v28  ;;  %v6768_v14 = vpop.permute.xlu1 %4764  ;;  %v5821_v28 = vld [vmem:[%s9376_s0 + $0x68] sm:$0xff]  ;;  %v5822_v55 = vld [vmem:[%s9376_s0 + $0x60] sm:$0xff]  ;;  %v543_v19 = vsel %vm9395_vm0, %v540_v53, %v542_v25 }
  0xde   :  { %v6772_v40 = vpop.permute.xlu0 %4759  ;;  %v2257_v35 = vpack.c.bf16 %v2207_v63, %v2206_v3  ;;  %v4767_v34 = vunpack.i.h.bf16 %v6768_v14  ;;  %v1810_v8 = vsel %vm9397_vm2, %v5821_v28, %v4747_v51  ;;  %v1809_v10 = vsel %vm9397_vm2, %v5822_v55, %v4746_v59 }
  0xdf   :  { %5054 = vrot.lane.b32.xlu1 %v6673_v37, %s5869_s24  ;;  %v4762_v42 = vunpack.i.h.bf16 %v6772_v40  ;;  %v4761_v50 = vunpack.i.l.bf16 %v6772_v40 }
  0xe0   :  { %5049 = vrot.lane.b32.xlu0 %v6675_v17, %s5869_s24  ;;  %4392 = vmatmul.mubr.msk.bf16.gmra.mrb[8].mxu0 %vm9388_vm10, %v2257_v35 }
  0xe1   :  { %v6781_v47 = vpop.permute.xlu1 %4774 }
  0xe2   :  { %v6804_v48 = vpop.permute.xlu0 %4769  ;;  %v4777_v22 = vunpack.i.h.bf16 %v6781_v47  ;;  %v4776_v1 = vunpack.i.l.bf16 %v6781_v47 }
  0xe3   :  { %5064 = vrot.lane.b32.xlu1 %v6493_v2, %s5864_s17  ;;  %v258_v2 = vrot.slane %v6811_v12, 2  ;;  %v4772_v32 = vunpack.i.h.bf16 %v6804_v48  ;;  %v4771_v61 = vunpack.i.l.bf16 %v6804_v48 }
  0xe4   :  { %5059 = vrot.lane.b32.xlu0 %v6779_v46, %s5870_s1 }
  0xe5   :  { %v6820_v43 = vpop.permute.xlu1 %4784  ;;  %v259_v56 = vsel %vm9396_vm1, %v256_v57, %v258_v2  ;;  %v261_v11 = vsel %vm9396_vm1, %v258_v2, %v260_v9  ;;  %v4766_v57 = vunpack.i.l.bf16 %v6768_v14  ;;  %v1866_v14 = vsel %vm9394_vm3, %v1809_v10, %v4761_v50 }
  0xe6   :  { %v6822_v18 = vpop.permute.xlu0 %4779  ;;  %v6866_v31 = vpack.i.bf16 %v261_v11, %v259_v56  ;;  %v4786_v36 = vunpack.i.l.bf16 %v6820_v43 }
  0xe7   :  { %5074 = vrot.lane.b32.xlu1 %v6491_v39, %s5864_s17  ;;  %v6843_v39 = vpack.i.bf16 %v6811_v12, %v6621_v16  ;;  %v1868_v63 = vsel %vm9394_vm3, %v1811_v60, %v4766_v57  ;;  %v4782_v45 = vunpack.i.h.bf16 %v6822_v18  ;;  %v4781_v40 = vunpack.i.l.bf16 %v6822_v18  ;;  %v6992_v12 = vld [vmem:[%s9376_s0 + $0x150] sm:$0xff] }
  0xe8   :  { %5069 = vrot.lane.b32.xlu0 %v6815_v24, %s5870_s1  ;;  %v1925_v47 = vsel %vm9393_vm4, %v1868_v63, %v4776_v1  ;;  %v4787_v18 = vunpack.i.h.bf16 %v6820_v43 }
  0xe9   :  { %v6833_v20 = vpop.permute.xlu1 %4794 }
  0xea   :  { %v6835_v26 = vpop.permute.xlu0 %4789  ;;  %v4797_v33 = vunpack.i.h.bf16 %v6833_v20  ;;  %v4796_v51 = vunpack.i.l.bf16 %v6833_v20 }
  0xeb   :  { %5084 = vrot.lane.b32.xlu1 %v6625_v5, %s5863_s16  ;;  %v4792_v41 = vunpack.i.h.bf16 %v6835_v26  ;;  %v4791_v48 = vunpack.i.l.bf16 %v6835_v26 }
  0xec   :  { %5079 = vrot.lane.b32.xlu0 %v6589_v7, %s5863_s16  ;;  %v5819_v7 = vld [vmem:[%s9376_s0 + $0x78] sm:$0xff] }
  0xed   :  { %v6864_v5 = vpop.permute.xlu1 %4804  ;;  %v1812_v13 = vsel %vm9397_vm2, %v5819_v7, %v4757_v0 }
  0xee   :  { %v4800_v21 = vpop.permute.xlu0 %4799  ;;  %v1869_v3 = vsel %vm9394_vm3, %v1812_v13, %v4767_v34  ;;  %v4807_v43 = vunpack.i.h.bf16 %v6864_v5 }
  0xef   :  { %5094 = vrot.lane.b32.xlu1 %v6657_v4, %s5865_s22  ;;  %v1867_v4 = vsel %vm9394_vm3, %v1810_v8, %v4762_v42  ;;  %v1926_v6 = vsel %vm9393_vm4, %v1869_v3, %v4777_v22  ;;  %v4802_v2 = vunpack.i.h.bf16 %v4800_v21  ;;  %v4801_v38 = vunpack.i.l.bf16 %v4800_v21 }
  0xf0   :  { %5089 = vrot.lane.b32.xlu0 %v6661_v30, %s5865_s22  ;;  %v1923_v30 = vsel %vm9393_vm4, %v1866_v14, %v4771_v61  ;;  %v1924_v44 = vsel %vm9393_vm4, %v1867_v4, %v4772_v32  ;;  %v4806_v42 = vunpack.i.l.bf16 %v6864_v5  ;;  %v1982_v5 = vsel %vm9392_vm5, %v1925_v47, %v4786_v36 }
  0xf1   :  { %v4815_v35 = vpop.permute.xlu1 %4814  ;;  %v1980_v26 = vsel %vm9392_vm5, %v1923_v30, %v4781_v40  ;;  %v1981_v0 = vsel %vm9392_vm5, %v1924_v44, %v4782_v45  ;;  %v1983_v32 = vsel %vm9392_vm5, %v1926_v6, %v4787_v18  ;;  %v2039_v55 = vsel %vm9391_vm6, %v1982_v5, %v4796_v51  ;;  %v7009_v18 = vld [vmem:[%s9376_s0 + $0x148] sm:$0xff] }
  0xf2   :  { %v4810_v9 = vpop.permute.xlu0 %4809  ;;  %v2037_v34 = vsel %vm9391_vm6, %v1980_v26, %v4791_v48  ;;  %v2038_v57 = vsel %vm9391_vm6, %v1981_v0, %v4792_v41  ;;  %v4817_v20 = vunpack.i.h.bf16 %v4815_v35  ;;  %v4816_v13 = vunpack.i.l.bf16 %v4815_v35 }
  0xf3   :  { %5104 = vrot.lane.b32.xlu1 %v6673_v37, %s5866_s14  ;;  %v4812_v56 = vunpack.i.h.bf16 %v4810_v9  ;;  %v4811_v11 = vunpack.i.l.bf16 %v4810_v9  ;;  %v2094_v22 = vsel %vm9390_vm7, %v2037_v34, %v4801_v38  ;;  %v2095_v1 = vsel %vm9390_vm7, %v2038_v57, %v4802_v2 }
  0xf4   :  { %5099 = vrot.lane.b32.xlu0 %v6675_v17, %s5866_s14  ;;  %v2040_v10 = vsel %vm9391_vm6, %v1983_v32, %v4797_v33  ;;  %v545_v4 = vsel %vm9395_vm0, %v542_v25, %v544_v52  ;;  %v2096_v14 = vsel %vm9390_vm7, %v2039_v55, %v4806_v42  ;;  %v547_v41 = vsel %vm9395_vm0, %v544_v52, %v546_v49  ;;  %v6997_v25 = vld [vmem:[%s9376_s0 + $0x158] sm:$0xff] }
  0xf5   :  { %v6917_v59 = vpop.permute.xlu1 %4824  ;;  %v2151_v54 = vsel %vm9389_vm8, %v2094_v22, %v4811_v11  ;;  %v2152_v60 = vsel %vm9389_vm8, %v2095_v1, %v4812_v56  ;;  %v2097_v45 = vsel %vm9390_vm7, %v2040_v10, %v4807_v43  ;;  %v2153_v47 = vsel %vm9389_vm8, %v2096_v14, %v4816_v13  ;;  %v5824_v10 = vld [vmem:[%s9376_s0 + $0x90] sm:$0xff]  ;;  %v5825_v14 = vld [vmem:[%s9376_s0 + $0x88] sm:$0xff] }
  0xf6   :  { %v4820_v50 = vpop.permute.xlu0 %4819  ;;  %v2154_v6 = vsel %vm9389_vm8, %v2097_v45, %v4817_v20  ;;  %v541_v44 = vsel %vm9395_vm0, %v538_v58, %v540_v53  ;;  %v6976_v38 = vpack.i.bf16 %v547_v41, %v545_v4  ;;  %v7002_v53 = vld [vmem:[%s9376_s0 + $0x160] sm:$0xff]  ;;  %v268_v11 = vrot.slane %v6992_v12, 2 }
  0xf7   :  { %v4822_v21 = vunpack.i.h.bf16 %v4820_v50  ;;  %v4821_v7 = vunpack.i.l.bf16 %v4820_v50  ;;  %5114 = vrot.lane.b32.xlu1 %v6815_v24, %s5867_s19  ;;  %v6981_v16 = vpack.i.bf16 %v543_v19, %v541_v44  ;;  %v270_v26 = vrot.slane %v6997_v25, 2 }
  0xf8   :  { %5109 = vrot.lane.b32.xlu0 %v6779_v46, %s5867_s19  ;;  %v272_v0 = vrot.slane %v7002_v53, 2  ;;  %v266_v33 = vrot.slane %v7009_v18, 2  ;;  %v7029_v57 = vpack.i.bf16 %v6997_v25, %v6992_v12  ;;  %v7033_v43 = vpack.i.bf16 %v7009_v18, %v6802_v62 }
  0xf9   :  { %v2208_v61 = vsel %vm9398_vm9, %v2151_v54, %v4821_v7  ;;  %v2209_v28 = vsel %vm9398_vm9, %v2152_v60, %v4822_v21  ;;  %v6935_v8 = vpop.permute.xlu1 %4834  ;;  %v271_v42 = vsel %vm9396_vm1, %v268_v11, %v270_v26  ;;  %v4827_v21 = vunpack.i.h.bf16 %v6917_v59 }
  0xfa   :  { %v4830_v63 = vpop.permute.xlu0 %4829  ;;  %v2258_v3 = vpack.c.bf16 %v2209_v28, %v2208_v61  ;;  %v4836_v50 = vunpack.i.l.bf16 %v6935_v8  ;;  %v267_v22 = vsel %vm9396_vm1, %v264_v29, %v266_v33  ;;  %v269_v1 = vsel %vm9396_vm1, %v266_v33, %v268_v11 }
  0xfb   :  { %v4832_v40 = vunpack.i.h.bf16 %v4830_v63  ;;  %v4831_v35 = vunpack.i.l.bf16 %v4830_v63  ;;  %5124 = vrot.lane.b32.xlu1 %v6839_v23, %s5868_s23  ;;  %v4826_v7 = vunpack.i.l.bf16 %v6917_v59  ;;  %v548_v5 = vrot.slane %v7009_v18, 4 }
  0xfc   :  { %5119 = vrot.lane.b32.xlu0 %v6843_v39, %s5868_s23  ;;  %4395 = vmatprep.mubr.msk.bf16.mxu0 %vm9388_vm10, %v2258_v3  ;;  %v7062_v28 = vpack.i.bf16 %v269_v1, %v267_v22  ;;  %v1815_v63 = vsel %vm9397_vm2, %v5824_v10, %v4836_v50  ;;  %v1814_v45 = vsel %vm9397_vm2, %v5825_v14, %v4827_v21 }
  0xfd   :  { %v2211_v48 = vsel %vm9398_vm9, %v2154_v6, %v4832_v40  ;;  %v2210_v9 = vsel %vm9398_vm9, %v2153_v47, %v4831_v35  ;;  %v6960_v30 = vpop.permute.xlu1 %4844  ;;  %v5826_v40 = vld [vmem:[%s9376_s0 + $0x80] sm:$0xff] }
  0xfe   :  { %v6972_v2 = vpop.permute.xlu0 %4839  ;;  %v2259_v52 = vpack.c.bf16 %v2211_v48, %v2210_v9  ;;  %v4847_v20 = vunpack.i.h.bf16 %v6960_v30  ;;  %v4846_v13 = vunpack.i.l.bf16 %v6960_v30  ;;  %v1813_v35 = vsel %vm9397_vm2, %v5826_v40, %v4826_v7 }
  0xff   :  { %5134 = vrot.lane.b32.xlu1 %v6853_v27, %s5869_s24  ;;  %v4842_v54 = vunpack.i.h.bf16 %v6972_v2 }
 0x100   :  { %5129 = vrot.lane.b32.xlu0 %v6866_v31, %s5869_s24  ;;  %4396 = vmatmul.mubr.msk.bf16.gmra.mrb[12].mxu0 %vm9388_vm10, %v2259_v52  ;;  %v1872_v47 = vsel %vm9394_vm3, %v1815_v63, %v4846_v13 }
 0x101   :  { %v6983_v58 = vpop.permute.xlu1 %4854 }
 0x102   :  { %v6985_v15 = vpop.permute.xlu0 %4849  ;;  %v4857_v32 = vunpack.i.h.bf16 %v6983_v58  ;;  %v4856_v59 = vunpack.i.l.bf16 %v6983_v58 }
 0x103   :  { %5144 = vrot.lane.b32.xlu1 %v6976_v38, %s5870_s1  ;;  %v4852_v3 = vunpack.i.h.bf16 %v6985_v15  ;;  %v4851_v4 = vunpack.i.l.bf16 %v6985_v15 }
 0x104   :  { %5139 = vrot.lane.b32.xlu0 %v6981_v16, %s5870_s1  ;;  %v1929_v44 = vsel %vm9393_vm4, %v1872_v47, %v4856_v59  ;;  %v549_v47 = vsel %vm9395_vm0, %v546_v49, %v548_v5 }
 0x105   :  { %v7011_v36 = vpop.permute.xlu1 %4864 }
 0x106   :  { %v7013_v56 = vpop.permute.xlu0 %4859  ;;  %v4866_v33 = vunpack.i.l.bf16 %v7011_v36 }
 0x107   :  { %5154 = vrot.lane.b32.xlu1 %v6673_v37, %s5864_s17  ;;  %v273_v37 = vsel %vm9396_vm1, %v270_v26, %v272_v0  ;;  %v4862_v48 = vunpack.i.h.bf16 %v7013_v56  ;;  %v4861_v9 = vunpack.i.l.bf16 %v7013_v56  ;;  %v4867_v56 = vunpack.i.h.bf16 %v7011_v36 }
 0x108   :  { %5149 = vrot.lane.b32.xlu0 %v6675_v17, %s5864_s17  ;;  %v4837_v17 = vunpack.i.h.bf16 %v6935_v8  ;;  %v7057_v29 = vpack.i.bf16 %v273_v37, %v271_v42  ;;  %v550_v8 = vrot.slane %v6992_v12, 4  ;;  %v7185_v12 = vld [vmem:[%s9376_s0 + $0x178] sm:$0xff] }
 0x109   :  { %v7023_v51 = vpop.permute.xlu1 %4874 }
 0x10a   :  { %v7025_v34 = vpop.permute.xlu0 %4869  ;;  %v4877_v50 = vunpack.i.h.bf16 %v7023_v51  ;;  %v4876_v22 = vunpack.i.l.bf16 %v7023_v51  ;;  %v551_v62 = vsel %vm9395_vm0, %v548_v5, %v550_v8 }
 0x10b   :  { %5164 = vrot.lane.b32.xlu1 %v6815_v24, %s5863_s16  ;;  %v4841_v24 = vunpack.i.l.bf16 %v6972_v2  ;;  %v4872_v2 = vunpack.i.h.bf16 %v7025_v34  ;;  %v4871_v52 = vunpack.i.l.bf16 %v7025_v34  ;;  %v7163_v18 = vpack.i.bf16 %v551_v62, %v549_v47 }
 0x10c   :  { %5159 = vrot.lane.b32.xlu0 %v6779_v46, %s5863_s16  ;;  %v5823_v46 = vld [vmem:[%s9376_s0 + $0x98] sm:$0xff] }
 0x10d   :  { %v7055_v60 = vpop.permute.xlu1 %4884  ;;  %v1816_v55 = vsel %vm9397_vm2, %v5823_v46, %v4837_v17  ;;  %v1870_v41 = vsel %vm9394_vm3, %v1813_v35, %v4841_v24 }
 0x10e   :  { %v4880_v61 = vpop.permute.xlu0 %4879  ;;  %v1873_v6 = vsel %vm9394_vm3, %v1816_v55, %v4847_v20  ;;  %v4887_v36 = vunpack.i.h.bf16 %v7055_v60  ;;  %v4886_v20 = vunpack.i.l.bf16 %v7055_v60  ;;  %v1986_v60 = vsel %vm9392_vm5, %v1929_v44, %v4866_v33 }
 0x10f   :  { %5174 = vrot.lane.b32.xlu1 %v6839_v23, %s5865_s22  ;;  %v1871_v23 = vsel %vm9394_vm3, %v1814_v45, %v4842_v54  ;;  %v1930_v19 = vsel %vm9393_vm4, %v1873_v6, %v4857_v32  ;;  %v4882_v11 = vunpack.i.h.bf16 %v4880_v61  ;;  %v4881_v26 = vunpack.i.l.bf16 %v4880_v61 }
 0x110   :  { %5169 = vrot.lane.b32.xlu0 %v6843_v39, %s5865_s22  ;;  %v1927_v39 = vsel %vm9393_vm4, %v1870_v41, %v4851_v4  ;;  %v1928_v15 = vsel %vm9393_vm4, %v1871_v23, %v4852_v3  ;;  %v1987_v10 = vsel %vm9392_vm5, %v1930_v19, %v4867_v56  ;;  %v2043_v14 = vsel %vm9391_vm6, %v1986_v60, %v4876_v22 }
 0x111   :  { %v4895_v30 = vpop.permute.xlu1 %4894  ;;  %v1984_v34 = vsel %vm9392_vm5, %v1927_v39, %v4861_v9  ;;  %v1985_v17 = vsel %vm9392_vm5, %v1928_v15, %v4862_v48  ;;  %v2044_v45 = vsel %vm9391_vm6, %v1987_v10, %v4877_v50  ;;  %v2100_v6 = vsel %vm9390_vm7, %v2043_v14, %v4886_v20 }
 0x112   :  { %v4890_v58 = vpop.permute.xlu0 %4889  ;;  %v2041_v21 = vsel %vm9391_vm6, %v1984_v34, %v4871_v52  ;;  %v2042_v7 = vsel %vm9391_vm6, %v1985_v17, %v4872_v2  ;;  %v4897_v51 = vunpack.i.h.bf16 %v4895_v30  ;;  %v4896_v61 = vunpack.i.l.bf16 %v4895_v30 }
 0x113   :  { %5184 = vrot.lane.b32.xlu1 %v6853_v27, %s5866_s14  ;;  %v4892_v42 = vunpack.i.h.bf16 %v4890_v58  ;;  %v4891_v37 = vunpack.i.l.bf16 %v4890_v58  ;;  %v2098_v54 = vsel %vm9390_vm7, %v2041_v21, %v4881_v26  ;;  %v2099_v24 = vsel %vm9390_vm7, %v2042_v7, %v4882_v11  ;;  %v7180_v26 = vld [vmem:[%s9376_s0 + $0x170] sm:$0xff] }
 0x114   :  { %5179 = vrot.lane.b32.xlu0 %v6866_v31, %s5866_s14  ;;  %v2101_v23 = vsel %vm9390_vm7, %v2044_v45, %v4887_v36  ;;  %v2157_v9 = vsel %vm9389_vm8, %v2100_v6, %v4896_v61  ;;  %v552_v2 = vrot.slane %v6997_v25, 4  ;;  %v554_v52 = vrot.slane %v7002_v53, 4 }
 0x115   :  { %v7109_v1 = vpop.permute.xlu1 %4904  ;;  %v2155_v46 = vsel %vm9389_vm8, %v2098_v54, %v4891_v37  ;;  %v2156_v55 = vsel %vm9389_vm8, %v2099_v24, %v4892_v42  ;;  %v2158_v30 = vsel %vm9389_vm8, %v2101_v23, %v4897_v51  ;;  %v276_v37 = vrot.slane %v7180_v26, 2  ;;  %v5829_v23 = vld [vmem:[%s9376_s0 + $0xa8] sm:$0xff] }
 0x116   :  { %v4900_v13 = vpop.permute.xlu0 %4899  ;;  %v553_v25 = vsel %vm9395_vm0, %v550_v8, %v552_v2  ;;  %v555_v15 = vsel %vm9395_vm0, %v552_v2, %v554_v52  ;;  %v7190_v8 = vld [vmem:[%s9376_s0 + $0x180] sm:$0xff]  ;;  %v278_v34 = vrot.slane %v7185_v12, 2  ;;  %v7219_v7 = vpack.i.bf16 %v7185_v12, %v7180_v26 }
 0x117   :  { %v4902_v32 = vunpack.i.h.bf16 %v4900_v13  ;;  %v4901_v59 = vunpack.i.l.bf16 %v4900_v13  ;;  %5194 = vrot.lane.b32.xlu1 %v6976_v38, %s5867_s19  ;;  %v7194_v56 = vpack.i.bf16 %v555_v15, %v553_v25  ;;  %v280_v17 = vrot.slane %v7190_v8, 2 }
 0x118   :  { %5189 = vrot.lane.b32.xlu0 %v6981_v16, %s5867_s19  ;;  %v279_v20 = vsel %vm9396_vm1, %v276_v37, %v278_v34  ;;  %v4906_v51 = vunpack.i.l.bf16 %v7109_v1  ;;  %v558_v14 = vrot.slane %v7180_v26, 4  ;;  %v7375_v26 = vld [vmem:[%s9376_s0 + $0x198] sm:$0xff] }
 0x119   :  { %v2212_v63 = vsel %vm9398_vm9, %v2155_v46, %v4901_v59  ;;  %v2213_v3 = vsel %vm9398_vm9, %v2156_v55, %v4902_v32  ;;  %v7127_v4 = vpop.permute.xlu1 %4914  ;;  %v4907_v59 = vunpack.i.h.bf16 %v7109_v1 }
 0x11a   :  { %v4910_v40 = vpop.permute.xlu0 %4909  ;;  %v2260_v35 = vpack.c.bf16 %v2213_v3, %v2212_v63  ;;  %v4917_v13 = vunpack.i.h.bf16 %v7127_v4  ;;  %v4916_v54 = vunpack.i.l.bf16 %v7127_v4 }
 0x11b   :  { %v4912_v41 = vunpack.i.h.bf16 %v4910_v40  ;;  %v4911_v48 = vunpack.i.l.bf16 %v4910_v40  ;;  %5204 = vrot.lane.b32.xlu1 %v7029_v57, %s5868_s23  ;;  %v5828_v40 = vld [vmem:[%s9376_s0 + $0xb0] sm:$0xff] }
 0x11c   :  { %5199 = vrot.lane.b32.xlu0 %v7033_v43, %s5868_s23  ;;  %4399 = vmatprep.mubr.msk.bf16.mxu0 %vm9388_vm10, %v2260_v35  ;;  %v1819_v35 = vsel %vm9397_vm2, %v5828_v40, %v4916_v54 }
 0x11d   :  { %v2215_v49 = vsel %vm9398_vm9, %v2158_v30, %v4912_v41  ;;  %v2214_v44 = vsel %vm9398_vm9, %v2157_v9, %v4911_v48  ;;  %v7152_v19 = vpop.permute.xlu1 %4924  ;;  %v1818_v41 = vsel %vm9397_vm2, %v5829_v23, %v4907_v59  ;;  %v5830_v48 = vld [vmem:[%s9376_s0 + $0xa0] sm:$0xff] }
 0x11e   :  { %v7156_v58 = vpop.permute.xlu0 %4919  ;;  %v2261_v39 = vpack.c.bf16 %v2215_v49, %v2214_v44  ;;  %v4927_v61 = vunpack.i.h.bf16 %v7152_v19  ;;  %v4926_v46 = vunpack.i.l.bf16 %v7152_v19  ;;  %v1817_v9 = vsel %vm9397_vm2, %v5830_v48, %v4906_v51 }
 0x11f   :  { %5214 = vrot.lane.b32.xlu1 %v7057_v29, %s5869_s24  ;;  %v4922_v55 = vunpack.i.h.bf16 %v7156_v58 }
 0x120   :  { %5209 = vrot.lane.b32.xlu0 %v7062_v28, %s5869_s24  ;;  %4400 = vmatmul.mubr.msk.bf16.gmra.mrb[16].mxu0 %vm9388_vm10, %v2261_v39  ;;  %v1876_v30 = vsel %vm9394_vm3, %v1819_v35, %v4926_v46 }
 0x121   :  { %v7165_v5 = vpop.permute.xlu1 %4934 }
 0x122   :  { %v7173_v11 = vpop.permute.xlu0 %4929  ;;  %v4937_v63 = vunpack.i.h.bf16 %v7165_v5  ;;  %v4936_v1 = vunpack.i.l.bf16 %v7165_v5 }
 0x123   :  { %5224 = vrot.lane.b32.xlu1 %v6866_v31, %s5864_s17  ;;  %v7199_v31 = vld [vmem:[%s9376_s0 + $0x168] sm:$0xff]  ;;  %v4932_v47 = vunpack.i.h.bf16 %v7173_v11  ;;  %v4931_v6 = vunpack.i.l.bf16 %v7173_v11 }
 0x124   :  { %5219 = vrot.lane.b32.xlu0 %v7163_v18, %s5870_s1  ;;  %v274_v50 = vrot.slane %v7199_v31, 2  ;;  %v7223_v36 = vpack.i.bf16 %v7199_v31, %v7002_v53  ;;  %v556_v10 = vrot.slane %v7199_v31, 4 }
 0x125   :  { %v7201_v33 = vpop.permute.xlu1 %4944 }
 0x126   :  { %v7203_v42 = vpop.permute.xlu0 %4939  ;;  %v275_v24 = vsel %vm9396_vm1, %v272_v0, %v274_v50  ;;  %v277_v32 = vsel %vm9396_vm1, %v274_v50, %v276_v37  ;;  %v4946_v50 = vunpack.i.l.bf16 %v7201_v33  ;;  %v559_v53 = vsel %vm9395_vm0, %v556_v10, %v558_v14 }
 0x127   :  { %5234 = vrot.lane.b32.xlu1 %v6853_v27, %s5864_s17  ;;  %v281_v27 = vsel %vm9396_vm1, %v278_v34, %v280_v17  ;;  %v7252_v4 = vpack.i.bf16 %v277_v32, %v275_v24  ;;  %v4942_v44 = vunpack.i.h.bf16 %v7203_v42  ;;  %v4941_v19 = vunpack.i.l.bf16 %v7203_v42 }
 0x128   :  { %5229 = vrot.lane.b32.xlu0 %v7194_v56, %s5870_s1  ;;  %v7247_v0 = vpack.i.bf16 %v281_v27, %v279_v20  ;;  %v4947_v42 = vunpack.i.h.bf16 %v7201_v33 }
 0x129   :  { %v7213_v22 = vpop.permute.xlu1 %4954 }
 0x12a   :  { %v7215_v21 = vpop.permute.xlu0 %4949  ;;  %v4957_v54 = vunpack.i.h.bf16 %v7213_v22  ;;  %v4956_v24 = vunpack.i.l.bf16 %v7213_v22 }
 0x12b   :  { %5244 = vrot.lane.b32.xlu1 %v6976_v38, %s5863_s16  ;;  %v4921_v38 = vunpack.i.l.bf16 %v7156_v58  ;;  %v1933_v58 = vsel %vm9393_vm4, %v1876_v30, %v4936_v1  ;;  %v4952_v5 = vunpack.i.h.bf16 %v7215_v21  ;;  %v4951_v25 = vunpack.i.l.bf16 %v7215_v21 }
 0x12c   :  { %5239 = vrot.lane.b32.xlu0 %v6981_v16, %s5863_s16  ;;  %v5827_v16 = vld [vmem:[%s9376_s0 + $0xb8] sm:$0xff]  ;;  %v557_v30 = vsel %vm9395_vm0, %v554_v52, %v556_v10 }
 0x12d   :  { %v7245_v60 = vpop.permute.xlu1 %4964  ;;  %v1820_v45 = vsel %vm9397_vm2, %v5827_v16, %v4917_v13  ;;  %v1874_v49 = vsel %vm9394_vm3, %v1817_v9, %v4921_v38  ;;  %v7353_v31 = vpack.i.bf16 %v559_v53, %v557_v30 }
 0x12e   :  { %v4960_v3 = vpop.permute.xlu0 %4959  ;;  %v1877_v62 = vsel %vm9394_vm3, %v1820_v45, %v4927_v61  ;;  %v4967_v33 = vunpack.i.h.bf16 %v7245_v60  ;;  %v4966_v61 = vunpack.i.l.bf16 %v7245_v60  ;;  %v1990_v60 = vsel %vm9392_vm5, %v1933_v58, %v4946_v50 }
 0x12f   :  { %5254 = vrot.lane.b32.xlu1 %v7029_v57, %s5865_s22  ;;  %v1875_v57 = vsel %vm9394_vm3, %v1818_v41, %v4922_v55  ;;  %v1934_v39 = vsel %vm9393_vm4, %v1877_v62, %v4937_v63  ;;  %v4962_v37 = vunpack.i.h.bf16 %v4960_v3  ;;  %v4961_v34 = vunpack.i.l.bf16 %v4960_v3 }
 0x130   :  { %5249 = vrot.lane.b32.xlu0 %v7033_v43, %s5865_s22  ;;  %v1931_v43 = vsel %vm9393_vm4, %v1874_v49, %v4931_v6  ;;  %v1932_v11 = vsel %vm9393_vm4, %v1875_v57, %v4932_v47  ;;  %v1991_v40 = vsel %vm9392_vm5, %v1934_v39, %v4947_v42  ;;  %v2047_v23 = vsel %vm9391_vm6, %v1990_v60, %v4956_v24 }
 0x131   :  { %v4975_v2 = vpop.permute.xlu1 %4974  ;;  %v1988_v21 = vsel %vm9392_vm5, %v1931_v43, %v4941_v19  ;;  %v1989_v13 = vsel %vm9392_vm5, %v1932_v11, %v4942_v44  ;;  %v2048_v41 = vsel %vm9391_vm6, %v1991_v40, %v4957_v54  ;;  %v2104_v62 = vsel %vm9390_vm7, %v2047_v23, %v4966_v61 }
 0x132   :  { %v4970_v15 = vpop.permute.xlu0 %4969  ;;  %v2045_v59 = vsel %vm9391_vm6, %v1988_v21, %v4951_v25  ;;  %v2046_v51 = vsel %vm9391_vm6, %v1989_v13, %v4952_v5  ;;  %v4977_v22 = vunpack.i.h.bf16 %v4975_v2  ;;  %v4976_v3 = vunpack.i.l.bf16 %v4975_v2 }
 0x133   :  { %5264 = vrot.lane.b32.xlu1 %v7057_v29, %s5866_s14  ;;  %v4972_v20 = vunpack.i.h.bf16 %v4970_v15  ;;  %v4971_v27 = vunpack.i.l.bf16 %v4970_v15  ;;  %v2102_v55 = vsel %vm9390_vm7, %v2045_v59, %v4961_v34  ;;  %v2103_v38 = vsel %vm9390_vm7, %v2046_v51, %v4962_v37  ;;  %v7370_v34 = vld [vmem:[%s9376_s0 + $0x190] sm:$0xff] }
 0x134   :  { %5259 = vrot.lane.b32.xlu0 %v7062_v28, %s5866_s14  ;;  %v2105_v57 = vsel %vm9390_vm7, %v2048_v41, %v4967_v33  ;;  %v2161_v19 = vsel %vm9389_vm8, %v2104_v62, %v4976_v3  ;;  %v560_v5 = vrot.slane %v7185_v12, 4  ;;  %v562_v25 = vrot.slane %v7190_v8, 4  ;;  %v5832_v41 = vld [vmem:[%s9376_s0 + $0xd0] sm:$0xff]  ;;  %v5833_v62 = vld [vmem:[%s9376_s0 + $0xc8] sm:$0xff] }
 0x135   :  { %v7299_v32 = vpop.permute.xlu1 %4984  ;;  %v2159_v16 = vsel %vm9389_vm8, %v2102_v55, %v4971_v27  ;;  %v2160_v45 = vsel %vm9389_vm8, %v2103_v38, %v4972_v20  ;;  %v2162_v2 = vsel %vm9389_vm8, %v2105_v57, %v4977_v22  ;;  %v284_v27 = vrot.slane %v7370_v34, 2 }
 0x136   :  { %v4980_v46 = vpop.permute.xlu0 %4979  ;;  %v561_v12 = vsel %vm9395_vm0, %v558_v14, %v560_v5  ;;  %v563_v11 = vsel %vm9395_vm0, %v560_v5, %v562_v25  ;;  %v7380_v14 = vld [vmem:[%s9376_s0 + $0x1a0] sm:$0xff]  ;;  %v286_v21 = vrot.slane %v7375_v26, 2  ;;  %v7409_v51 = vpack.i.bf16 %v7375_v26, %v7370_v34 }
 0x137   :  { %v4982_v63 = vunpack.i.h.bf16 %v4980_v46  ;;  %v4981_v1 = vunpack.i.l.bf16 %v4980_v46  ;;  %5274 = vrot.lane.b32.xlu1 %v7194_v56, %s5867_s19  ;;  %v7384_v42 = vpack.i.bf16 %v563_v11, %v561_v12  ;;  %v288_v13 = vrot.slane %v7380_v14, 2 }
 0x138   :  { %5269 = vrot.lane.b32.xlu0 %v7163_v18, %s5867_s19  ;;  %v287_v33 = vsel %vm9396_vm1, %v284_v27, %v286_v21 }
 0x139   :  { %v2216_v35 = vsel %vm9398_vm9, %v2159_v16, %v4981_v1  ;;  %v2217_v47 = vsel %vm9398_vm9, %v2160_v45, %v4982_v63  ;;  %v7317_v6 = vpop.permute.xlu1 %4994  ;;  %v289_v61 = vsel %vm9396_vm1, %v286_v21, %v288_v13  ;;  %v4987_v63 = vunpack.i.h.bf16 %v7299_v32 }
 0x13a   :  { %v4990_v48 = vpop.permute.xlu0 %4989  ;;  %v2262_v9 = vpack.c.bf16 %v2217_v47, %v2216_v35  ;;  %v4996_v46 = vunpack.i.l.bf16 %v7317_v6  ;;  %v4986_v1 = vunpack.i.l.bf16 %v7299_v32  ;;  %v7438_v60 = vpack.i.bf16 %v289_v61, %v287_v33 }
 0x13b   :  { %v4992_v49 = vunpack.i.h.bf16 %v4990_v48  ;;  %v4991_v44 = vunpack.i.l.bf16 %v4990_v48  ;;  %5284 = vrot.lane.b32.xlu1 %v7219_v7, %s5868_s23  ;;  %v1822_v57 = vsel %vm9397_vm2, %v5833_v62, %v4987_v63 }
 0x13c   :  { %5279 = vrot.lane.b32.xlu0 %v7223_v36, %s5868_s23  ;;  %4403 = vmatprep.mubr.msk.bf16.mxu0 %vm9388_vm10, %v2262_v9  ;;  %v1823_v48 = vsel %vm9397_vm2, %v5832_v41, %v4996_v46 }
 0x13d   :  { %v2219_v52 = vsel %vm9398_vm9, %v2162_v2, %v4992_v49  ;;  %v2218_v58 = vsel %vm9398_vm9, %v2161_v19, %v4991_v44  ;;  %v7342_v39 = vpop.permute.xlu1 %5004  ;;  %v5834_v49 = vld [vmem:[%s9376_s0 + $0xc0] sm:$0xff] }
 0x13e   :  { %v7346_v15 = vpop.permute.xlu0 %4999  ;;  %v2263_v43 = vpack.c.bf16 %v2219_v52, %v2218_v58  ;;  %v5007_v22 = vunpack.i.h.bf16 %v7342_v39  ;;  %v5006_v3 = vunpack.i.l.bf16 %v7342_v39  ;;  %v1821_v44 = vsel %vm9397_vm2, %v5834_v49, %v4986_v1 }
 0x13f   :  { %5294 = vrot.lane.b32.xlu1 %v7247_v0, %s5869_s24  ;;  %v5001_v16 = vunpack.i.l.bf16 %v7346_v15 }
 0x140   :  { %5289 = vrot.lane.b32.xlu0 %v7252_v4, %s5869_s24  ;;  %4404 = vmatmul.mubr.msk.bf16.gmra.mrb[20].mxu0 %vm9388_vm10, %v2263_v43  ;;  %v1880_v19 = vsel %vm9394_vm3, %v1823_v48, %v5006_v3 }
 0x141   :  { %v7355_v10 = vpop.permute.xlu1 %5014  ;;  %v1878_v53 = vsel %vm9394_vm3, %v1821_v44, %v5001_v16 }
 0x142   :  { %v7363_v37 = vpop.permute.xlu0 %5009  ;;  %v5017_v40 = vunpack.i.h.bf16 %v7355_v10  ;;  %v5016_v32 = vunpack.i.l.bf16 %v7355_v10 }
 0x143   :  { %5304 = vrot.lane.b32.xlu1 %v7062_v28, %s5864_s17  ;;  %v7389_v28 = vld [vmem:[%s9376_s0 + $0x188] sm:$0xff]  ;;  %v5012_v9 = vunpack.i.h.bf16 %v7363_v37  ;;  %v5011_v30 = vunpack.i.l.bf16 %v7363_v37 }
 0x144   :  { %5299 = vrot.lane.b32.xlu0 %v7353_v31, %s5870_s1  ;;  %v282_v54 = vrot.slane %v7389_v28, 2  ;;  %v7421_v55 = vpack.i.bf16 %v7389_v28, %v7190_v8  ;;  %v1937_v5 = vsel %vm9393_vm4, %v1880_v19, %v5016_v32 }
 0x145   :  { %v7391_v50 = vpop.permute.xlu1 %5024 }
 0x146   :  { %v7393_v20 = vpop.permute.xlu0 %5019  ;;  %v7426_v38 = vsel %vm9396_vm1, %v280_v17, %v282_v54  ;;  %v564_v17 = vrot.slane %v7389_v28, 4  ;;  %v7444_v47 = vsel %vm9396_vm1, %v282_v54, %v284_v27  ;;  %v5026_v21 = vunpack.i.l.bf16 %v7391_v50 }
 0x147   :  { %5314 = vrot.lane.b32.xlu1 %v7057_v29, %s5864_s17  ;;  %v4997_v29 = vunpack.i.h.bf16 %v7317_v6  ;;  %v5831_v6 = vld [vmem:[%s9376_s0 + $0xd8] sm:$0xff]  ;;  %v5022_v52 = vunpack.i.h.bf16 %v7393_v20  ;;  %v5021_v58 = vunpack.i.l.bf16 %v7393_v20  ;;  %v5027_v20 = vunpack.i.h.bf16 %v7391_v50 }
 0x148   :  { %5309 = vrot.lane.b32.xlu0 %v7384_v42, %s5870_s1 }
 0x149   :  { %v7403_v24 = vpop.permute.xlu1 %5034  ;;  %v1824_v23 = vsel %vm9397_vm2, %v5831_v6, %v4997_v29 }
 0x14a   :  { %v7405_v59 = vpop.permute.xlu0 %5029  ;;  %v1881_v2 = vsel %vm9394_vm3, %v1824_v23, %v5007_v22  ;;  %v5037_v29 = vunpack.i.h.bf16 %v7403_v24  ;;  %v5036_v46 = vunpack.i.l.bf16 %v7403_v24 }
 0x14b   :  { %5324 = vrot.lane.b32.xlu1 %v7194_v56, %s5863_s16  ;;  %v5002_v56 = vunpack.i.h.bf16 %v7346_v15  ;;  %v1938_v15 = vsel %vm9393_vm4, %v1881_v2, %v5017_v40  ;;  %v5032_v43 = vunpack.i.h.bf16 %v7405_v59  ;;  %v5031_v10 = vunpack.i.l.bf16 %v7405_v59 }
 0x14c   :  { %5319 = vrot.lane.b32.xlu0 %v7163_v18, %s5863_s16  ;;  %v566_v18 = vrot.slane %v7370_v34, 4  ;;  %v1995_v48 = vsel %vm9392_vm5, %v1938_v15, %v5027_v20  ;;  %v7515_v2 = vpack.i.bf16 %v7444_v47, %v7426_v38  ;;  %v568_v38 = vrot.slane %v7375_v26, 4  ;;  %v7568_v34 = vld [vmem:[%s9376_s0 + $0x1c0] sm:$0xff] }
 0x14d   :  { %v7436_v45 = vpop.permute.xlu1 %5044  ;;  %v2052_v49 = vsel %vm9391_vm6, %v1995_v48, %v5037_v29  ;;  %v570_v47 = vrot.slane %v7380_v14, 4 }
 0x14e   :  { %v5040_v35 = vpop.permute.xlu0 %5039  ;;  %v5047_v50 = vunpack.i.h.bf16 %v7436_v45  ;;  %v5046_v3 = vunpack.i.l.bf16 %v7436_v45  ;;  %v1994_v45 = vsel %vm9392_vm5, %v1937_v5, %v5026_v21  ;;  %v569_v8 = vsel %vm9395_vm0, %v566_v18, %v568_v38  ;;  %v7577_v21 = vld [vmem:[%s9376_s0 + $0x1a8] sm:$0xff] }
 0x14f   :  { %5334 = vrot.lane.b32.xlu1 %v7219_v7, %s5865_s22  ;;  %v1879_v7 = vsel %vm9394_vm3, %v1822_v57, %v5002_v56  ;;  %v5042_v37 = vunpack.i.h.bf16 %v5040_v35  ;;  %v5041_v27 = vunpack.i.l.bf16 %v5040_v35  ;;  %v2051_v57 = vsel %vm9391_vm6, %v1994_v45, %v5036_v46 }
 0x150   :  { %5329 = vrot.lane.b32.xlu0 %v7223_v36, %s5865_s22  ;;  %v1935_v36 = vsel %vm9393_vm4, %v1878_v53, %v5011_v30  ;;  %v1936_v11 = vsel %vm9393_vm4, %v1879_v7, %v5012_v9  ;;  %v2108_v7 = vsel %vm9390_vm7, %v2051_v57, %v5046_v3  ;;  %v2109_v53 = vsel %vm9390_vm7, %v2052_v49, %v5047_v50  ;;  %v5837_v57 = vld [vmem:[%s9376_s0 + $0xf8] sm:$0xff] }
 0x151   :  { %v5055_v39 = vpop.permute.xlu1 %5054  ;;  %v1992_v59 = vsel %vm9392_vm5, %v1935_v36, %v5021_v58  ;;  %v1993_v61 = vsel %vm9392_vm5, %v1936_v11, %v5022_v52  ;;  %v567_v36 = vsel %vm9395_vm0, %v564_v17, %v566_v18  ;;  %v290_v46 = vrot.slane %v7577_v21, 2 }
 0x152   :  { %v5050_v12 = vpop.permute.xlu0 %5049  ;;  %v2049_v1 = vsel %vm9391_vm6, %v1992_v59, %v5031_v10  ;;  %v2050_v22 = vsel %vm9391_vm6, %v1993_v61, %v5032_v43  ;;  %v5057_v24 = vunpack.i.h.bf16 %v5055_v39  ;;  %v5056_v6 = vunpack.i.l.bf16 %v5055_v39 }
 0x153   :  { %5344 = vrot.lane.b32.xlu1 %v7247_v0, %s5866_s14  ;;  %v5052_v54 = vunpack.i.h.bf16 %v5050_v12  ;;  %v5051_v33 = vunpack.i.l.bf16 %v5050_v12  ;;  %v2106_v16 = vsel %vm9390_vm7, %v2049_v1, %v5041_v27  ;;  %v2107_v40 = vsel %vm9390_vm7, %v2050_v22, %v5042_v37  ;;  %v7561_v27 = vld [vmem:[%s9376_s0 + $0x1b8] sm:$0xff] }
 0x154   :  { %5339 = vrot.lane.b32.xlu0 %v7252_v4, %s5866_s14  ;;  %v2165_v39 = vsel %vm9389_vm8, %v2108_v7, %v5056_v6  ;;  %v2166_v5 = vsel %vm9389_vm8, %v2109_v53, %v5057_v24  ;;  %v565_v12 = vsel %vm9395_vm0, %v562_v25, %v564_v17  ;;  %v571_v25 = vsel %vm9395_vm0, %v568_v38, %v570_v47  ;;  %v7556_v17 = vld [vmem:[%s9376_s0 + $0x1b0] sm:$0xff]  ;;  %v5835_v6 = vld [vmem:[%s9376_s0 + $0xe8] sm:$0xff] }
 0x155   :  { %v7491_v63 = vpop.permute.xlu1 %5064  ;;  %v2163_v23 = vsel %vm9389_vm8, %v2106_v16, %v5051_v33  ;;  %v2164_v41 = vsel %vm9389_vm8, %v2107_v40, %v5052_v54  ;;  %v7545_v37 = vpack.i.bf16 %v567_v36, %v565_v12  ;;  %v7572_v18 = vpack.i.bf16 %v571_v25, %v569_v8 }
 0x156   :  { %v5060_v56 = vpop.permute.xlu0 %5059  ;;  %v292_v54 = vrot.slane %v7556_v17, 2  ;;  %v294_v33 = vrot.slane %v7561_v27, 2  ;;  %v296_v61 = vrot.slane %v7568_v34, 2  ;;  %v5067_v29 = vunpack.i.h.bf16 %v7491_v63 }
 0x157   :  { %v5062_v32 = vunpack.i.h.bf16 %v5060_v56  ;;  %v5061_v35 = vunpack.i.l.bf16 %v5060_v56  ;;  %5354 = vrot.lane.b32.xlu1 %v7384_v42, %s5867_s19  ;;  %v5066_v1 = vunpack.i.l.bf16 %v7491_v63  ;;  %v7597_v56 = vpack.i.bf16 %v7561_v27, %v7556_v17 }
 0x158   :  { %5349 = vrot.lane.b32.xlu0 %v7353_v31, %s5867_s19  ;;  %v7601_v16 = vpack.i.bf16 %v7577_v21, %v7380_v14  ;;  %v7604_v63 = vsel %vm9396_vm1, %v292_v54, %v294_v33  ;;  %v7618_v48 = vsel %vm9396_vm1, %v288_v13, %v290_v46  ;;  %v5838_v13 = vld [vmem:[%s9376_s0 + $0xf0] sm:$0xff] }
 0x159   :  { %v2220_v9 = vsel %vm9398_vm9, %v2163_v23, %v5061_v35  ;;  %v2221_v30 = vsel %vm9398_vm9, %v2164_v41, %v5062_v32  ;;  %v7509_v62 = vpop.permute.xlu1 %5074  ;;  %v1826_v23 = vsel %vm9397_vm2, %v5835_v6, %v5067_v29 }
 0x15a   :  { %v5070_v44 = vpop.permute.xlu0 %5069  ;;  %v2264_v19 = vpack.c.bf16 %v2221_v30, %v2220_v9  ;;  %v5077_v22 = vunpack.i.h.bf16 %v7509_v62  ;;  %v5076_v50 = vunpack.i.l.bf16 %v7509_v62  ;;  %v7621_v9 = vsel %vm9396_vm1, %v290_v46, %v292_v54  ;;  %v5836_v30 = vld [vmem:[%s9376_s0 + $0xe0] sm:$0xff] }
 0x15b   :  { %v5072_v52 = vunpack.i.h.bf16 %v5070_v44  ;;  %v5071_v58 = vunpack.i.l.bf16 %v5070_v44  ;;  %5364 = vrot.lane.b32.xlu1 %v7409_v51, %s5868_s23  ;;  %v1825_v62 = vsel %vm9397_vm2, %v5836_v30, %v5066_v1 }
 0x15c   :  { %5359 = vrot.lane.b32.xlu0 %v7421_v55, %s5868_s23  ;;  %4407 = vmatprep.mubr.msk.bf16.mxu0 %vm9388_vm10, %v2264_v19  ;;  %v1828_v49 = vsel %vm9397_vm2, %v5837_v57, %v5077_v22  ;;  %v1827_v44 = vsel %vm9397_vm2, %v5838_v13, %v5076_v50 }
 0x15d   :  { %v2223_v15 = vsel %vm9398_vm9, %v2166_v5, %v5072_v52  ;;  %v2222_v43 = vsel %vm9398_vm9, %v2165_v39, %v5071_v58  ;;  %v5085_v10 = vpop.permute.xlu1 %5084 }
 0x15e   :  { %v5080_v26 = vpop.permute.xlu0 %5079  ;;  %v2265_v11 = vpack.c.bf16 %v2223_v15, %v2222_v43  ;;  %v5086_v3 = vunpack.i.l.bf16 %v5085_v10  ;;  %v5087_v40 = vunpack.i.h.bf16 %v5085_v10 }
 0x15f   :  { %5374 = vrot.lane.b32.xlu1 %v7438_v60, %s5869_s24  ;;  %v5082_v32 = vunpack.i.h.bf16 %v5080_v26  ;;  %v5081_v35 = vunpack.i.l.bf16 %v5080_v26 }
 0x160   :  { %5369 = vrot.lane.b32.xlu0 %v7515_v2, %s5869_s24  ;;  %4408 = vmatmul.mubr.msk.bf16.gmra.mrb[24].mxu0 %vm9388_vm10, %v2265_v11  ;;  %v1884_v7 = vsel %vm9394_vm3, %v1827_v44, %v5086_v3  ;;  %v1885_v39 = vsel %vm9394_vm3, %v1828_v49, %v5087_v40 }
 0x161   :  { %v5095_v28 = vpop.permute.xlu1 %5094  ;;  %v1883_v5 = vsel %vm9394_vm3, %v1826_v23, %v5082_v32  ;;  %v1882_v38 = vsel %vm9394_vm3, %v1825_v62, %v5081_v35 }
 0x162   :  { %v7563_v20 = vpop.permute.xlu0 %5089  ;;  %v5096_v41 = vunpack.i.l.bf16 %v5095_v28  ;;  %v5097_v19 = vunpack.i.h.bf16 %v5095_v28 }
 0x163   :  { %5384 = vrot.lane.b32.xlu1 %v7252_v4, %s5864_s17  ;;  %v5092_v53 = vunpack.i.h.bf16 %v7563_v20  ;;  %v5091_v52 = vunpack.i.l.bf16 %v7563_v20 }
 0x164   :  { %5379 = vrot.lane.b32.xlu0 %v7545_v37, %s5870_s1  ;;  %v1942_v11 = vsel %vm9393_vm4, %v1885_v39, %v5097_v19  ;;  %v572_v19 = vrot.slane %v7577_v21, 4 }
 0x165   :  { %v5105_v59 = vpop.permute.xlu1 %5104  ;;  %v1939_v28 = vsel %vm9393_vm4, %v1882_v38, %v5091_v52  ;;  %v1940_v20 = vsel %vm9393_vm4, %v1883_v5, %v5092_v53 }
 0x166   :  { %v7585_v4 = vpop.permute.xlu0 %5099  ;;  %v5106_v58 = vunpack.i.l.bf16 %v5105_v59  ;;  %v5107_v15 = vunpack.i.h.bf16 %v5105_v59 }
 0x167   :  { %5394 = vrot.lane.b32.xlu1 %v7247_v0, %s5864_s17  ;;  %v7609_v0 = vsel %vm9396_vm1, %v294_v33, %v296_v61  ;;  %v5102_v10 = vunpack.i.h.bf16 %v7585_v4  ;;  %v5101_v12 = vunpack.i.l.bf16 %v7585_v4 }
 0x168   :  { %5389 = vrot.lane.b32.xlu0 %v7572_v18, %s5870_s1  ;;  %v1999_v59 = vsel %vm9392_vm5, %v1942_v11, %v5107_v15 }
 0x169   :  { %v5115_v24 = vpop.permute.xlu1 %5114  ;;  %v1996_v22 = vsel %vm9392_vm5, %v1939_v28, %v5101_v12  ;;  %v574_v28 = vrot.slane %v7556_v17, 4 }
 0x16a   :  { %v5110_v45 = vpop.permute.xlu0 %5109  ;;  %v5116_v36 = vunpack.i.l.bf16 %v5115_v24  ;;  %v5117_v8 = vunpack.i.h.bf16 %v5115_v24 }
 0x16b   :  { %5404 = vrot.lane.b32.xlu1 %v7384_v42, %s5863_s16  ;;  %v1941_v42 = vsel %vm9393_vm4, %v1884_v7, %v5096_v41  ;;  %v5111_v25 = vunpack.i.l.bf16 %v5110_v45  ;;  %v5871_v7 = vmov 0  }
 0x16c   :  { %5399 = vrot.lane.b32.xlu0 %v7353_v31, %s5863_s16  ;;  %v5112_v31 = vunpack.i.h.bf16 %v5110_v45  ;;  %v1998_v54 = vsel %vm9392_vm5, %v1941_v42, %v5106_v58  ;;  %v2056_v32 = vsel %vm9391_vm6, %v1999_v59, %v5117_v8  ;;  %5629 = vset.pattern.permute.xlu1 %v5871_v7  ;;  %v7714_v59 = vpack.i.bf16 %v7621_v9, %v7618_v48 }
 0x16d   :  { %v5125_v43 = vpop.permute.xlu1 %5124  ;;  %v2055_v50 = vsel %vm9391_vm6, %v1998_v54, %v5116_v36  ;;  %v2053_v35 = vsel %vm9391_vm6, %v1996_v22, %v5111_v25  ;;  %5628 = vset.pattern.permute.xlu0 %v5871_v7  ;;  %v7749_v22 = vld [vmem:[%s9376_s0 + $0x1d8] sm:$0xff] }
 0x16e   :  { %v5120_v26 = vpop.permute.xlu0 %5119  ;;  %v5126_v33 = vunpack.i.l.bf16 %v5125_v43  ;;  %v5127_v29 = vunpack.i.h.bf16 %v5125_v43 }
 0x16f   :  { %5414 = vrot.lane.b32.xlu1 %v7409_v51, %s5865_s22  ;;  %v5122_v4 = vunpack.i.h.bf16 %v5120_v26  ;;  %v5121_v46 = vunpack.i.l.bf16 %v5120_v26  ;;  %v1997_v51 = vsel %vm9392_vm5, %v1940_v20, %v5102_v10 }
 0x170   :  { %5409 = vrot.lane.b32.xlu0 %v7421_v55, %s5865_s22  ;;  %v2054_v55 = vsel %vm9391_vm6, %v1997_v51, %v5112_v31  ;;  %v2112_v23 = vsel %vm9390_vm7, %v2055_v50, %v5126_v33  ;;  %v2113_v62 = vsel %vm9390_vm7, %v2056_v32, %v5127_v29  ;;  %v7707_v33 = vpack.i.bf16 %v7609_v0, %v7604_v63  ;;  %v7754_v51 = vld [vmem:[%s9376_s0 + $0x1e0] sm:$0xff]  ;;  %v7761_v50 = vld [vmem:[%s9376_s0 + $0x1c8] sm:$0xff] }
 0x171   :  { %v5135_v1 = vpop.permute.xlu1 %5134  ;;  %v2110_v57 = vsel %vm9390_vm7, %v2053_v35, %v5121_v46  ;;  %v2111_v49 = vsel %vm9390_vm7, %v2054_v55, %v5122_v4  ;;  %v573_v29 = vsel %vm9395_vm0, %v570_v47, %v572_v19  ;;  %v575_v63 = vsel %vm9395_vm0, %v572_v19, %v574_v28 }
 0x172   :  { %v5136_v3 = vunpack.i.l.bf16 %v5135_v1  ;;  %v5130_v40 = vpop.permute.xlu0 %5129  ;;  %v5137_v24 = vunpack.i.h.bf16 %v5135_v1  ;;  %v576_v0 = vrot.slane %v7561_v27, 4  ;;  %v578_v4 = vrot.slane %v7568_v34, 4  ;;  %v7744_v1 = vld [vmem:[%s9376_s0 + $0x1d0] sm:$0xff] }
 0x173   :  { %v7663_v6 = vpop.f32.mrb[0].mxu0  ;;  %5424 = vrot.lane.b32.xlu1 %v7438_v60, %s5866_s14  ;;  %v5132_v41 = vunpack.i.h.bf16 %v5130_v40  ;;  %v5131_v45 = vunpack.i.l.bf16 %v5130_v40  ;;  %v7731_v48 = vpack.i.bf16 %v575_v63, %v573_v29  ;;  %v922_v32 = vrot.slane %v7744_v1, 2  ;;  %v5842_v29 = vld [vmem:[%s9376_s0 + $0x100] sm:$0xff] }
 0x174   :  { %5419 = vrot.lane.b32.xlu0 %v7515_v2, %s5866_s14  ;;  %v7670_v30 = vpop.f32.mrb[1].mxu0  ;;  %v2169_v53 = vsel %vm9389_vm8, %v2112_v23, %v5136_v3  ;;  %v2170_v15 = vsel %vm9389_vm8, %v2113_v62, %v5137_v24  ;;  %v577_v14 = vsel %vm9395_vm0, %v574_v28, %v576_v0  ;;  %v579_v47 = vsel %vm9395_vm0, %v576_v0, %v578_v4  ;;  %v5840_v28 = vld [vmem:[%s9376_s0 + $0x110] sm:$0xff] }
 0x175   :  { %v7675_v13 = vpop.f32.mrb[2].mxu0  ;;  %v5145_v44 = vpop.permute.xlu1 %5144  ;;  %v2167_v10 = vsel %vm9389_vm8, %v2110_v57, %v5131_v45  ;;  %v2168_v12 = vsel %vm9389_vm8, %v2111_v49, %v5132_v41  ;;  %v7765_v3 = vpack.i.bf16 %v579_v47, %v577_v14  ;;  %v924_v35 = vrot.slane %v7749_v22, 2 }
 0x176   :  { %v2829_v52 = vpack.c.bf16 %v7675_v13, %v7663_v6  ;;  %v5147_v58 = vunpack.i.h.bf16 %v5145_v44  ;;  %v5146_v39 = vunpack.i.l.bf16 %v5145_v44  ;;  %v5140_v5 = vpop.permute.xlu0 %5139  ;;  %v7683_v38 = vpop.f32.mrb[3].mxu0  ;;  %v926_v55 = vrot.slane %v7754_v51, 2 }
 0x177   :  { %v5142_v43 = vunpack.i.h.bf16 %v5140_v5  ;;  %v5141_v42 = vunpack.i.l.bf16 %v5140_v5  ;;  %v2828_v21 = vpack.c.bf16 %v7683_v38, %v7670_v30  ;;  %5434 = vrot.lane.b32.xlu1 %v7572_v18, %s5867_s19  ;;  %v925_v41 = vsel %vm9396_vm1, %v922_v32, %v924_v35 }
 0x178   :  { %v2226_v36 = vsel %vm9398_vm9, %v2169_v53, %v5146_v39  ;;  %v2227_v26 = vsel %vm9398_vm9, %v2170_v15, %v5147_v58  ;;  %5429 = vrot.lane.b32.xlu0 %v7545_v37, %s5867_s19  ;;  %v927_v45 = vsel %vm9396_vm1, %v924_v35, %v926_v55  ;;  %v7790_v49 = vpack.i.bf16 %v7749_v22, %v7744_v1 }
 0x179   :  { %v2224_v11 = vsel %vm9398_vm9, %v2167_v10, %v5141_v42  ;;  %v2225_v8 = vsel %vm9398_vm9, %v2168_v12, %v5142_v43  ;;  %v7698_v31 = vpop.permute.xlu1 %5154  ;;  %v2267_v25 = vpack.c.bf16 %v2227_v26, %v2226_v36  ;;  %v7803_v39 = vpack.i.bf16 %v7761_v50, %v7568_v34  ;;  %v5839_v26 = vld [vmem:[%s9376_s0 + $0x118] sm:$0xff] }
 0x17a   :  { %v7701_v20 = vpop.permute.xlu0 %5149  ;;  %v2266_v54 = vpack.c.bf16 %v2225_v8, %v2224_v11  ;;  %v5157_v62 = vunpack.i.h.bf16 %v7698_v31  ;;  %v5156_v19 = vunpack.i.l.bf16 %v7698_v31  ;;  %v1096_v43 = vrot.slane %v7761_v50, 4 }
 0x17b   :  { %5444 = vrot.lane.b32.xlu1 %v7597_v56, %s5868_s23  ;;  %v5152_v53 = vunpack.i.h.bf16 %v7701_v20  ;;  %v5151_v58 = vunpack.i.l.bf16 %v7701_v20  ;;  %v1098_v36 = vrot.slane %v7744_v1, 4  ;;  %v7958_v1 = vld [vmem:[%s9376_s0 + $0x1e8] sm:$0xff] }
 0x17c   :  { %5439 = vrot.lane.b32.xlu0 %v7601_v16, %s5868_s23  ;;  %4411 = vmatprep.mubr.msk.bf16.mxu0 %vm9388_vm10, %v2266_v54  ;;  %v1831_v20 = vsel %vm9397_vm2, %v5840_v28, %v5156_v19  ;;  %v5841_v54 = vld [vmem:[%s9376_s0 + $0x108] sm:$0xff] }
 0x17d   :  { %4412 = vmatmul.mubr.msk.bf16.gmra.mrb[28].mxu0 %vm9388_vm10, %v2267_v25  ;;  %v7717_v17 = vpop.permute.xlu1 %5164  ;;  %v1829_v63 = vsel %vm9397_vm2, %v5842_v29, %v5151_v58  ;;  %v1099_v34 = vsel %vm9395_vm0, %v1096_v43, %v1098_v36 }
 0x17e   :  { %v7725_v46 = vpop.permute.xlu0 %5159  ;;  %v5167_v5 = vunpack.i.h.bf16 %v7717_v17  ;;  %v5166_v15 = vunpack.i.l.bf16 %v7717_v17  ;;  %v1830_v17 = vsel %vm9397_vm2, %v5841_v54, %v5152_v53 }
 0x17f   :  { %5454 = vrot.lane.b32.xlu1 %v7707_v33, %s5869_s24  ;;  %v5162_v42 = vunpack.i.h.bf16 %v7725_v46  ;;  %v5161_v10 = vunpack.i.l.bf16 %v7725_v46 }
 0x180   :  { %5449 = vrot.lane.b32.xlu0 %v7714_v59, %s5869_s24  ;;  %v1888_v46 = vsel %vm9394_vm3, %v1831_v20, %v5166_v15 }
 0x181   :  { %v7733_v9 = vpop.permute.xlu1 %5174  ;;  %v1887_v35 = vsel %vm9394_vm3, %v1830_v17, %v5162_v42 }
 0x182   :  { %v7739_v27 = vpop.permute.xlu0 %5169  ;;  %v5177_v11 = vunpack.i.h.bf16 %v7733_v9  ;;  %v5176_v8 = vunpack.i.l.bf16 %v7733_v9 }
 0x183   :  { %5464 = vrot.lane.b32.xlu1 %v7515_v2, %s5864_s17  ;;  %v920_v2 = vrot.slane %v7761_v50, 2  ;;  %v5171_v31 = vunpack.i.l.bf16 %v7739_v27  ;;  %v5172_v0 = vunpack.i.h.bf16 %v7739_v27 }
 0x184   :  { %5459 = vrot.lane.b32.xlu0 %v7731_v48, %s5870_s1 }
 0x185   :  { %v7767_v40 = vpop.permute.xlu1 %5184  ;;  %v923_v44 = vsel %vm9396_vm1, %v920_v2, %v922_v32  ;;  %v1886_v32 = vsel %vm9394_vm3, %v1829_v63, %v5161_v10 }
 0x186   :  { %v7772_v24 = vpop.permute.xlu0 %5179  ;;  %v5186_v19 = vunpack.i.l.bf16 %v7767_v40 }
 0x187   :  { %5474 = vrot.lane.b32.xlu1 %v7438_v60, %s5864_s17  ;;  %v921_v60 = vsel %vm9396_vm1, %v296_v61, %v920_v2  ;;  %v7809_v61 = vpack.i.bf16 %v927_v45, %v925_v41  ;;  %v5182_v14 = vunpack.i.h.bf16 %v7772_v24  ;;  %v5181_v47 = vunpack.i.l.bf16 %v7772_v24 }
 0x188   :  { %5469 = vrot.lane.b32.xlu0 %v7765_v3, %s5870_s1  ;;  %v7816_v12 = vpack.i.bf16 %v923_v44, %v921_v60  ;;  %v1945_v41 = vsel %vm9393_vm4, %v1888_v46, %v5176_v8  ;;  %v1944_v44 = vsel %vm9393_vm4, %v1887_v35, %v5172_v0 }
 0x189   :  { %v7779_v23 = vpop.permute.xlu1 %5194 }
 0x18a   :  { %v7786_v57 = vpop.permute.xlu0 %5189 }
 0x18b   :  { %5484 = vrot.lane.b32.xlu1 %v7572_v18, %s5863_s16  ;;  %v5192_v27 = vunpack.i.h.bf16 %v7786_v57  ;;  %v5191_v2 = vunpack.i.l.bf16 %v7786_v57 }
 0x18c   :  { %5479 = vrot.lane.b32.xlu0 %v7545_v37, %s5863_s16  ;;  %v1832_v37 = vsel %vm9397_vm2, %v5839_v26, %v5157_v62  ;;  %v1943_v62 = vsel %vm9393_vm4, %v1886_v32, %v5171_v31  ;;  %v5197_v26 = vunpack.i.h.bf16 %v7779_v23  ;;  %v2002_v32 = vsel %vm9392_vm5, %v1945_v41, %v5186_v19 }
 0x18d   :  { %v7814_v18 = vpop.permute.xlu1 %5204  ;;  %v1889_v9 = vsel %vm9394_vm3, %v1832_v37, %v5167_v5  ;;  %v2000_v57 = vsel %vm9392_vm5, %v1943_v62, %v5181_v47  ;;  %v2001_v5 = vsel %vm9392_vm5, %v1944_v44, %v5182_v14  ;;  %v1097_v41 = vsel %vm9395_vm0, %v578_v4, %v1096_v43 }
 0x18e   :  { %v5200_v25 = vpop.permute.xlu0 %5199  ;;  %v1946_v45 = vsel %vm9393_vm4, %v1889_v9, %v5177_v11  ;;  %v2057_v37 = vsel %vm9391_vm6, %v2000_v57, %v5191_v2  ;;  %v2058_v11 = vsel %vm9391_vm6, %v2001_v5, %v5192_v27  ;;  %v5206_v28 = vunpack.i.l.bf16 %v7814_v18 }
 0x18f   :  { %5494 = vrot.lane.b32.xlu1 %v7597_v56, %s5865_s22  ;;  %v5201_v60 = vunpack.i.l.bf16 %v5200_v25  ;;  %v5202_v53 = vunpack.i.h.bf16 %v5200_v25  ;;  %v5207_v25 = vunpack.i.h.bf16 %v7814_v18  ;;  %v7931_v50 = vpack.i.bf16 %v1099_v34, %v1097_v41 }
 0x190   :  { %5489 = vrot.lane.b32.xlu0 %v7601_v16, %s5865_s22  ;;  %v5187_v16 = vunpack.i.h.bf16 %v7767_v40  ;;  %v5196_v40 = vunpack.i.l.bf16 %v7779_v23 }
 0x191   :  { %v5215_v56 = vpop.permute.xlu1 %5214  ;;  %v2114_v20 = vsel %vm9390_vm7, %v2057_v37, %v5201_v60  ;;  %v2115_v23 = vsel %vm9390_vm7, %v2058_v11, %v5202_v53 }
 0x192   :  { %v5210_v24 = vpop.permute.xlu0 %5209  ;;  %v5217_v9 = vunpack.i.h.bf16 %v5215_v56  ;;  %v5216_v18 = vunpack.i.l.bf16 %v5215_v56  ;;  %v2003_v35 = vsel %vm9392_vm5, %v1946_v45, %v5187_v16  ;;  %v2059_v60 = vsel %vm9391_vm6, %v2002_v32, %v5196_v40 }
 0x193   :  { %v7857_v58 = vpop.f32.mrb[4].mxu0  ;;  %5504 = vrot.lane.b32.xlu1 %v7707_v33, %s5866_s14  ;;  %v5212_v15 = vunpack.i.h.bf16 %v5210_v24  ;;  %v5211_v42 = vunpack.i.l.bf16 %v5210_v24  ;;  %v2060_v56 = vsel %vm9391_vm6, %v2003_v35, %v5197_v26  ;;  %v2116_v45 = vsel %vm9390_vm7, %v2059_v60, %v5206_v28 }
 0x194   :  { %5499 = vrot.lane.b32.xlu0 %v7714_v59, %s5866_s14  ;;  %v7865_v10 = vpop.f32.mrb[5].mxu0  ;;  %v2117_v16 = vsel %vm9390_vm7, %v2060_v56, %v5207_v25  ;;  %v2173_v57 = vsel %vm9389_vm8, %v2116_v45, %v5216_v18  ;;  %v1100_v26 = vrot.slane %v7749_v22, 4  ;;  %v1102_v40 = vrot.slane %v7754_v51, 4 }
 0x195   :  { %v7871_v8 = vpop.f32.mrb[6].mxu0  ;;  %v7873_v31 = vpop.permute.xlu1 %5224  ;;  %v2171_v14 = vsel %vm9389_vm8, %v2114_v20, %v5211_v42  ;;  %v2172_v47 = vsel %vm9389_vm8, %v2115_v23, %v5212_v15  ;;  %v2174_v5 = vsel %vm9389_vm8, %v2117_v16, %v5217_v9  ;;  %v7946_v20 = vld [vmem:[%s9376_s0 + $0x1f0] sm:$0xff]  ;;  %v1444_v18 = vrot.slane %v7958_v1, 2 }
 0x196   :  { %v2831_v54 = vpack.c.bf16 %v7871_v8, %v7857_v58  ;;  %v5220_v17 = vpop.permute.xlu0 %5219  ;;  %v7880_v29 = vpop.f32.mrb[7].mxu0  ;;  %v1101_v22 = vsel %vm9395_vm0, %v1098_v36, %v1100_v26  ;;  %v1103_v25 = vsel %vm9395_vm0, %v1100_v26, %v1102_v40  ;;  %v7963_v36 = vld [vmem:[%s9376_s0 + $0x200] sm:$0xff]  ;;  %v5227_v60 = vunpack.i.h.bf16 %v7873_v31  ;;  %v5859_v58 = vld [vmem:[%s9376_s0 + $0x1a8] sm:$0xff] }
 0x197   :  { %v5222_v63 = vunpack.i.h.bf16 %v5220_v17  ;;  %v5221_v0 = vunpack.i.l.bf16 %v5220_v17  ;;  %v2830_v46 = vpack.c.bf16 %v7880_v29, %v7865_v10  ;;  %5514 = vrot.lane.b32.xlu1 %v7765_v3, %s5867_s19  ;;  %v7951_v17 = vld [vmem:[%s9376_s0 + $0x1f8] sm:$0xff]  ;;  %v7967_v23 = vpack.i.bf16 %v1103_v25, %v1101_v22  ;;  %v5844_v22 = vld [vmem:[%s9376_s0 + $0x120] sm:$0xff] }
 0x198   :  { %5509 = vrot.lane.b32.xlu0 %v7731_v48, %s5867_s19  ;;  %v1624_v32 = vrot.slane %v7951_v17, 4  ;;  %v5603_v35 = vpack.i.bf16 %v7951_v17, %v7946_v20  ;;  %v5226_v41 = vunpack.i.l.bf16 %v7873_v31  ;;  %v1626_v31 = vrot.slane %v7963_v36, 4 }
 0x199   :  { %v2228_v27 = vsel %vm9398_vm9, %v2171_v14, %v5221_v0  ;;  %v2229_v2 = vsel %vm9398_vm9, %v2172_v47, %v5222_v63  ;;  %v7895_v62 = vpop.permute.xlu1 %5234  ;;  %v1448_v0 = vrot.slane %v7951_v17, 2  ;;  %v1450_v14 = vrot.slane %v7963_v36, 2 }
 0x19a   :  { %v5230_v24 = vpop.permute.xlu0 %5229  ;;  %v2268_v44 = vpack.c.bf16 %v2229_v2, %v2228_v27  ;;  %v5598_v27 = vpack.i.bf16 %v7958_v1, %v7754_v51  ;;  %v5237_v45 = vunpack.i.h.bf16 %v7895_v62  ;;  %v5236_v16 = vunpack.i.l.bf16 %v7895_v62 }
 0x19b   :  { %v5232_v19 = vunpack.i.h.bf16 %v5230_v24  ;;  %v5231_v53 = vunpack.i.l.bf16 %v5230_v24  ;;  %5524 = vrot.lane.b32.xlu1 %v7790_v49, %s5868_s23  ;;  %v8000_v24 = vsel %vm9396_vm1, %v926_v55, %v1444_v18  ;;  %v1620_v55 = vrot.slane %v7958_v1, 4  ;;  %v115_v1 = vld [vmem:[%s9378_s3 + $0x8] sm:$0xff] }
 0x19c   :  { %5519 = vrot.lane.b32.xlu0 %v7803_v39, %s5868_s23  ;;  %4415 = vmatprep.mubr.msk.bf16.mxu0 %vm9388_vm10, %v2268_v44  ;;  %v1833_v25 = vsel %vm9397_vm2, %v5844_v22, %v5226_v41 }
 0x19d   :  { %v2231_v4 = vsel %vm9398_vm9, %v2174_v5, %v5232_v19  ;;  %v2230_v15 = vsel %vm9398_vm9, %v2173_v57, %v5231_v53  ;;  %v7920_v42 = vpop.permute.xlu1 %5244  ;;  %v1622_v19 = vrot.slane %v7946_v20, 4 }
 0x19e   :  { %v7924_v37 = vpop.permute.xlu0 %5239  ;;  %v2269_v11 = vpack.c.bf16 %v2231_v4, %v2230_v15  ;;  %v5247_v53 = vunpack.i.h.bf16 %v7920_v42  ;;  %v5246_v57 = vunpack.i.l.bf16 %v7920_v42 }
 0x19f   :  { %5534 = vrot.lane.b32.xlu1 %v7809_v61, %s5869_s24  ;;  %v5242_v5 = vunpack.i.h.bf16 %v7924_v37  ;;  %v5241_v62 = vunpack.i.l.bf16 %v7924_v37  ;;  %v1623_v36 = vsel %vm9395_vm0, %v1620_v55, %v1622_v19 }
 0x1a0   :  { %5529 = vrot.lane.b32.xlu0 %v7816_v12, %s5869_s24  ;;  %4416 = vmatmul.mubr.msk.bf16.gmra.mrb[32].mxu0 %vm9388_vm10, %v2269_v11 }
 0x1a1   :  { %v7933_v43 = vpop.permute.xlu1 %5254 }
 0x1a2   :  { %v7941_v28 = vpop.permute.xlu0 %5249  ;;  %v5257_v42 = vunpack.i.h.bf16 %v7933_v43  ;;  %v5256_v26 = vunpack.i.l.bf16 %v7933_v43 }
 0x1a3   :  { %5544 = vrot.lane.b32.xlu1 %v7714_v59, %s5864_s17  ;;  %v1446_v59 = vrot.slane %v7946_v20, 2  ;;  %v5251_v37 = vunpack.i.l.bf16 %v7941_v28 }
 0x1a4   :  { %5539 = vrot.lane.b32.xlu0 %v7931_v50, %s5870_s1 }
 0x1a5   :  { %v7969_v63 = vpop.permute.xlu1 %5264  ;;  %v7989_v2 = vsel %vm9396_vm1, %v1446_v59, %v1448_v0  ;;  %v8003_v44 = vsel %vm9396_vm1, %v1444_v18, %v1446_v59  ;;  %v5846_v18 = vld [vmem:[%s9376_s0 + $0x130] sm:$0xff] }
 0x1a6   :  { %v7973_v9 = vpop.permute.xlu0 %5259  ;;  %v5608_v4 = vpack.i.bf16 %v8003_v44, %v8000_v24  ;;  %v1835_v43 = vsel %vm9397_vm2, %v5846_v18, %v5236_v16  ;;  %v1890_v16 = vsel %vm9394_vm3, %v1833_v25, %v5241_v62  ;;  %v116_v44 = vld [vmem:[%s9378_s3 + $0x10] sm:$0xff] }
 0x1a7   :  { %5554 = vrot.lane.b32.xlu1 %v7707_v33, %s5864_s17  ;;  %v7995_v33 = vsel %vm9396_vm1, %v1448_v0, %v1450_v14  ;;  %v5845_v0 = vld [vmem:[%s9376_s0 + $0x138] sm:$0xff]  ;;  %v5252_v14 = vunpack.i.h.bf16 %v7941_v28  ;;  %v5261_v22 = vunpack.i.l.bf16 %v7973_v9 }
 0x1a8   :  { %5549 = vrot.lane.b32.xlu0 %v7967_v23, %s5870_s1  ;;  %v1836_v59 = vsel %vm9397_vm2, %v5845_v0, %v5237_v45 }
 0x1a9   :  { %v7981_v47 = vpop.permute.xlu1 %5274  ;;  %v1893_v41 = vsel %vm9394_vm3, %v1836_v59, %v5247_v53  ;;  %v1947_v59 = vsel %vm9393_vm4, %v1890_v16, %v5251_v37 }
 0x1aa   :  { %v7992_v56 = vpop.permute.xlu0 %5269  ;;  %v1950_v53 = vsel %vm9393_vm4, %v1893_v41, %v5257_v42 }
 0x1ab   :  { %5564 = vrot.lane.b32.xlu1 %v7765_v3, %s5863_s16  ;;  %v5613_v3 = vpack.i.bf16 %v7995_v33, %v7989_v2  ;;  %v5272_v28 = vunpack.i.h.bf16 %v7992_v56  ;;  %v5271_v0 = vunpack.i.l.bf16 %v7992_v56  ;;  %v2004_v56 = vsel %vm9392_vm5, %v1947_v59, %v5261_v22  ;;  %v114_v33 = vld [vmem:[%s9378_s3] sm:$0xff] }
 0x1ac   :  { %5559 = vrot.lane.b32.xlu0 %v7731_v48, %s5863_s16  ;;  %v5843_v48 = vld [vmem:[%s9376_s0 + $0x128] sm:$0xff] }
 0x1ad   :  { %v8019_v34 = vpop.permute.xlu1 %5284  ;;  %v1834_v15 = vsel %vm9397_vm2, %v5843_v48, %v5227_v60  ;;  %v1892_v60 = vsel %vm9394_vm3, %v1835_v43, %v5246_v57  ;;  %v5262_v48 = vunpack.i.h.bf16 %v7973_v9 }
 0x1ae   :  { %v5280_v11 = vpop.permute.xlu0 %5279  ;;  %v1891_v45 = vsel %vm9394_vm3, %v1834_v15, %v5242_v5  ;;  %v1949_v57 = vsel %vm9393_vm4, %v1892_v60, %v5256_v26  ;;  %v5266_v5 = vunpack.i.l.bf16 %v7969_v63  ;;  %v5286_v22 = vunpack.i.l.bf16 %v8019_v34 }
 0x1af   :  { %5574 = vrot.lane.b32.xlu1 %v7790_v49, %s5865_s22  ;;  %v5281_v18 = vunpack.i.l.bf16 %v5280_v11  ;;  %v1948_v43 = vsel %vm9393_vm4, %v1891_v45, %v5252_v14  ;;  %v5282_v62 = vunpack.i.h.bf16 %v5280_v11  ;;  %v5277_v14 = vunpack.i.h.bf16 %v7981_v47 }
 0x1b0   :  { %5569 = vrot.lane.b32.xlu0 %v7803_v39, %s5865_s22  ;;  %v5267_v39 = vunpack.i.h.bf16 %v7969_v63  ;;  %v2005_v42 = vsel %vm9392_vm5, %v1948_v43, %v5262_v48  ;;  %v5276_v63 = vunpack.i.l.bf16 %v7981_v47  ;;  %v2061_v11 = vsel %vm9391_vm6, %v2004_v56, %v5271_v0 }
 0x1b1   :  { %v5295_v49 = vpop.permute.xlu1 %5294  ;;  %v2062_v60 = vsel %vm9391_vm6, %v2005_v42, %v5272_v28  ;;  %v5287_v48 = vunpack.i.h.bf16 %v8019_v34  ;;  %v2006_v42 = vsel %vm9392_vm5, %v1949_v57, %v5266_v5 }
 0x1b2   :  { %v5290_v9 = vpop.permute.xlu0 %5289  ;;  %v2119_v47 = vsel %vm9390_vm7, %v2062_v60, %v5282_v62  ;;  %v5297_v43 = vunpack.i.h.bf16 %v5295_v49  ;;  %v5296_v34 = vunpack.i.l.bf16 %v5295_v49  ;;  %v2007_v62 = vsel %vm9392_vm5, %v1950_v53, %v5267_v39 }
 0x1b3   :  { %v8063_v15 = vpop.f32.mrb[8].mxu0  ;;  %5584 = vrot.lane.b32.xlu1 %v7809_v61, %s5866_s14  ;;  %v5292_v26 = vunpack.i.h.bf16 %v5290_v9  ;;  %v5291_v37 = vunpack.i.l.bf16 %v5290_v9  ;;  %v2064_v49 = vsel %vm9391_vm6, %v2007_v62, %v5277_v14 }
 0x1b4   :  { %5579 = vrot.lane.b32.xlu0 %v7816_v12, %s5866_s14  ;;  %v8071_v25 = vpop.f32.mrb[9].mxu0  ;;  %v2118_v12 = vsel %vm9390_vm7, %v2061_v11, %v5281_v18  ;;  %v2121_v53 = vsel %vm9390_vm7, %v2064_v49, %v5287_v48 }
 0x1b5   :  { %v8077_v61 = vpop.f32.mrb[10].mxu0  ;;  %v8079_v41 = vpop.permute.xlu1 %5304  ;;  %v2175_v18 = vsel %vm9389_vm8, %v2118_v12, %v5291_v37  ;;  %v2176_v56 = vsel %vm9389_vm8, %v2119_v47, %v5292_v26  ;;  %v2178_v14 = vsel %vm9389_vm8, %v2121_v53, %v5297_v43  ;;  %v1621_v47 = vsel %vm9395_vm0, %v1102_v40, %v1620_v55  ;;  %v117_v55 = vld [vmem:[%s9378_s3 + $0x18] sm:$0xff] }
 0x1b6   :  { %v2833_v45 = vpack.c.bf16 %v8077_v61, %v8063_v15  ;;  %v5300_v16 = vpop.permute.xlu0 %5299  ;;  %v8086_v59 = vpop.f32.mrb[11].mxu0  ;;  %v5618_v51 = vpack.i.bf16 %v1623_v36, %v1621_v47 }
 0x1b7   :  { %v5302_v0 = vunpack.i.h.bf16 %v5300_v16  ;;  %v5301_v28 = vunpack.i.l.bf16 %v5300_v16  ;;  %v2832_v9 = vpack.c.bf16 %v8086_v59, %v8071_v25  ;;  %5594 = vrot.lane.b32.xlu1 %v7967_v23, %s5867_s19  ;;  %v2063_v23 = vsel %vm9391_vm6, %v2006_v42, %v5276_v63 }
 0x1b8   :  { %5589 = vrot.lane.b32.xlu0 %v7931_v50, %s5867_s19  ;;  %v1625_v50 = vsel %vm9395_vm0, %v1622_v19, %v1624_v32  ;;  %v2120_v57 = vsel %vm9390_vm7, %v2063_v23, %v5286_v22  ;;  %v1627_v63 = vsel %vm9395_vm0, %v1624_v32, %v1626_v31  ;;  %v5307_v31 = vunpack.i.h.bf16 %v8079_v41 }
 0x1b9   :  { %v2232_v11 = vsel %vm9398_vm9, %v2175_v18, %v5301_v28  ;;  %v2233_v60 = vsel %vm9398_vm9, %v2176_v56, %v5302_v0  ;;  %v8101_v16 = vpop.permute.xlu1 %5314  ;;  %v2177_v26 = vsel %vm9389_vm8, %v2120_v57, %v5296_v34  ;;  %v5623_v32 = vpack.i.bf16 %v1627_v63, %v1625_v50  ;;  %v118_v18 = vld [vmem:[%s9378_s3 + $0x20] sm:$0xff]  ;;  %v5849_v57 = vld [vmem:[%s9376_s0 + $0x158] sm:$0xff] }
 0x1ba   :  { %v5310_v37 = vpop.permute.xlu0 %5309  ;;  %v2270_v12 = vpack.c.bf16 %v2233_v60, %v2232_v11  ;;  %v5317_v0 = vunpack.i.h.bf16 %v8101_v16  ;;  %v5316_v28 = vunpack.i.l.bf16 %v8101_v16  ;;  %v5847_v11 = vld [vmem:[%s9376_s0 + $0x148] sm:$0xff] }
 0x1bb   :  { %v5312_v39 = vunpack.i.h.bf16 %v5310_v37  ;;  %v5311_v5 = vunpack.i.l.bf16 %v5310_v37  ;;  %5604 = vrot.lane.b32.xlu1 %v5603_v35, %s5868_s23  ;;  %v1838_v60 = vsel %vm9397_vm2, %v5847_v11, %v5307_v31 }
 0x1bc   :  { %5599 = vrot.lane.b32.xlu0 %v5598_v27, %s5868_s23  ;;  %4419 = vmatprep.mubr.msk.bf16.mxu0 %vm9388_vm10, %v2270_v12  ;;  %v5848_v12 = vld [vmem:[%s9376_s0 + $0x140] sm:$0xff]  ;;  %v1840_v53 = vsel %vm9397_vm2, %v5849_v57, %v5317_v0 }
 0x1bd   :  { %v2235_v48 = vsel %vm9398_vm9, %v2178_v14, %v5312_v39  ;;  %v2234_v35 = vsel %vm9398_vm9, %v2177_v26, %v5311_v5  ;;  %v5325_v22 = vpop.permute.xlu1 %5324  ;;  %v5850_v39 = vld [vmem:[%s9376_s0 + $0x150] sm:$0xff] }
 0x1be   :  { %v5320_v17 = vpop.permute.xlu0 %5319  ;;  %v2271_v27 = vpack.c.bf16 %v2235_v48, %v2234_v35  ;;  %v5327_v43 = vunpack.i.h.bf16 %v5325_v22  ;;  %v5326_v34 = vunpack.i.l.bf16 %v5325_v22  ;;  %v1839_v5 = vsel %vm9397_vm2, %v5850_v39, %v5316_v28  ;;  %v120_v22 = vld [vmem:[%s9378_s3 + $0x30] sm:$0xff] }
 0x1bf   :  { %5614 = vrot.lane.b32.xlu1 %v5613_v3, %s5869_s24  ;;  %v5322_v56 = vunpack.i.h.bf16 %v5320_v17  ;;  %v5321_v42 = vunpack.i.l.bf16 %v5320_v17 }
 0x1c0   :  { %5609 = vrot.lane.b32.xlu0 %v5608_v4, %s5869_s24  ;;  %4420 = vmatmul.mubr.msk.bf16.gmra.mrb[36].mxu0 %vm9388_vm10, %v2271_v27  ;;  %v5306_v4 = vunpack.i.l.bf16 %v8079_v41  ;;  %v119_v41 = vld [vmem:[%s9378_s3 + $0x28] sm:$0xff]  ;;  %v1896_v14 = vsel %vm9394_vm3, %v1839_v5, %v5326_v34  ;;  %v1897_v63 = vsel %vm9394_vm3, %v1840_v53, %v5327_v43 }
 0x1c1   :  { %v5335_v40 = vpop.permute.xlu1 %5334  ;;  %v1895_v47 = vsel %vm9394_vm3, %v1838_v60, %v5322_v56  ;;  %v122_v56 = vld [vmem:[%s9378_s3 + $0x40] sm:$0xff] }
 0x1c2   :  { %v5330_v20 = vpop.permute.xlu0 %5329  ;;  %v5337_v16 = vunpack.i.h.bf16 %v5335_v40  ;;  %v5336_v23 = vunpack.i.l.bf16 %v5335_v40  ;;  %v1837_v50 = vsel %vm9397_vm2, %v5848_v12, %v5306_v4 }
 0x1c3   :  { %5624 = vrot.lane.b32.xlu1 %v5623_v32, %s5870_s1  ;;  %v5331_v49 = vunpack.i.l.bf16 %v5330_v20  ;;  %v5332_v26 = vunpack.i.h.bf16 %v5330_v20  ;;  %v1894_v36 = vsel %vm9394_vm3, %v1837_v50, %v5321_v42 }
 0x1c4   :  { %5619 = vrot.lane.b32.xlu0 %v5618_v51, %s5870_s1  ;;  %v121_v51 = vld [vmem:[%s9378_s3 + $0x38] sm:$0xff]  ;;  %v1953_v40 = vsel %vm9393_vm4, %v1896_v14, %v5336_v23  ;;  %v1954_v20 = vsel %vm9393_vm4, %v1897_v63, %v5337_v16  ;;  %v123_v23 = vld [vmem:[%s9378_s3 + $0x48] sm:$0xff] }
 0x1c5   :  { %v8154_v2 = vpop.permute.xlu1 %5344 }
 0x1c6   :  { %v5340_v24 = vpop.permute.xlu0 %5339  ;;  %v5346_v31 = vunpack.i.l.bf16 %v8154_v2 }
 0x1c7   :  { %2661 = vperm.xlu1 %5629, %v115_v1   ;;  %v5342_v48 = vunpack.i.h.bf16 %v5340_v24  ;;  %v5341_v35 = vunpack.i.l.bf16 %v5340_v24  ;;  %v1951_v1 = vsel %vm9393_vm4, %v1894_v36, %v5331_v49 }
 0x1c8   :  { %2658 = vperm.xlu0 %5628, %v114_v33  }
 0x1c9   :  { %v8162_v19 = vpop.permute.xlu1 %5354  ;;  %v2008_v0 = vsel %vm9392_vm5, %v1951_v1, %v5341_v35  ;;  %v124_v35 = vld [vmem:[%s9378_s3 + $0x50] sm:$0xff] }
 0x1ca   :  { %v5350_v3 = vpop.permute.xlu0 %5349  ;;  %v5357_v42 = vunpack.i.h.bf16 %v8162_v19 }
 0x1cb   :  { %2664 = vperm.xlu1 %5629, %v116_v44   ;;  %v5352_v17 = vunpack.i.h.bf16 %v5350_v3  ;;  %v5351_v27 = vunpack.i.l.bf16 %v5350_v3  ;;  %v1952_v44 = vsel %vm9393_vm4, %v1895_v47, %v5332_v26 }
 0x1cc   :  { %2667 = vperm.xlu0 %5628, %v117_v55   ;;  %v5347_v55 = vunpack.i.h.bf16 %v8154_v2  ;;  %v2009_v28 = vsel %vm9392_vm5, %v1952_v44, %v5342_v48  ;;  %v5356_v2 = vunpack.i.l.bf16 %v8162_v19 }
 0x1cd   :  { %v8174_v62 = vpop.permute.xlu1 %5364  ;;  %v2066_v11 = vsel %vm9391_vm6, %v2009_v28, %v5352_v17 }
 0x1ce   :  { %v5360_v37 = vpop.permute.xlu0 %5359  ;;  %v5367_v49 = vunpack.i.h.bf16 %v8174_v62  ;;  %v2011_v47 = vsel %vm9392_vm5, %v1954_v20, %v5347_v55 }
 0x1cf   :  { %2670 = vperm.xlu1 %5629, %v118_v18   ;;  %v5361_v33 = vunpack.i.l.bf16 %v5360_v37  ;;  %v5362_v3 = vunpack.i.h.bf16 %v5360_v37  ;;  %v5366_v37 = vunpack.i.l.bf16 %v8174_v62  ;;  %v2068_v1 = vsel %vm9391_vm6, %v2011_v47, %v5357_v42 }
 0x1d0   :  { %2673 = vperm.xlu0 %5628, %v119_v41   ;;  %v2065_v41 = vsel %vm9391_vm6, %v2008_v0, %v5351_v27  ;;  %v126_v0 = vld [vmem:[%s9378_s3 + $0x60] sm:$0xff] }
 0x1d1   :  { %v5375_v32 = vpop.permute.xlu1 %5374  ;;  %v2122_v12 = vsel %vm9390_vm7, %v2065_v41, %v5361_v33  ;;  %v2123_v53 = vsel %vm9390_vm7, %v2066_v11, %v5362_v3 }
 0x1d2   :  { %v5370_v24 = vpop.permute.xlu0 %5369  ;;  %v5377_v14 = vunpack.i.h.bf16 %v5375_v32  ;;  %v5376_v63 = vunpack.i.l.bf16 %v5375_v32  ;;  %v125_v32 = vld [vmem:[%s9378_s3 + $0x58] sm:$0xff] }
 0x1d3   :  { %v8211_v4 = vpop.f32.mrb[12].mxu0  ;;  %2676 = vperm.xlu1 %5629, %v120_v22   ;;  %v5372_v43 = vunpack.i.h.bf16 %v5370_v24  ;;  %v5371_v34 = vunpack.i.l.bf16 %v5370_v24  ;;  %v2010_v22 = vsel %vm9392_vm5, %v1953_v40, %v5346_v31  ;;  %v2125_v40 = vsel %vm9390_vm7, %v2068_v1, %v5367_v49  ;;  %v5853_v1 = vld [vmem:[%s9376_s0 + $0x178] sm:$0xff] }
 0x1d4   :  { %v8215_v18 = vpop.f32.mrb[13].mxu0  ;;  %2679 = vperm.xlu0 %5628, %v121_v51   ;;  %v2067_v51 = vsel %vm9391_vm6, %v2010_v22, %v5356_v2  ;;  %v2182_v3 = vsel %vm9389_vm8, %v2125_v40, %v5377_v14  ;;  %v5851_v22 = vld [vmem:[%s9376_s0 + $0x168] sm:$0xff] }
 0x1d5   :  { %v8224_v60 = vpop.f32.mrb[14].mxu0  ;;  %v8226_v16 = vpop.permute.xlu1 %5384  ;;  %v2179_v62 = vsel %vm9389_vm8, %v2122_v12, %v5371_v34  ;;  %v2180_v48 = vsel %vm9389_vm8, %v2123_v53, %v5372_v43  ;;  %v2124_v44 = vsel %vm9390_vm7, %v2067_v51, %v5366_v37 }
 0x1d6   :  { %v2835_v19 = vpack.c.bf16 %v8224_v60, %v8211_v4  ;;  %v5380_v50 = vpop.permute.xlu0 %5379  ;;  %v8236_v57 = vpop.f32.mrb[15].mxu0  ;;  %v2181_v31 = vsel %vm9389_vm8, %v2124_v44, %v5376_v63  ;;  %v5387_v37 = vunpack.i.h.bf16 %v8226_v16 }
 0x1d7   :  { %v5382_v39 = vunpack.i.h.bf16 %v5380_v50  ;;  %v5381_v5 = vunpack.i.l.bf16 %v5380_v50  ;;  %v2834_v26 = vpack.c.bf16 %v8236_v57, %v8215_v18  ;;  %2682 = vperm.xlu1 %5629, %v122_v56   ;;  %v5386_v50 = vunpack.i.l.bf16 %v8226_v16  ;;  %v5852_v16 = vld [vmem:[%s9376_s0 + $0x160] sm:$0xff] }
 0x1d8   :  { %2685 = vperm.xlu0 %5628, %v123_v23   ;;  %v1842_v47 = vsel %vm9397_vm2, %v5851_v22, %v5387_v37 }
 0x1d9   :  { %v2236_v36 = vsel %vm9398_vm9, %v2179_v62, %v5381_v5  ;;  %v2237_v17 = vsel %vm9398_vm9, %v2180_v48, %v5382_v39  ;;  %v5395_v27 = vpop.permute.xlu1 %5394 }
 0x1da   :  { %v5390_v33 = vpop.permute.xlu0 %5389  ;;  %v2272_v24 = vpack.c.bf16 %v2237_v17, %v2236_v36  ;;  %v5397_v53 = vunpack.i.h.bf16 %v5395_v27  ;;  %v5396_v39 = vunpack.i.l.bf16 %v5395_v27  ;;  %v1841_v27 = vsel %vm9397_vm2, %v5852_v16, %v5386_v50 }
 0x1db   :  { %v5392_v20 = vunpack.i.h.bf16 %v5390_v33  ;;  %v5391_v55 = vunpack.i.l.bf16 %v5390_v33  ;;  %2688 = vperm.xlu1 %5629, %v124_v35  }
 0x1dc   :  { %4423 = vmatprep.mubr.msk.bf16.mxu0 %vm9388_vm10, %v2272_v24  ;;  %2691 = vperm.xlu0 %5628, %v125_v32   ;;  %v1844_v33 = vsel %vm9397_vm2, %v5853_v1, %v5397_v53  ;;  %v5854_v24 = vld [vmem:[%s9376_s0 + $0x170] sm:$0xff] }
 0x1dd   :  { %v2239_v28 = vsel %vm9398_vm9, %v2182_v3, %v5392_v20  ;;  %v2238_v43 = vsel %vm9398_vm9, %v2181_v31, %v5391_v55  ;;  %v5405_v34 = vpop.permute.xlu1 %5404  ;;  %v1843_v44 = vsel %vm9397_vm2, %v5854_v24, %v5396_v39 }
 0x1de   :  { %v5400_v56 = vpop.permute.xlu0 %5399  ;;  %v2273_v42 = vpack.c.bf16 %v2239_v28, %v2238_v43  ;;  %v5407_v5 = vunpack.i.h.bf16 %v5405_v34  ;;  %v5406_v14 = vunpack.i.l.bf16 %v5405_v34 }
 0x1df   :  { %2694 = vperm.xlu1 %5629, %v126_v0   ;;  %v5402_v63 = vunpack.i.h.bf16 %v5400_v56  ;;  %v5401_v62 = vunpack.i.l.bf16 %v5400_v56 }
 0x1e0   :  { %4424 = vmatmul.mubr.msk.bf16.gmra.mrb[40].mxu0 %vm9388_vm10, %v2273_v42  ;;  %v1900_v20 = vsel %vm9394_vm3, %v1843_v44, %v5406_v14  ;;  %v1901_v55 = vsel %vm9394_vm3, %v1844_v33, %v5407_v5  ;;  %v5872_v44 = vmov 0.0  }
 0x1e1   :  { %v5415_v2 = vpop.permute.xlu1 %5414  ;;  %v1899_v31 = vsel %vm9394_vm3, %v1842_v47, %v5402_v63  ;;  %v1898_v0 = vsel %vm9394_vm3, %v1841_v27, %v5401_v62  ;;  %4439 = vmatprep.subr.bf16.mxu0 %v5872_v44 }
 0x1e2   :  { %v5410_v41 = vpop.permute.xlu0 %5409  ;;  %v5416_v48 = vunpack.i.l.bf16 %v5415_v2  ;;  %v5417_v36 = vunpack.i.h.bf16 %v5415_v2 }
 0x1e3   :  { %v5412_v17 = vunpack.i.h.bf16 %v5410_v41  ;;  %v5411_v32 = vunpack.i.l.bf16 %v5410_v41 }
 0x1e4   :  { %v1957_v28 = vsel %vm9393_vm4, %v1900_v20, %v5416_v48  ;;  %v1958_v42 = vsel %vm9393_vm4, %v1901_v55, %v5417_v36 }
 0x1e5   :  { %v8266_v11 = vpop.permute.xlu1 %5424  ;;  %v1955_v2 = vsel %vm9393_vm4, %v1898_v0, %v5411_v32  ;;  %v1956_v41 = vsel %vm9393_vm4, %v1899_v31, %v5412_v17 }
 0x1e6   :  { %v5420_v23 = vpop.permute.xlu0 %5419  ;;  %v5427_v53 = vunpack.i.h.bf16 %v8266_v11  ;;  %v5426_v39 = vunpack.i.l.bf16 %v8266_v11 }
 0x1e7   :  { %v5421_v40 = vunpack.i.l.bf16 %v5420_v23  ;;  %v5422_v3 = vunpack.i.h.bf16 %v5420_v23 }
 0x1e9   :  { %v8268_v49 = vpop.permute.xlu1 %5434  ;;  %v2012_v23 = vsel %vm9392_vm5, %v1955_v2, %v5421_v40  ;;  %v2013_v63 = vsel %vm9392_vm5, %v1956_v41, %v5422_v3 }
 0x1ea   :  { %v5430_v12 = vpop.permute.xlu0 %5429  ;;  %v5436_v47 = vunpack.i.l.bf16 %v8268_v49 }
 0x1eb   :  { %v5432_v43 = vunpack.i.h.bf16 %v5430_v12  ;;  %v5431_v34 = vunpack.i.l.bf16 %v5430_v12  ;;  %v5437_v12 = vunpack.i.h.bf16 %v8268_v49 }
 0x1ed   :  { %v8272_v35 = vpop.permute.xlu1 %5444  ;;  %v2069_v36 = vsel %vm9391_vm6, %v2012_v23, %v5431_v34  ;;  %v2070_v17 = vsel %vm9391_vm6, %v2013_v63, %v5432_v43  ;;  %v2015_v34 = vsel %vm9392_vm5, %v1958_v42, %v5427_v53 }
 0x1ee   :  { %v5440_v51 = vpop.permute.xlu0 %5439  ;;  %v5447_v11 = vunpack.i.h.bf16 %v8272_v35  ;;  %v2072_v23 = vsel %vm9391_vm6, %v2015_v34, %v5437_v12  ;;  %v5858_v34 = vld [vmem:[%s9376_s0 + $0x190] sm:$0xff] }
 0x1ef   :  { %v5441_v37 = vunpack.i.l.bf16 %v5440_v51  ;;  %v5442_v5 = vunpack.i.h.bf16 %v5440_v51  ;;  %v5446_v51 = vunpack.i.l.bf16 %v8272_v35  ;;  %v2014_v35 = vsel %vm9392_vm5, %v1957_v28, %v5426_v39 }
 0x1f0   :  { %v2129_v42 = vsel %vm9390_vm7, %v2072_v23, %v5447_v11 }
 0x1f1   :  { %v5455_v56 = vpop.permute.xlu1 %5454  ;;  %v2126_v27 = vsel %vm9390_vm7, %v2069_v36, %v5441_v37  ;;  %v2127_v49 = vsel %vm9390_vm7, %v2070_v17, %v5442_v5 }
 0x1f2   :  { %v5450_v50 = vpop.permute.xlu0 %5449  ;;  %v5457_v31 = vunpack.i.h.bf16 %v5455_v56  ;;  %v5456_v3 = vunpack.i.l.bf16 %v5455_v56 }
 0x1f3   :  { %v4401_v14 = vpop.f32.mrb[16].mxu0  ;;  %v5452_v62 = vunpack.i.h.bf16 %v5450_v50  ;;  %v5451_v48 = vunpack.i.l.bf16 %v5450_v50  ;;  %v2071_v50 = vsel %vm9391_vm6, %v2014_v35, %v5436_v47 }
 0x1f4   :  { %v2493_v22 = vpop.f32.mrb[17].mxu0  ;;  %v2128_v28 = vsel %vm9390_vm7, %v2071_v50, %v5446_v51  ;;  %v2186_v63 = vsel %vm9389_vm8, %v2129_v42, %v5457_v31 }
 0x1f5   :  { %v4402_v32 = vpop.f32.mrb[18].mxu0  ;;  %v8306_v16 = vpop.permute.xlu1 %5464  ;;  %v2183_v0 = vsel %vm9389_vm8, %v2126_v27, %v5451_v48  ;;  %v2184_v43 = vsel %vm9389_vm8, %v2127_v49, %v5452_v62  ;;  %v5855_v49 = vld [vmem:[%s9376_s0 + $0x188] sm:$0xff] }
 0x1f6   :  { %v2837_v1 = vpack.c.bf16 %v4402_v32, %v4401_v14  ;;  %v5460_v33 = vpop.permute.xlu0 %5459  ;;  %v2496_v24 = vpop.f32.mrb[19].mxu0  ;;  %v2185_v14 = vsel %vm9389_vm8, %v2128_v28, %v5456_v3  ;;  %v5467_v32 = vunpack.i.h.bf16 %v8306_v16  ;;  %v5466_v51 = vunpack.i.l.bf16 %v8306_v16  ;;  %v5856_v16 = vld [vmem:[%s9376_s0 + $0x180] sm:$0xff] }
 0x1f7   :  { %v5462_v40 = vunpack.i.h.bf16 %v5460_v33  ;;  %v5461_v20 = vunpack.i.l.bf16 %v5460_v33  ;;  %v2836_v55 = vpack.c.bf16 %v2496_v24, %v2493_v22 }
 0x1f9   :  { %v2240_v2 = vsel %vm9398_vm9, %v2183_v0, %v5461_v20  ;;  %v2241_v41 = vsel %vm9398_vm9, %v2184_v43, %v5462_v40  ;;  %4295 = vmatprep.subr.bf16.mxu1 %v2836_v55  ;;  %v5475_v37 = vpop.permute.xlu1 %5474  ;;  %v1846_v40 = vsel %vm9397_vm2, %v5855_v49, %v5467_v32  ;;  %v1845_v0 = vsel %vm9397_vm2, %v5856_v16, %v5466_v51  ;;  %v5857_v43 = vld [vmem:[%s9376_s0 + $0x198] sm:$0xff] }
 0x1fa   :  { %v2274_v5 = vpack.c.bf16 %v2241_v41, %v2240_v2  ;;  %v5470_v56 = vpop.permute.xlu0 %5469  ;;  %4296 = vmatpush3.bf16.msra.mxu1 %v2828_v21  ;;  %v5477_v27 = vunpack.i.h.bf16 %v5475_v37 }
 0x1fb   :  { %v5472_v53 = vunpack.i.h.bf16 %v5470_v56  ;;  %v5471_v39 = vunpack.i.l.bf16 %v5470_v56  ;;  %4297 = vmatprep.subr.bf16.mxu1 %v2837_v1  ;;  %v5476_v1 = vunpack.i.l.bf16 %v5475_v37 }
 0x1fc   :  { %4427 = vmatprep.mubr.msk.bf16.mxu0 %vm9388_vm10, %v2274_v5  ;;  %v1848_v35 = vsel %vm9397_vm2, %v5857_v43, %v5477_v27 }
 0x1fd   :  { %v2243_v12 = vsel %vm9398_vm9, %v2186_v63, %v5472_v53  ;;  %v2242_v62 = vsel %vm9398_vm9, %v2185_v14, %v5471_v39  ;;  %v5485_v48 = vpop.permute.xlu1 %5484  ;;  %v1847_v2 = vsel %vm9397_vm2, %v5858_v34, %v5476_v1 }
 0x1fe   :  { %v2275_v30 = vpack.c.bf16 %v2243_v12, %v2242_v62  ;;  %v5480_v38 = vpop.permute.xlu0 %5479  ;;  %4298 = vmatpush3.bf16.msra.mxu1 %v2829_v52  ;;  %v5487_v33 = vunpack.i.h.bf16 %v5485_v48  ;;  %v5486_v24 = vunpack.i.l.bf16 %v5485_v48 }
 0x1ff   :  { %v5482_v6 = vunpack.i.h.bf16 %v5480_v38  ;;  %v5481_v13 = vunpack.i.l.bf16 %v5480_v38 }
 0x200   :  { %4428 = vmatmul.mubr.msk.bf16.gmra.mrb[44].mxu0 %vm9388_vm10, %v2275_v30  ;;  %v1904_v37 = vsel %vm9394_vm3, %v1847_v2, %v5486_v24  ;;  %v1905_v50 = vsel %vm9394_vm3, %v1848_v35, %v5487_v33 }
 0x201   :  { %v5495_v21 = vpop.permute.xlu1 %5494  ;;  %v1903_v56 = vsel %vm9394_vm3, %v1846_v40, %v5482_v6  ;;  %v1902_v28 = vsel %vm9394_vm3, %v1845_v0, %v5481_v13 }
 0x202   :  { %v5490_v22 = vpop.permute.xlu0 %5489  ;;  %v5497_v20 = vunpack.i.h.bf16 %v5495_v21  ;;  %v5496_v55 = vunpack.i.l.bf16 %v5495_v21 }
 0x203   :  { %v5491_v31 = vunpack.i.l.bf16 %v5490_v22  ;;  %v5492_v41 = vunpack.i.h.bf16 %v5490_v22 }
 0x204   :  { %v1961_v14 = vsel %vm9393_vm4, %v1904_v37, %v5496_v55  ;;  %v1962_v63 = vsel %vm9393_vm4, %v1905_v50, %v5497_v20 }
 0x205   :  { %v8335_v47 = vpop.permute.xlu1 %5504  ;;  %v1959_v12 = vsel %vm9393_vm4, %v1902_v28, %v5491_v31  ;;  %v1960_v30 = vsel %vm9393_vm4, %v1903_v56, %v5492_v41 }
 0x206   :  { %v5500_v36 = vpop.permute.xlu0 %5499  ;;  %v5507_v38 = vunpack.i.h.bf16 %v8335_v47  ;;  %v5506_v21 = vunpack.i.l.bf16 %v8335_v47 }
 0x207   :  { %v5502_v23 = vunpack.i.h.bf16 %v5500_v36  ;;  %v5501_v5 = vunpack.i.l.bf16 %v5500_v36 }
 0x208   :  { %v2018_v50 = vsel %vm9392_vm5, %v1961_v14, %v5506_v21 }
 0x209   :  { %v8337_v17 = vpop.permute.xlu1 %5514  ;;  %v2016_v32 = vsel %vm9392_vm5, %v1959_v12, %v5501_v5 }
 0x20a   :  { %v5510_v11 = vpop.permute.xlu0 %5509  ;;  %v5517_v33 = vunpack.i.h.bf16 %v8337_v17  ;;  %v5516_v24 = vunpack.i.l.bf16 %v8337_v17 }
 0x20b   :  { %v5512_v42 = vunpack.i.h.bf16 %v5510_v11  ;;  %v5511_v53 = vunpack.i.l.bf16 %v5510_v11  ;;  %v2017_v11 = vsel %vm9392_vm5, %v1960_v30, %v5502_v23 }
 0x20c   :  { %v2075_v28 = vsel %vm9391_vm6, %v2018_v50, %v5516_v24 }
 0x20d   :  { %v8341_v52 = vpop.permute.xlu1 %5524  ;;  %v2073_v6 = vsel %vm9391_vm6, %v2016_v32, %v5511_v53  ;;  %v2074_v13 = vsel %vm9391_vm6, %v2017_v11, %v5512_v42 }
 0x20e   :  { %v5520_v3 = vpop.permute.xlu0 %5519  ;;  %v5527_v47 = vunpack.i.h.bf16 %v8341_v52  ;;  %v5526_v20 = vunpack.i.l.bf16 %v8341_v52  ;;  %v2019_v52 = vsel %vm9392_vm5, %v1962_v63, %v5507_v38 }
 0x20f   :  { %v5521_v62 = vunpack.i.l.bf16 %v5520_v3  ;;  %v5522_v22 = vunpack.i.h.bf16 %v5520_v3  ;;  %v2076_v42 = vsel %vm9391_vm6, %v2019_v52, %v5517_v33 }
 0x210   :  { %v2132_v14 = vsel %vm9390_vm7, %v2075_v28, %v5526_v20  ;;  %v2133_v63 = vsel %vm9390_vm7, %v2076_v42, %v5527_v47 }
 0x211   :  { %v5535_v39 = vpop.permute.xlu1 %5534  ;;  %v2130_v55 = vsel %vm9390_vm7, %v2073_v6, %v5521_v62  ;;  %v2131_v0 = vsel %vm9390_vm7, %v2074_v13, %v5522_v22 }
 0x212   :  { %v5530_v48 = vpop.permute.xlu0 %5529  ;;  %v5537_v34 = vunpack.i.h.bf16 %v5535_v39  ;;  %v5536_v2 = vunpack.i.l.bf16 %v5535_v39 }
 0x213   :  { %v4405_v36 = vpop.f32.mrb[20].mxu0  ;;  %v5532_v51 = vunpack.i.h.bf16 %v5530_v48  ;;  %v5531_v27 = vunpack.i.l.bf16 %v5530_v48 }
 0x214   :  { %v2509_v1 = vpop.f32.mrb[21].mxu0  ;;  %v2189_v48 = vsel %vm9389_vm8, %v2132_v14, %v5536_v2  ;;  %v2190_v30 = vsel %vm9389_vm8, %v2133_v63, %v5537_v34 }
 0x215   :  { %v4406_v49 = vpop.f32.mrb[22].mxu0  ;;  %v5545_v40 = vpop.permute.xlu1 %5544  ;;  %v2187_v41 = vsel %vm9389_vm8, %v2130_v55, %v5531_v27  ;;  %v2188_v37 = vsel %vm9389_vm8, %v2131_v0, %v5532_v51  ;;  %v5862_v0 = vld [vmem:[%s9376_s0 + $0x1b0] sm:$0xff] }
 0x216   :  { %v2839_v31 = vpack.c.bf16 %v4406_v49, %v4405_v36  ;;  %v5540_v3 = vpop.permute.xlu0 %5539  ;;  %v2512_v16 = vpop.f32.mrb[23].mxu0  ;;  %v5547_v51 = vunpack.i.h.bf16 %v5545_v40  ;;  %v5546_v27 = vunpack.i.l.bf16 %v5545_v40 }
 0x217   :  { %v5542_v43 = vunpack.i.h.bf16 %v5540_v3  ;;  %v5541_v35 = vunpack.i.l.bf16 %v5540_v3  ;;  %v2838_v17 = vpack.c.bf16 %v2512_v16, %v2509_v1  ;;  %v5861_v3 = vld [vmem:[%s9376_s0 + $0x1b8] sm:$0xff] }
 0x218   :  { %v1850_v8 = vsel %vm9397_vm2, %v5859_v58, %v5547_v51 }
 0x219   :  { %v2244_v23 = vsel %vm9398_vm9, %v2187_v41, %v5541_v35  ;;  %v2245_v5 = vsel %vm9398_vm9, %v2188_v37, %v5542_v43  ;;  %4299 = vmatprep.subr.bf16.mxu1 %v2838_v17  ;;  %v5555_v56 = vpop.permute.xlu1 %5554 }
 0x21a   :  { %v2276_v53 = vpack.c.bf16 %v2245_v5, %v2244_v23  ;;  %v5550_v39 = vpop.permute.xlu0 %5549  ;;  %4300 = vmatpush3.bf16.msra.mxu1 %v2830_v46  ;;  %v5557_v1 = vunpack.i.h.bf16 %v5555_v56  ;;  %v5556_v33 = vunpack.i.l.bf16 %v5555_v56 }
 0x21b   :  { %v5552_v12 = vunpack.i.h.bf16 %v5550_v39  ;;  %v5551_v62 = vunpack.i.l.bf16 %v5550_v39  ;;  %4301 = vmatprep.subr.bf16.mxu1 %v2839_v31 }
 0x21c   :  { %4431 = vmatprep.mubr.msk.bf16.mxu0 %vm9388_vm10, %v2276_v53  ;;  %v1852_v16 = vsel %vm9397_vm2, %v5861_v3, %v5557_v1  ;;  %v1851_v43 = vsel %vm9397_vm2, %v5862_v0, %v5556_v33 }
 0x21d   :  { %v2247_v38 = vsel %vm9398_vm9, %v2190_v30, %v5552_v12  ;;  %v2246_v21 = vsel %vm9398_vm9, %v2189_v48, %v5551_v62  ;;  %v5565_v22 = vpop.permute.xlu1 %5564 }
 0x21e   :  { %v2277_v10 = vpack.c.bf16 %v2247_v38, %v2246_v21  ;;  %v5560_v29 = vpop.permute.xlu0 %5559  ;;  %4302 = vmatpush3.bf16.msra.mxu1 %v2831_v54  ;;  %v5567_v24 = vunpack.i.h.bf16 %v5565_v22  ;;  %v5566_v6 = vunpack.i.l.bf16 %v5565_v22  ;;  %v5860_v54 = vld [vmem:[%s9376_s0 + $0x1a0] sm:$0xff] }
 0x21f   :  { %v5562_v13 = vunpack.i.h.bf16 %v5560_v29  ;;  %v5561_v49 = vunpack.i.l.bf16 %v5560_v29  ;;  %v1849_v40 = vsel %vm9397_vm2, %v5860_v54, %v5546_v27 }
 0x220   :  { %4432 = vmatmul.mubr.msk.bf16.gmra.mrb[48].mxu0 %vm9388_vm10, %v2277_v10  ;;  %v1908_v34 = vsel %vm9394_vm3, %v1851_v43, %v5566_v6  ;;  %v1909_v2 = vsel %vm9394_vm3, %v1852_v16, %v5567_v24 }
 0x221   :  { %v5575_v46 = vpop.permute.xlu1 %5574  ;;  %v1907_v41 = vsel %vm9394_vm3, %v1850_v8, %v5562_v13  ;;  %v1906_v37 = vsel %vm9394_vm3, %v1849_v40, %v5561_v49 }
 0x222   :  { %v5570_v36 = vpop.permute.xlu0 %5569  ;;  %v5576_v20 = vunpack.i.l.bf16 %v5575_v46  ;;  %v5577_v31 = vunpack.i.h.bf16 %v5575_v46 }
 0x223   :  { %v5572_v35 = vunpack.i.h.bf16 %v5570_v36  ;;  %v5571_v17 = vunpack.i.l.bf16 %v5570_v36 }
 0x224   :  { %v1965_v52 = vsel %vm9393_vm4, %v1908_v34, %v5576_v20  ;;  %v1966_v42 = vsel %vm9393_vm4, %v1909_v2, %v5577_v31 }
 0x225   :  { %v5585_v32 = vpop.permute.xlu1 %5584  ;;  %v1963_v63 = vsel %vm9393_vm4, %v1906_v37, %v5571_v17  ;;  %v1964_v12 = vsel %vm9393_vm4, %v1907_v41, %v5572_v35 }
 0x226   :  { %v5580_v11 = vpop.permute.xlu0 %5579  ;;  %v5587_v23 = vunpack.i.h.bf16 %v5585_v32  ;;  %v5586_v5 = vunpack.i.l.bf16 %v5585_v32 }
 0x227   :  { %v5581_v56 = vunpack.i.l.bf16 %v5580_v11  ;;  %v5582_v53 = vunpack.i.h.bf16 %v5580_v11 }
 0x228   :  { %v2022_v29 = vsel %vm9392_vm5, %v1965_v52, %v5586_v5  ;;  %v2023_v46 = vsel %vm9392_vm5, %v1966_v42, %v5587_v23 }
 0x229   :  { %v5595_v47 = vpop.permute.xlu1 %5594  ;;  %v2020_v36 = vsel %vm9392_vm5, %v1963_v63, %v5581_v56  ;;  %v2021_v51 = vsel %vm9392_vm5, %v1964_v12, %v5582_v53 }
 0x22a   :  { %v5590_v55 = vpop.permute.xlu0 %5589  ;;  %v5597_v39 = vunpack.i.h.bf16 %v5595_v47  ;;  %v5596_v14 = vunpack.i.l.bf16 %v5595_v47 }
 0x22b   :  { %v5592_v62 = vunpack.i.h.bf16 %v5590_v55  ;;  %v5591_v48 = vunpack.i.l.bf16 %v5590_v55 }
 0x22c   :  { %v2079_v27 = vsel %vm9391_vm6, %v2022_v29, %v5596_v14  ;;  %v2080_v1 = vsel %vm9391_vm6, %v2023_v46, %v5597_v39  ;;  %v2652_v39 = vlaneseq }
 0x22d   :  { %v5605_v50 = vpop.permute.xlu1 %5604  ;;  %v2077_v6 = vsel %vm9391_vm6, %v2020_v36, %v5591_v48  ;;  %v2078_v13 = vsel %vm9391_vm6, %v2021_v51, %v5592_v62 }
 0x22e   :  { %v5600_v28 = vpop.permute.xlu0 %5599  ;;  %v5607_v30 = vunpack.i.h.bf16 %v5605_v50  ;;  %v5606_v38 = vunpack.i.l.bf16 %v5605_v50  ;;  %v8454_v14 = vand.u32 127, %v2652_v39 }
 0x22f   :  { %v5602_v21 = vunpack.i.h.bf16 %v5600_v28  ;;  %v5601_v22 = vunpack.i.l.bf16 %v5600_v28 }
 0x230   :  { %v2136_v55 = vsel %vm9390_vm7, %v2079_v27, %v5606_v38  ;;  %v2137_v58 = vsel %vm9390_vm7, %v2080_v1, %v5607_v30  ;;  %v8457_v63 = vadd.s32 256, %v8454_v14  ;;  %v8460_v12 = vadd.s32 128, %v8454_v14 }
 0x231   :  { %v5615_v10 = vpop.permute.xlu1 %5614  ;;  %v2134_v8 = vsel %vm9390_vm7, %v2077_v6, %v5601_v22  ;;  %v2135_v54 = vsel %vm9390_vm7, %v2078_v13, %v5602_v21  ;;  %v8463_v59 = vadd.s32 384, %v8454_v14 }
 0x232   :  { %v5616_v32 = vunpack.i.l.bf16 %v5615_v10  ;;  %v5610_v11 = vpop.permute.xlu0 %5609  ;;  %v5617_v33 = vunpack.i.h.bf16 %v5615_v10 }
 0x233   :  { %v4409_v24 = vpop.f32.mrb[24].mxu0  ;;  %v5612_v49 = vunpack.i.h.bf16 %v5610_v11  ;;  %v5611_v47 = vunpack.i.l.bf16 %v5610_v11 }
 0x234   :  { %v2525_v20 = vpop.f32.mrb[25].mxu0  ;;  %v2193_v3 = vsel %vm9389_vm8, %v2136_v55, %v5616_v32  ;;  %v2194_v34 = vsel %vm9389_vm8, %v2137_v58, %v5617_v33 }
 0x235   :  { %v4410_v40 = vpop.f32.mrb[26].mxu0  ;;  %v5625_v31 = vpop.permute.xlu1 %5624  ;;  %v2191_v50 = vsel %vm9389_vm8, %v2134_v8, %v5611_v47  ;;  %v2192_v52 = vsel %vm9389_vm8, %v2135_v54, %v5612_v49 }
 0x236   :  { %v2841_v16 = vpack.c.bf16 %v4410_v40, %v4409_v24  ;;  %v5627_v0 = vunpack.i.h.bf16 %v5625_v31  ;;  %v5626_v43 = vunpack.i.l.bf16 %v5625_v31  ;;  %v5620_v35 = vpop.permute.xlu0 %5619  ;;  %v2528_v17 = vpop.f32.mrb[27].mxu0 }
 0x237   :  { %v5622_v2 = vunpack.i.h.bf16 %v5620_v35  ;;  %v5621_v41 = vunpack.i.l.bf16 %v5620_v35  ;;  %v2840_v37 = vpack.c.bf16 %v2528_v17, %v2525_v20 }
 0x238   :  { %v2250_v23 = vsel %vm9398_vm9, %v2193_v3, %v5626_v43  ;;  %v2251_v5 = vsel %vm9398_vm9, %v2194_v34, %v5627_v0 }
 0x239   :  { %v2279_v56 = vpack.c.bf16 %v2251_v5, %v2250_v23  ;;  %v2248_v28 = vsel %vm9398_vm9, %v2191_v50, %v5621_v41  ;;  %v2249_v42 = vsel %vm9398_vm9, %v2192_v52, %v5622_v2  ;;  %4303 = vmatprep.subr.bf16.mxu1 %v2840_v37 }
 0x23a   :  { %v2278_v53 = vpack.c.bf16 %v2249_v42, %v2248_v28  ;;  %4304 = vmatpush3.bf16.msra.mxu1 %v2832_v9 }
 0x23b   :  { %4305 = vmatprep.subr.bf16.mxu1 %v2841_v16 }
 0x23c   :  { %4435 = vmatprep.mubr.msk.bf16.mxu0 %vm9388_vm10, %v2278_v53 }
 0x23d   :  { %4436 = vmatmul.mubr.msk.bf16.gmra.mrb[52].mxu0 %vm9388_vm10, %v2279_v56 }
 0x23e   :  { %4306 = vmatpush3.bf16.msra.mxu1 %v2833_v45  ;;  %v5873_v45 = vmov 1.0|1.0  }
 0x246   :  { %v2662_v25 = vpop.permute.xlu1 %2661 }
 0x247   :  { %vm2702_vm11 = vcmp.eq.s32.totalorder %v8457_v63, %v2662_v25  ;;  %v2659_v9 = vpop.permute.xlu0 %2658  ;;  %vm2701_vm12 = vcmp.eq.s32.totalorder %v8460_v12, %v2662_v25  ;;  %vm2700_vm3 = vcmp.eq.s32.totalorder %v8454_v14, %v2662_v25 }
 0x248   :  { %vm2698_vm13 = vcmp.eq.s32.totalorder %v8457_v63, %v2659_v9  ;;  %vm2697_vm14 = vcmp.eq.s32.totalorder %v8460_v12, %v2659_v9  ;;  %vm2699_vm6 = vcmp.eq.s32.totalorder %v8463_v59, %v2659_v9  ;;  %vm2696_vm4 = vcmp.eq.s32.totalorder %v8454_v14, %v2659_v9 }
 0x249   :  { %vm8469_vm15 = vmpackc.low %vm2702_vm11, %vm2698_vm13  ;;  %v8517_v57 = vsel %vm2699_vm6, 1.0, %v5872_v44 }
 0x24a   :  { %vm4186_vm10 = vmpackc.low %vm2701_vm12, %vm2697_vm14  ;;  %v8473_v61 = vpop.permute.xlu1 %2664  ;;  %vm2703_vm14 = vcmp.eq.s32.totalorder %v8463_v59, %v2662_v25 }
 0x24b   :  { %4187 = vmatprep.mubr.msk.bf16.mxu1 %vm4186_vm10, %v5873_v45  ;;  %vm2707_vm8 = vcmp.eq.s32.totalorder %v8463_v59, %v8473_v61  ;;  %v2668_v62 = vpop.permute.xlu0 %2667  ;;  %vm2705_vm1 = vcmp.eq.s32.totalorder %v8460_v12, %v8473_v61  ;;  %v8514_v18 = vsel %vm2703_vm14, 1.0, %v5872_v44  ;;  %vm4188_vm9 = vmpackc.low %vm2700_vm3, %vm2696_vm4  ;;  %vm2704_vm6 = vcmp.eq.s32.totalorder %v8454_v14, %v8473_v61 }
 0x24c   :  { %vm2711_vm7 = vcmp.eq.s32.totalorder %v8463_v59, %v2668_v62  ;;  %vm2709_vm2 = vcmp.eq.s32.totalorder %v8460_v12, %v2668_v62  ;;  %v2803_v1 = vpack.c.bf16 %v8514_v18, %v8517_v57  ;;  %vm2708_vm14 = vcmp.eq.s32.totalorder %v8454_v14, %v2668_v62 }
 0x24d   :  { %vm4190_vm5 = vmpackc.low %vm2709_vm2, %vm2705_vm1  ;;  %v8541_v4 = vsel %vm2707_vm8, 1.0, %v5872_v44  ;;  %v8546_v60 = vsel %vm2711_vm7, 1.0, %v5872_v44 }
 0x24e   :  { %v8479_v48 = vpop.permute.xlu1 %2670  ;;  %vm8577_vm4 = vmpackc.low %vm2708_vm14, %vm2704_vm6  ;;  %v2807_v54 = vpack.c.bf16 %v8546_v60, %v8541_v4 }
 0x24f   :  { %vm2715_vm11 = vcmp.eq.s32.totalorder %v8463_v59, %v8479_v48  ;;  %v8483_v30 = vpop.permute.xlu0 %2673  ;;  %vm2713_vm1 = vcmp.eq.s32.totalorder %v8460_v12, %v8479_v48 }
 0x250   :  { %v4413_v38 = vpop.f32.mrb[28].mxu0  ;;  %vm2719_vm12 = vcmp.eq.s32.totalorder %v8463_v59, %v8483_v30  ;;  %vm2717_vm2 = vcmp.eq.s32.totalorder %v8460_v12, %v8483_v30 }
 0x251   :  { %v2541_v21 = vpop.f32.mrb[29].mxu0  ;;  %v8563_v33 = vsel %vm2719_vm12, 1.0, %v5872_v44  ;;  %vm8602_vm8 = vmpackc.low %vm2717_vm2, %vm2713_vm1  ;;  %vm2714_vm12 = vcmp.eq.s32.totalorder %v8457_v63, %v8479_v48 }
 0x252   :  { %v4414_v22 = vpop.f32.mrb[30].mxu0  ;;  %v8487_v10 = vpop.permute.xlu1 %2676 }
 0x253   :  { %v2843_v29 = vpack.c.bf16 %v4414_v22, %v4413_v38  ;;  %v2544_v46 = vpop.f32.mrb[31].mxu0  ;;  %vm2723_vm10 = vcmp.eq.s32.totalorder %v8463_v59, %v8487_v10  ;;  %v8491_v36 = vpop.permute.xlu0 %2679 }
 0x254   :  { %v2842_v32 = vpack.c.bf16 %v2544_v46, %v2541_v21  ;;  %vm2727_vm13 = vcmp.eq.s32.totalorder %v8463_v59, %v8491_v36  ;;  %v8569_v24 = vsel %vm2723_vm10, 1.0, %v5872_v44  ;;  %vm2718_vm10 = vcmp.eq.s32.totalorder %v8457_v63, %v8483_v30 }
 0x255   :  { %v8575_v6 = vsel %vm2727_vm13, 1.0, %v5872_v44  ;;  %vm2722_vm13 = vcmp.eq.s32.totalorder %v8457_v63, %v8487_v10  ;;  %vm2726_vm6 = vcmp.eq.s32.totalorder %v8457_v63, %v8491_v36  ;;  %vm8629_vm1 = vmpackc.low %vm2718_vm10, %vm2714_vm12 }
 0x256   :  { %4307 = vmatprep.subr.bf16.mxu1 %v2842_v32  ;;  %v8495_v11 = vpop.permute.xlu1 %2682  ;;  %v2815_v3 = vpack.c.bf16 %v8575_v6, %v8569_v24  ;;  %vm8637_vm2 = vmpackc.low %vm2726_vm6, %vm2722_vm13  ;;  %vm2724_vm13 = vcmp.eq.s32.totalorder %v8454_v14, %v8491_v36 }
 0x257   :  { %4308 = vmatpush3.bf16.msra.mxu1 %v2834_v26  ;;  %v8504_v51 = vpop.permute.xlu0 %2685  ;;  %vm2730_vm14 = vcmp.eq.s32.totalorder %v8457_v63, %v8495_v11  ;;  %vm2729_vm6 = vcmp.eq.s32.totalorder %v8460_v12, %v8495_v11 }
 0x258   :  { %4309 = vmatprep.subr.bf16.mxu1 %v2843_v29  ;;  %vm9404_vm7 = vcmp.eq.s32.totalorder %v8463_v59, %v8504_v51 }
 0x259   :  { %v8591_v47 = vsel %vm9404_vm7, 1.0, %v5872_v44  ;;  %vm2712_vm7 = vcmp.eq.s32.totalorder %v8454_v14, %v8479_v48 }
 0x25a   :  { %v8519_v26 = vpop.permute.xlu1 %2688 }
 0x25b   :  { %4310 = vmatpush3.bf16.msra.mxu1 %v2835_v19  ;;  %vm2739_vm0 = vcmp.eq.s32.totalorder %v8463_v59, %v8519_v26  ;;  %v8527_v27 = vpop.permute.xlu0 %2691  ;;  %v8557_v19 = vsel %vm2715_vm11, 1.0, %v5872_v44  ;;  %vm2710_vm11 = vcmp.eq.s32.totalorder %v8457_v63, %v2668_v62 }
 0x25c   :  { %2965 = vmatprep.subr.bf16.mxu1 %v5871_v7  ;;  %vm2743_vm3 = vcmp.eq.s32.totalorder %v8463_v59, %v8527_v27  ;;  %v8597_v20 = vsel %vm2739_vm0, 1.0, %v5872_v44  ;;  %v2811_v40 = vpack.c.bf16 %v8563_v33, %v8557_v19 }
 0x25d   :  { %v8600_v55 = vsel %vm2743_vm3, 1.0, %v5872_v44  ;;  %vm2734_vm3 = vcmp.eq.s32.totalorder %v8457_v63, %v8504_v51 }
 0x25e   :  { %4189 = vmatmul.mubr.msk.bf16.vlgmr.msra.gmra.mrb[0].mxu1 %vm4188_vm9, %v5873_v45  ;;  %vm2706_vm9 = vcmp.eq.s32.totalorder %v8457_v63, %v8473_v61  ;;  %v2823_v43 = vpack.c.bf16 %v8600_v55, %v8597_v20  ;;  %v8684_v52 = vpop.permute.xlu1 %2694 }
 0x25f   :  { %4191 = vmatprep.mubr.msk.bf16.mxu1 %vm4190_vm5, %v5873_v45  ;;  %vm9403_vm5 = vcmp.eq.s32.totalorder %v8463_v59, %v8495_v11  ;;  %vm8613_vm0 = vmpackc.low %vm2710_vm11, %vm2706_vm9  ;;  %vm2716_vm9 = vcmp.eq.s32.totalorder %v8454_v14, %v8483_v30  ;;  %vm2721_vm11 = vcmp.eq.s32.totalorder %v8460_v12, %v8487_v10 }
 0x260   :  { %v8585_v49 = vsel %vm9403_vm5, 1.0, %v5872_v44  ;;  %vm8646_vm5 = vmpackc.low %vm2734_vm3, %vm2730_vm14  ;;  %vm2733_vm14 = vcmp.eq.s32.totalorder %v8460_v12, %v8504_v51 }
 0x261   :  { %v2819_v16 = vpack.c.bf16 %v8591_v47, %v8585_v49  ;;  %vm4196_vm12 = vmpackc.low %vm2716_vm9, %vm2712_vm7  ;;  %vm2728_vm9 = vcmp.eq.s32.totalorder %v8454_v14, %v8495_v11 }
 0x262   :  { %vm4202_vm7 = vmpackc.low %vm2733_vm14, %vm2729_vm6  ;;  %vm2740_vm6 = vcmp.eq.s32.totalorder %v8454_v14, %v8527_v27  ;;  %vm2745_vm14 = vcmp.eq.s32.totalorder %v8460_v12, %v8684_v52 }
 0x266   :  { %4193 = vmatmul.mubr.msk.bf16.gmra.mrb[4].mxu1 %vm8577_vm4, %v5873_v45  ;;  %vm2725_vm4 = vcmp.eq.s32.totalorder %v8460_v12, %v8491_v36 }
 0x267   :  { %4195 = vmatprep.mubr.msk.bf16.mxu1 %vm8602_vm8, %v5873_v45  ;;  %vm4198_vm10 = vmpackc.low %vm2725_vm4, %vm2721_vm11  ;;  %vm2720_vm8 = vcmp.eq.s32.totalorder %v8454_v14, %v8487_v10  ;;  %vm2732_vm11 = vcmp.eq.s32.totalorder %v8454_v14, %v8504_v51  ;;  %vm2737_vm4 = vcmp.eq.s32.totalorder %v8460_v12, %v8519_v26 }
 0x268   :  { %vm4200_vm3 = vmpackc.low %vm2724_vm13, %vm2720_vm8  ;;  %vm2736_vm13 = vcmp.eq.s32.totalorder %v8454_v14, %v8519_v26 }
 0x26e   :  { %4197 = vmatmul.mubr.msk.bf16.gmra.mrb[8].mxu1 %vm4196_vm12, %v5873_v45  ;;  %vm2741_vm12 = vcmp.eq.s32.totalorder %v8460_v12, %v8527_v27 }
 0x26f   :  { %4199 = vmatprep.mubr.msk.bf16.mxu1 %vm4198_vm10, %v5873_v45  ;;  %vm4204_vm10 = vmpackc.low %vm2732_vm11, %vm2728_vm9  ;;  %vm2744_vm9 = vcmp.eq.s32.totalorder %v8454_v14, %v8684_v52 }
 0x270   :  { %vm4206_vm8 = vmpackc.low %vm2741_vm12, %vm2737_vm4  ;;  %vm9415_vm4 = vcmask 523264  }
 0x271   :  { %vm4212_vm11 = vmpackc.low %vm2744_vm9, %vm2744_vm9 }
 0x272   :  { %vm9416_vm12 = vmmov %vm9415_vm4 }
 0x273   :  { %v4417_v17 = vpop.f32.mrb[32].mxu0 }
 0x274   :  { %v2557_v34 = vpop.f32.mrb[33].mxu0 }
 0x275   :  { %v4418_v2 = vpop.f32.mrb[34].mxu0 }
 0x276   :  { %v2845_v41 = vpack.c.bf16 %v4418_v2, %v4417_v17  ;;  %v2560_v37 = vpop.f32.mrb[35].mxu0  ;;  %4201 = vmatmul.mubr.msk.bf16.gmra.mrb[12].mxu1 %vm4200_vm3, %v5873_v45  ;;  %vm4208_vm3 = vmpackc.low %vm2740_vm6, %vm2736_vm13  ;;  %vm2742_vm13 = vcmp.eq.s32.totalorder %v8457_v63, %v8527_v27 }
 0x277   :  { %v2844_v50 = vpack.c.bf16 %v2560_v37, %v2557_v34  ;;  %4203 = vmatprep.mubr.msk.bf16.mxu1 %vm4202_vm7, %v5873_v45  ;;  %vm4210_vm7 = vmpackc.low %vm2745_vm14, %vm2745_vm14  ;;  %vm2746_vm14 = vcmp.eq.s32.totalorder %v8457_v63, %v8684_v52 }
 0x279   :  { %2966 = vmatpush1.bf16.msra.mxu1 %v2844_v50 }
 0x27a   :  { %2967 = vmatprep.subr.bf16.mxu1 %v5871_v7 }
 0x27d   :  { %2968 = vmatpush1.bf16.msra.mxu1 %v2845_v41 }
 0x27e   :  { %2969 = vmatprep.subr.bf16.mxu1 %v5871_v7  ;;  %4205 = vmatmul.mubr.msk.bf16.gmra.mrb[16].mxu1 %vm4204_vm10, %v5873_v45  ;;  %vm9417_vm10 = vmmov %vm9415_vm4 }
 0x27f   :  { %4207 = vmatprep.mubr.msk.bf16.mxu1 %vm4206_vm8, %v5873_v45  ;;  %vm2738_vm8 = vcmp.eq.s32.totalorder %v8457_v63, %v8519_v26 }
 0x286   :  { %4209 = vmatmul.mubr.msk.bf16.gmra.mrb[20].mxu1 %vm4208_vm3, %v5873_v45  ;;  %vm4233_vm3 = vmpackc.low %vm2746_vm14, %vm2746_vm14 }
 0x287   :  { %4211 = vmatprep.mubr.msk.bf16.mxu1 %vm4210_vm7, %v5873_v45  ;;  %vm9422_vm7 = vcmask 64512  }
 0x288   :  { %vm9423_vm9 = vmmov %vm9422_vm7 }
 0x28e   :  { %4213 = vmatmul.mubr.msk.bf16.gmra.mrb[24].mxu1 %vm4212_vm11, %v5873_v45  ;;  %vm9424_vm11 = vmmov %vm9422_vm7 }
 0x28f   :  { %4214 = vmatprep.mubr.msk.bf16.mxu1 %vm9415_vm4, %v2803_v1 }
 0x293   :  { %v4421_v23 = vpop.f32.mrb[36].mxu0 }
 0x294   :  { %v2573_v5 = vpop.f32.mrb[37].mxu0 }
 0x295   :  { %v4422_v56 = vpop.f32.mrb[38].mxu0 }
 0x296   :  { %v2847_v28 = vpack.c.bf16 %v4422_v56, %v4421_v23  ;;  %v2576_v42 = vpop.f32.mrb[39].mxu0 }
 0x297   :  { %v2846_v53 = vpack.c.bf16 %v2576_v42, %v2573_v5 }
 0x299   :  { %2970 = vmatpush1.bf16.msra.mxu1 %v2846_v53 }
 0x29a   :  { %2971 = vmatprep.subr.bf16.mxu1 %v5871_v7 }
 0x29d   :  { %2972 = vmatpush1.bf16.msra.mxu1 %v2847_v28 }
 0x29e   :  { %2973 = vmatprep.subr.bf16.mxu1 %v5871_v7 }
 0x2b3   :  { %v4425_v12 = vpop.f32.mrb[40].mxu0 }
 0x2b4   :  { %v2589_v25 = vpop.f32.mrb[41].mxu0 }
 0x2b5   :  { %v4426_v9 = vpop.f32.mrb[42].mxu0 }
 0x2b6   :  { %v2849_v61 = vpack.c.bf16 %v4426_v9, %v4425_v12  ;;  %v2592_v62 = vpop.f32.mrb[43].mxu0 }
 0x2b7   :  { %v2848_v48 = vpack.c.bf16 %v2592_v62, %v2589_v25 }
 0x2b9   :  { %2974 = vmatpush1.bf16.msra.mxu1 %v2848_v48 }
 0x2ba   :  { %2975 = vmatprep.subr.bf16.mxu1 %v5871_v7 }
 0x2bd   :  { %2976 = vmatpush1.bf16.msra.mxu1 %v2849_v61 }
 0x2be   :  { %2977 = vmatprep.subr.bf16.mxu1 %v5871_v7 }
 0x2d3   :  { %v4429_v30 = vpop.f32.mrb[44].mxu0 }
 0x2d4   :  { %v2605_v38 = vpop.f32.mrb[45].mxu0 }
 0x2d5   :  { %v4430_v21 = vpop.f32.mrb[46].mxu0 }
 0x2d6   :  { %v2851_v22 = vpack.c.bf16 %v4430_v21, %v4429_v30  ;;  %v2608_v10 = vpop.f32.mrb[47].mxu0 }
 0x2d7   :  { %v2850_v29 = vpack.c.bf16 %v2608_v10, %v2605_v38 }
 0x2d9   :  { %2978 = vmatpush1.bf16.msra.mxu1 %v2850_v29 }
 0x2da   :  { %2979 = vmatprep.subr.bf16.mxu1 %v5871_v7 }
 0x2dd   :  { %2980 = vmatpush1.bf16.msra.mxu1 %v2851_v22 }
 0x2de   :  { %2981 = vmatprep.subr.bf16.mxu1 %v5871_v7 }
 0x2f3   :  { %v4433_v46 = vpop.f32.mrb[48].mxu0 }
 0x2f4   :  { %v2621_v36 = vpop.f32.mrb[49].mxu0 }
 0x2f5   :  { %v4434_v32 = vpop.f32.mrb[50].mxu0 }
 0x2f6   :  { %v2853_v11 = vpack.c.bf16 %v4434_v32, %v4433_v46  ;;  %v2624_v51 = vpop.f32.mrb[51].mxu0 }
 0x2f7   :  { %v2852_v18 = vpack.c.bf16 %v2624_v51, %v2621_v36 }
 0x2f9   :  { %2982 = vmatpush1.bf16.msra.mxu1 %v2852_v18 }
 0x2fa   :  { %2983 = vmatprep.subr.bf16.mxu1 %v5871_v7 }
 0x2fd   :  { %2984 = vmatpush1.bf16.msra.mxu1 %v2853_v11 }
 0x2fe   :  { %2985 = vmatprep.subr.bf16.mxu1 %v5871_v7 }
 0x310   :  { %v4437_v57 = vpop.f32.mrb[52].mxu0 }
 0x311   :  { %v2637_v1 = vpop.f32.mrb[53].mxu0 }
 0x312   :  { %v4438_v13 = vpop.f32.mrb[54].mxu0 }
 0x313   :  { %v2855_v58 = vpack.c.bf16 %v4438_v13, %v4437_v57  ;;  %v2640_v17 = vpop.f32.mrb[55].mxu0 }
 0x314   :  { %v2854_v34 = vpack.c.bf16 %v2640_v17, %v2637_v1 }
 0x316   :  { %2986 = vmatpush1.bf16.msra.mxu1 %v2854_v34 }
 0x317   :  { %2987 = vmatprep.subr.bf16.mxu1 %v5871_v7 }
 0x31a   :  { %2988 = vmatpush1.bf16.msra.mxu1 %v2855_v58 }
 0x31d   :  { %4216 = vmatmul.mubr.msk.bf16.vlgmr.msra.gmra.mrb[28].mxu1 %vm8469_vm15, %v5873_v45  ;;  %vm9418_vm15 = vmmov %vm9415_vm4 }
 0x31e   :  { %4217 = vmatprep.mubr.msk.bf16.mxu1 %vm9416_vm12, %v2807_v54 }
 0x325   :  { %4219 = vmatmul.mubr.msk.bf16.gmra.mrb[32].mxu1 %vm8613_vm0, %v5873_v45  ;;  %vm9419_vm0 = vmmov %vm9415_vm4 }
 0x326   :  { %4220 = vmatprep.mubr.msk.bf16.mxu1 %vm9417_vm10, %v2811_v40  ;;  %vm9421_vm6 = vmmov %vm9419_vm0 }
 0x327   :  { %vm9425_vm4 = vmmov %vm9422_vm7 }
 0x328   :  { %vm9426_vm12 = vmmov %vm9425_vm4 }
 0x329   :  { %vm9427_vm10 = vmmov %vm9425_vm4 }
 0x32d   :  { %4222 = vmatmul.mubr.msk.bf16.gmra.mrb[36].mxu1 %vm8629_vm1, %v5873_v45  ;;  %vm2747_vm1 = vcmp.eq.s32.totalorder %v8463_v59, %v8684_v52 }
 0x32e   :  { %4223 = vmatprep.mubr.msk.bf16.mxu1 %vm9418_vm15, %v2815_v3  ;;  %v2799_v49 = vsel %vm2747_vm1, 1.0, %v5872_v44  ;;  %vm9428_vm15 = vmmov %vm9425_vm4 }
 0x32f   :  { %v2827_v2 = vpack.c.bf16 %v2799_v49, %v2799_v49 }
 0x331   :  { %v4311_v15 = vpop.f32.mrb[0].mxu1 }
 0x332   :  { %v4312_v4 = vpop.f32.mrb[1].mxu1 }
 0x333   :  { %v4313_v60 = vadd.f32 %v4312_v4, %v4311_v15  ;;  %v4314_v54 = vpop.f32.mrb[2].mxu1 }
 0x334   :  { %v4315_v8 = vpop.f32.mrb[3].mxu1 }
 0x335   :  { %4225 = vmatmul.mubr.msk.bf16.gmra.mrb[40].mxu1 %vm8637_vm2, %v5873_v45  ;;  %v4316_v19 = vadd.f32 %v4315_v8, %v4314_v54  ;;  %vm9420_vm2 = vmmov %vm9419_vm0 }
 0x336   :  { %4226 = vmatprep.mubr.msk.bf16.mxu1 %vm9419_vm0, %v2819_v16  ;;  %vm9429_vm0 = vmmov %vm9425_vm4 }
 0x337   :  { %vm9430_vm1 = vmmov %vm9429_vm0 }
 0x338   :  { %vm9435_vm14 = vmmov %vm9429_vm0 }
 0x339   :  { %v4317_v33 = vpop.f32.mrb[4].mxu1 }
 0x33a   :  { %v4318_v40 = vpop.f32.mrb[5].mxu1 }
 0x33b   :  { %v4319_v24 = vadd.f32 %v4318_v40, %v4317_v33  ;;  %v4320_v6 = vpop.f32.mrb[6].mxu1 }
 0x33c   :  { %v4321_v31 = vpop.f32.mrb[7].mxu1 }
 0x33d   :  { %4228 = vmatmul.mubr.msk.bf16.gmra.mrb[44].mxu1 %vm8646_vm5, %v5873_v45  ;;  %v4322_v3 = vadd.f32 %v4321_v31, %v4320_v6  ;;  %vm4230_vm5 = vmpackc.low %vm2742_vm13, %vm2738_vm8 }
 0x33e   :  { %4229 = vmatprep.mubr.msk.bf16.mxu1 %vm9420_vm2, %v2823_v43  ;;  %vm9431_vm2 = vmmov %vm9429_vm0 }
 0x33f   :  { %vm9432_vm8 = vmmov %vm9429_vm0 }
 0x340   :  { %vm9433_vm13 = vmmov %vm9429_vm0 }
 0x341   :  { %v4323_v47 = vpop.f32.mrb[8].mxu1 }
 0x342   :  { %v4324_v16 = vpop.f32.mrb[9].mxu1 }
 0x343   :  { %v4325_v0 = vadd.f32 %v4324_v16, %v4323_v47  ;;  %v4326_v35 = vpop.f32.mrb[10].mxu1 }
 0x344   :  { %v4327_v59 = vpop.f32.mrb[11].mxu1 }
 0x345   :  { %4231 = vmatmul.mubr.msk.bf16.gmra.mrb[48].mxu1 %vm4230_vm5, %v5873_v45  ;;  %v4328_v20 = vadd.f32 %v4327_v59, %v4326_v35 }
 0x346   :  { %4232 = vmatprep.mubr.msk.bf16.mxu1 %vm9421_vm6, %v2827_v2  ;;  %vm9434_vm6 = vmmov %vm9429_vm0 }
 0x349   :  { %v4329_v55 = vpop.f32.mrb[12].mxu1 }
 0x34a   :  { %v4330_v26 = vpop.f32.mrb[13].mxu1 }
 0x34b   :  { %v4331_v43 = vadd.f32 %v4330_v26, %v4329_v55  ;;  %v4332_v41 = vpop.f32.mrb[14].mxu1 }
 0x34c   :  { %v4333_v27 = vpop.f32.mrb[15].mxu1 }
 0x34d   :  { %4234 = vmatmul.mubr.msk.bf16.gmra.mrb[52].mxu1 %vm4233_vm3, %v5873_v45  ;;  %v4334_v37 = vadd.f32 %v4333_v27, %v4332_v41  ;;  %vm9436_vm3 = vmmov %vm9429_vm0 }
 0x351   :  { %v4335_v50 = vpop.f32.mrb[16].mxu1 }
 0x352   :  { %v4336_v23 = vpop.f32.mrb[17].mxu1 }
 0x353   :  { %v4337_v5 = vadd.f32 %v4336_v23, %v4335_v50  ;;  %v4338_v56 = vpop.f32.mrb[18].mxu1 }
 0x354   :  { %v4339_v28 = vpop.f32.mrb[19].mxu1 }
 0x355   :  { %v4340_v42 = vadd.f32 %v4339_v28, %v4338_v56 }
 0x359   :  { %v4341_v53 = vpop.f32.mrb[20].mxu1 }
 0x35a   :  { %v4342_v12 = vpop.f32.mrb[21].mxu1 }
 0x35b   :  { %v4343_v25 = vadd.f32 %v4342_v12, %v4341_v53  ;;  %v4344_v9 = vpop.f32.mrb[22].mxu1 }
 0x35c   :  { %v4345_v63 = vpop.f32.mrb[23].mxu1 }
 0x35d   :  { %v4346_v52 = vadd.f32 %v4345_v63, %v4344_v9  ;;  %v8783_v9 = vshrl.u32 %v2652_v39, 7 }
 0x361   :  { %v4347_v61 = vpop.f32.mrb[24].mxu1 }
 0x362   :  { %v4348_v62 = vpop.f32.mrb[25].mxu1 }
 0x363   :  { %v8758_v48 = vadd.f32 %v4348_v62, %v4347_v61  ;;  %v4350_v30 = vpop.f32.mrb[26].mxu1 }
 0x364   :  { %v4351_v38 = vpop.f32.mrb[27].mxu1  ;;  %v3066_v30 = vadd.s32 96, %v8783_v9 }
 0x366   :  { %vm3079_vm5 = vcmp.lt.s32.totalorder %v3066_v30, 98  ;;  %v5795_v30 = vld [vmem:[%s9379_s4] sm:$0xff]  }
 0x367   :  { %v3092_v39 = vsel %vm3079_vm5, 1.0, %v5872_v44  ;;  %4440 = vmatpush3.bf16.msra.mxu0 %v5795_v30  ;;  %vm9447_vm5 = vcmask 1045504  }
 0x368   :  { %4441 = vmatprep.subr.bf16.mxu0 %v5872_v44 }
 0x3f0   :  { %v2999_v45 = vpop.f32.mrb[28].mxu1 }
 0x3f1   :  { %v8760_v21 = vadd.f32 %v4313_v60, %v2999_v45  ;;  %v3001_v22 = vpop.f32.mrb[29].mxu1 }
 0x3f2   :  { %v3002_v10 = vpop.f32.mrb[30].mxu1 }
 0x3f3   :  { %v8762_v29 = vadd.f32 %v4316_v19, %v3002_v10  ;;  %v3004_v46 = vpop.f32.mrb[31].mxu1  ;;  %v3106_v36 = vsel %vm9422_vm7, %v8760_v21, 0.0  ;;  %vm9437_vm7 = vmmov %vm9429_vm0 }
 0x3f5   :  { %v3107_v32 = vsel %vm9423_vm9, %v8762_v29, 0.0  ;;  %vm9438_vm9 = vmmov %vm9429_vm0 }
 0x3f6   :  { %v3108_v11 = vadd.f32 %v3107_v32, %v3106_v36 }
 0x3f8   :  { %v3007_v51 = vpop.f32.mrb[32].mxu1 }
 0x3f9   :  { %v8768_v18 = vadd.f32 %v4319_v24, %v3007_v51  ;;  %v3009_v57 = vpop.f32.mrb[33].mxu1 }
 0x3fa   :  { %v3010_v1 = vpop.f32.mrb[34].mxu1 }
 0x3fb   :  { %v3109_v13 = vsel %vm9424_vm11, %v8768_v18, 0.0  ;;  %v8772_v58 = vadd.f32 %v4322_v3, %v3010_v1  ;;  %v3012_v17 = vpop.f32.mrb[35].mxu1  ;;  %vm9439_vm11 = vmmov %vm9429_vm0 }
 0x3fc   :  { %v3110_v34 = vadd.f32 %v3109_v13, %v3108_v11 }
 0x3fd   :  { %v3111_v15 = vsel %vm9425_vm4, %v8772_v58, 0.0  ;;  %vm9440_vm4 = vmmov %vm9429_vm0 }
 0x3fe   :  { %v3112_v4 = vadd.f32 %v3111_v15, %v3110_v34 }
 0x400   :  { %v3015_v60 = vpop.f32.mrb[36].mxu1 }
 0x401   :  { %v3016_v54 = vadd.f32 %v4325_v0, %v3015_v60  ;;  %v3017_v8 = vpop.f32.mrb[37].mxu1 }
 0x402   :  { %v3018_v19 = vpop.f32.mrb[38].mxu1 }
 0x403   :  { %v3113_v33 = vsel %vm9426_vm12, %v3016_v54, 0.0  ;;  %v3019_v40 = vadd.f32 %v4328_v20, %v3018_v19  ;;  %v3020_v24 = vpop.f32.mrb[39].mxu1  ;;  %vm9441_vm12 = vmmov %vm9429_vm0 }
 0x404   :  { %v3114_v6 = vadd.f32 %v3113_v33, %v3112_v4 }
 0x405   :  { %v3115_v31 = vsel %vm9427_vm10, %v3019_v40, 0.0  ;;  %vm9442_vm10 = vmmov %vm9429_vm0 }
 0x406   :  { %v3116_v49 = vadd.f32 %v3115_v31, %v3114_v6 }
 0x408   :  { %v3023_v3 = vpop.f32.mrb[40].mxu1 }
 0x409   :  { %v3024_v47 = vadd.f32 %v4331_v43, %v3023_v3  ;;  %v3025_v16 = vpop.f32.mrb[41].mxu1 }
 0x40a   :  { %v3026_v35 = vpop.f32.mrb[42].mxu1 }
 0x40b   :  { %v3117_v2 = vsel %vm9428_vm15, %v3024_v47, 0.0  ;;  %v3027_v59 = vadd.f32 %v4334_v37, %v3026_v35  ;;  %v3028_v55 = vpop.f32.mrb[43].mxu1  ;;  %vm9443_vm15 = vmmov %vm9429_vm0 }
 0x40c   :  { %v3118_v26 = vadd.f32 %v3117_v2, %v3116_v49 }
 0x40d   :  { %v3119_v0 = vsel %vm9429_vm0, %v3027_v59, 0.0 }
 0x40e   :  { %v3120_v41 = vadd.f32 %v3119_v0, %v3118_v26 }
 0x410   :  { %v3031_v27 = vpop.f32.mrb[44].mxu1 }
 0x411   :  { %v3032_v50 = vadd.f32 %v4337_v5, %v3031_v27  ;;  %v3033_v20 = vpop.f32.mrb[45].mxu1 }
 0x412   :  { %v3034_v23 = vpop.f32.mrb[46].mxu1 }
 0x413   :  { %v3121_v56 = vsel %vm9430_vm1, %v3032_v50, 0.0  ;;  %v3035_v28 = vadd.f32 %v4340_v42, %v3034_v23  ;;  %v3036_v53 = vpop.f32.mrb[47].mxu1  ;;  %vm9444_vm1 = vmmov %vm9429_vm0 }
 0x414   :  { %v3122_v12 = vadd.f32 %v3121_v56, %v3120_v41 }
 0x415   :  { %v3123_v43 = vsel %vm9431_vm2, %v3035_v28, 0.0  ;;  %vm9445_vm2 = vmmov %vm9429_vm0 }
 0x416   :  { %v3124_v37 = vadd.f32 %v3123_v43, %v3122_v12 }
 0x418   :  { %v3039_v63 = vpop.f32.mrb[48].mxu1 }
 0x419   :  { %v3040_v61 = vadd.f32 %v4343_v25, %v3039_v63  ;;  %v3041_v62 = vpop.f32.mrb[49].mxu1 }
 0x41a   :  { %v3042_v38 = vpop.f32.mrb[50].mxu1 }
 0x41b   :  { %v3125_v5 = vsel %vm9432_vm8, %v3040_v61, 0.0  ;;  %v3043_v45 = vadd.f32 %v4346_v52, %v3042_v38  ;;  %v3044_v22 = vpop.f32.mrb[51].mxu1  ;;  %vm9446_vm8 = vmmov %vm9429_vm0 }
 0x41c   :  { %v3126_v10 = vadd.f32 %v3125_v5, %v3124_v37 }
 0x41d   :  { %v3127_v42 = vsel %vm9433_vm13, %v3043_v45, 0.0  ;;  %vm3375_vm13 = vcmask 1041408  }
 0x41e   :  { %v3128_v46 = vadd.f32 %v3127_v42, %v3126_v10 }
 0x420   :  { %v3047_v36 = vpop.f32.mrb[52].mxu1 }
 0x421   :  { %v3048_v32 = vadd.f32 %v8758_v48, %v3047_v36  ;;  %v3049_v11 = vpop.f32.mrb[53].mxu1 }
 0x422   :  { %v3050_v25 = vpop.f32.mrb[54].mxu1 }
 0x423   :  { %v3105_v51 = vmul.f32 %v3092_v39, %v3048_v32  ;;  %v3051_v57 = vpop.f32.mrb[55].mxu1 }
 0x425   :  { %v3129_v1 = vsel %vm9434_vm6, %v3105_v51, 0.0  ;;  %vm9448_vm6 = vmmov %vm9447_vm5 }
 0x426   :  { %v3130_v13 = vadd.f32 %v3129_v1, %v3128_v46 }
 0x428   :  { %v3131_v17 = vrot.slane %v3130_v13, 4 }
 0x42a   :  { %v3132_v52 = vadd.f32 %v3131_v17, %v3130_v13 }
 0x42c   :  { %v3133_v34 = vrot.slane %v3132_v52, 2 }
 0x42e   :  { %v3134_v15 = vadd.f32 %v3133_v34, %v3132_v52  ;;  %v5796_v52 = vld [vmem:[%s9379_s4 + $0x8] sm:$0xff]  }
 0x42f   :  { %4442 = vmatpush3.bf16.msra.mxu0 %v5796_v52 }
 0x430   :  { %v3135_v4 = vrot.slane %v3134_v15, 1  ;;  %4443 = vmatprep.subr.bf16.mxu0 %v5872_v44 }
 0x432   :  { %v3136_v60 = vadd.f32 %v3135_v4, %v3134_v15 }
 0x434   :  { %v3137_v8 = vmul.f32 0.010204081, %v3136_v60 }
 0x436   :  { %v8792_v19 = vsub.f32 %v8760_v21, %v3137_v8  ;;  %v8795_v33 = vsub.f32 %v8762_v29, %v3137_v8  ;;  %v8798_v48 = vsub.f32 %v8768_v18, %v3137_v8  ;;  %v8801_v24 = vsub.f32 %v8772_v58, %v3137_v8 }
 0x437   :  { %v8803_v6 = vsub.f32 %v3016_v54, %v3137_v8  ;;  %v8805_v31 = vsub.f32 %v3019_v40, %v3137_v8  ;;  %v8807_v49 = vsub.f32 %v3024_v47, %v3137_v8  ;;  %v8809_v3 = vsub.f32 %v3027_v59, %v3137_v8 }
 0x438   :  { %v8811_v16 = vsub.f32 %v3032_v50, %v3137_v8  ;;  %v8813_v21 = vsub.f32 %v3035_v28, %v3137_v8  ;;  %v8815_v29 = vsub.f32 %v3040_v61, %v3137_v8  ;;  %v8817_v35 = vsub.f32 %v3043_v45, %v3137_v8 }
 0x439   :  { %v8819_v18 = vsub.f32 %v3105_v51, %v3137_v8  ;;  %v3164_v58 = vmul.f32 %v8792_v19, %v8792_v19  ;;  %v3165_v54 = vmul.f32 %v8795_v33, %v8795_v33  ;;  %v3166_v40 = vmul.f32 %v8798_v48, %v8798_v48 }
 0x43a   :  { %v3167_v47 = vmul.f32 %v8801_v24, %v8801_v24  ;;  %v3168_v26 = vmul.f32 %v8803_v6, %v8803_v6  ;;  %v3169_v27 = vmul.f32 %v8805_v31, %v8805_v31  ;;  %v3170_v23 = vmul.f32 %v8807_v49, %v8807_v49 }
 0x43b   :  { %v3177_v2 = vsel %vm9435_vm14, %v3164_v58, 0.0  ;;  %v3178_v59 = vsel %vm9436_vm3, %v3165_v54, 0.0  ;;  %v3180_v0 = vsel %vm9437_vm7, %v3166_v40, 0.0  ;;  %v3171_v28 = vmul.f32 %v8809_v3, %v8809_v3  ;;  %v113_v40 = vld [vmem:[%s9380_s2] sm:$0x3]  ;;  %vm9449_vm14 = vmmov %vm9447_vm5 }
 0x43c   :  { %v3179_v55 = vadd.f32 %v3178_v59, %v3177_v2  ;;  %v3182_v50 = vsel %vm9438_vm9, %v3167_v47, 0.0  ;;  %v3184_v56 = vsel %vm9439_vm11, %v3168_v26, 0.0  ;;  %v3186_v12 = vsel %vm9440_vm4, %v3169_v27, 0.0  ;;  %vm9450_vm3 = vmmov %vm9447_vm5 }
 0x43d   :  { %v3172_v37 = vmul.f32 %v8811_v16, %v8811_v16  ;;  %v3188_v63 = vsel %vm9441_vm12, %v3170_v23, 0.0  ;;  %v3190_v62 = vsel %vm9442_vm10, %v3171_v28, 0.0  ;;  %v3173_v38 = vmul.f32 %v8813_v21, %v8813_v21  ;;  %vm9451_vm7 = vmmov %vm9450_vm3 }
 0x43e   :  { %v3181_v41 = vadd.f32 %v3180_v0, %v3179_v55  ;;  %v3163_v45 = vmul.f32 %v8819_v18, %v3092_v39  ;;  %v3174_v22 = vmul.f32 %v8815_v29, %v8815_v29  ;;  %v3175_v46 = vmul.f32 %v8817_v35, %v8817_v35  ;;  %vm9452_vm9 = vmmov %vm9450_vm3 }
 0x43f   :  { %v3192_v10 = vsel %vm9443_vm15, %v3172_v37, 0.0  ;;  %v3194_v36 = vsel %vm9429_vm0, %v3173_v38, 0.0  ;;  %v3214_v47 = vsub.s32 0, %v8783_v9  ;;  %v3231_v59 = vsub.s32 1, %v8783_v9  ;;  %vm9453_vm11 = vmmov %vm9450_vm3 }
 0x440   :  { %v3183_v20 = vadd.f32 %v3182_v50, %v3181_v41  ;;  %v3176_v11 = vmul.f32 %v3163_v45, %v3163_v45  ;;  %v3196_v25 = vsel %vm9444_vm1, %v3174_v22, 0.0  ;;  %v3198_v39 = vsel %vm9445_vm2, %v3175_v46, 0.0  ;;  %vm9454_vm4 = vmmov %vm9450_vm3 }
 0x441   :  { %v8876_v0 = vrot.slane %v113_v40, %v3231_v59  ;;  %vm9455_vm12 = vcmask 1043456   ;;  %vm9458_vm0 = vmmov %vm9450_vm3 }
 0x442   :  { %v3185_v53 = vadd.f32 %v3184_v56, %v3183_v20  ;;  %v3200_v1 = vsel %vm9446_vm8, %v3176_v11, 0.0  ;;  %vm9456_vm10 = vmmov %vm9455_vm12 }
 0x443   :  { %vm9457_vm15 = vmmov %vm9456_vm10 }
 0x444   :  { %v3187_v43 = vadd.f32 %v3186_v12, %v3185_v53  ;;  %vm9459_vm1 = vmmov %vm9456_vm10 }
 0x445   :  { %vm9460_vm2 = vmmov %vm9459_vm1 }
 0x446   :  { %v3189_v61 = vadd.f32 %v3188_v63, %v3187_v43  ;;  %vm9461_vm8 = vmmov %vm9459_vm1 }
 0x448   :  { %v3191_v5 = vadd.f32 %v3190_v62, %v3189_v61 }
 0x44a   :  { %v3193_v42 = vadd.f32 %v3192_v10, %v3191_v5 }
 0x44c   :  { %v3195_v32 = vadd.f32 %v3194_v36, %v3193_v42 }
 0x44e   :  { %v3197_v51 = vadd.f32 %v3196_v25, %v3195_v32 }
 0x450   :  { %v3199_v57 = vadd.f32 %v3198_v39, %v3197_v51 }
 0x452   :  { %v3201_v13 = vadd.f32 %v3200_v1, %v3199_v57 }
 0x454   :  { %v3202_v17 = vrot.slane %v3201_v13, 4 }
 0x456   :  { %v3203_v34 = vadd.f32 %v3202_v17, %v3201_v13 }
 0x458   :  { %v3204_v15 = vrot.slane %v3203_v34, 2 }
 0x45a   :  { %v3205_v4 = vadd.f32 %v3204_v15, %v3203_v34 }
 0x45c   :  { %v3206_v60 = vrot.slane %v3205_v4, 1 }
 0x45e   :  { %v3207_v8 = vadd.f32 %v3206_v60, %v3205_v4 }
 0x460   :  { %v3208_v58 = vmul.f32 0.010204081, %v3207_v8 }
 0x462   :  { %v3209_v54 = vadd.f32 1e-05, %v3208_v58 }
 0x464   :  { %5811 = vrsqrt.f32 %v3209_v54 }
 0x46e   :  { %v5812_v2 = vpop.eup %5811 }
 0x46f   :  { %v3211_v55 = vmul.f32 %v5812_v2, %v113_v40 }
 0x471   :  { %v3215_v26 = vrot.slane %v3211_v55, %v3214_v47 }
 0x473   :  { %v3222_v41 = vmul.f32 %v3215_v26, %v8807_v49  ;;  %v3223_v27 = vmul.f32 %v3215_v26, %v8809_v3  ;;  %v3224_v50 = vmul.f32 %v3215_v26, %v8811_v16  ;;  %v3225_v20 = vmul.f32 %v3215_v26, %v8813_v21  ;;  %v5797_v3 = vld [vmem:[%s9379_s4 + $0x10] sm:$0xff]  }
 0x474   :  { %v3226_v23 = vmul.f32 %v3215_v26, %v8815_v29  ;;  %v3227_v56 = vmul.f32 %v3215_v26, %v8817_v35  ;;  %v3228_v28 = vmul.f32 %v3215_v26, %v8819_v18  ;;  %v3218_v53 = vmul.f32 %v3215_v26, %v8798_v48  ;;  %4444 = vmatpush3.bf16.msra.mxu0 %v5797_v3 }
 0x475   :  { %v3219_v12 = vmul.f32 %v3215_v26, %v8801_v24  ;;  %v3216_v43 = vmul.f32 %v3215_v26, %v8792_v19  ;;  %v3217_v49 = vmul.f32 %v3215_v26, %v8795_v33  ;;  %v3220_v29 = vmul.f32 %v3215_v26, %v8803_v6  ;;  %4445 = vmatprep.subr.bf16.mxu0 %v5872_v44 }
 0x476   :  { %v8893_v16 = vadd.f32 %v8876_v0, %v3228_v28  ;;  %v3235_v21 = vadd.f32 %v8876_v0, %v3218_v53  ;;  %v3221_v35 = vmul.f32 %v3215_v26, %v8805_v31  ;;  %v3239_v51 = vadd.f32 %v8876_v0, %v3222_v41  ;;  %v5798_v53 = vld [vmem:[%s9379_s4 + $0x18] sm:$0xff]  }
 0x477   :  { %v3236_v48 = vadd.f32 %v8876_v0, %v3219_v12  ;;  %v3233_v24 = vadd.f32 %v8876_v0, %v3216_v43  ;;  %v3234_v19 = vadd.f32 %v8876_v0, %v3217_v49  ;;  %v3237_v18 = vadd.f32 %v8876_v0, %v3220_v29 }
 0x478   :  { %v8901_v33 = vmax.f32 %v3235_v21, 0.0  ;;  %v3238_v37 = vadd.f32 %v8876_v0, %v3221_v35  ;;  %v3240_v39 = vadd.f32 %v8876_v0, %v3223_v27  ;;  %v8939_v15 = vmax.f32 %v3239_v51, 0.0  ;;  %4446 = vmatpush3.bf16.msra.mxu0 %v5798_v53 }
 0x479   :  { %v8906_v63 = vmax.f32 %v3236_v48, 0.0  ;;  %v8908_v6 = vmax.f32 %v3233_v24, 0.0  ;;  %v8910_v31 = vmax.f32 %v3234_v19, 0.0  ;;  %v8913_v62 = vmax.f32 %v3237_v18, 0.0  ;;  %4447 = vmatprep.subr.bf16.mxu0 %v5872_v44 }
 0x47a   :  { %v3285_v61 = vrot.slane %v8901_v33, 2  ;;  %v8915_v30 = vmax.f32 %v3238_v37, 0.0  ;;  %v3377_v38 = vrot.slane %v8901_v33, 6  ;;  %v8941_v4 = vmax.f32 %v3240_v39, 0.0 }
 0x47b   :  { %v5630_v5 = vpack.i.bf16 %v8906_v63, %v8901_v33  ;;  %v3282_v45 = vrot.slane %v8908_v6, 2  ;;  %v3283_v22 = vrot.slane %v8910_v31, 2  ;;  %v3376_v10 = vrot.slane %v8910_v31, 6 }
 0x47c   :  { %v3379_v42 = vrot.slane %v8906_v63, 6  ;;  %v3287_v32 = vrot.slane %v8906_v63, 2  ;;  %v3289_v25 = vrot.slane %v8913_v62, 2  ;;  %v5635_v57 = vpack.i.bf16 %v8915_v30, %v8913_v62 }
 0x47d   :  { %5631 = vrot.lane.b32.xlu1 %v5630_v5, %s5866_s14  ;;  %v3284_v46 = vsel %vm9447_vm5, %v3282_v45, %v3283_v22  ;;  %v3286_v36 = vsel %vm9448_vm6, %v3283_v22, %v3285_v61  ;;  %v3378_v1 = vsel %vm3375_vm13, %v3376_v10, %v3377_v38  ;;  %v3381_v60 = vrot.slane %v8913_v62, 6  ;;  %vm9462_vm5 = vmmov %vm9459_vm1 }
 0x47e   :  { %v5670_v11 = vpack.i.bf16 %v3286_v36, %v3284_v46  ;;  %v3380_v13 = vsel %vm3375_vm13, %v3377_v38, %v3379_v42  ;;  %v3288_v17 = vsel %vm9449_vm14, %v3285_v61, %v3287_v32  ;;  %v3290_v34 = vsel %vm9450_vm3, %v3287_v32, %v3289_v25  ;;  %vm9463_vm14 = vmmov %vm9459_vm1 }
 0x47f   :  { %v5680_v52 = vpack.i.bf16 %v3380_v13, %v3378_v1  ;;  %v3383_v8 = vrot.slane %v8915_v30, 6  ;;  %v3243_v58 = vadd.f32 %v8876_v0, %v3226_v23  ;;  %v3244_v54 = vadd.f32 %v8876_v0, %v3227_v56  ;;  %vm9464_vm3 = vmmov %vm9458_vm0 }
 0x480   :  { %5671 = vrot.lane.b32.xlu0 %v5670_v11, %s5864_s17  ;;  %v3241_v55 = vadd.f32 %v8876_v0, %v3224_v50  ;;  %v5685_v26 = vpack.i.bf16 %v3290_v34, %v3288_v17  ;;  %v3242_v41 = vadd.f32 %v8876_v0, %v3225_v20  ;;  %v5645_v27 = vpack.i.bf16 %v8941_v4, %v8939_v15 }
 0x481   :  { %5636 = vrot.lane.b32.xlu1 %v5635_v57, %s5870_s1  ;;  %v8949_v40 = vmax.f32 %v3243_v58, 0.0  ;;  %v3257_v2 = vmax.f32 %v3244_v54, 0.0  ;;  %v3382_v28 = vsel %vm3375_vm13, %v3379_v42, %v3381_v60  ;;  %v3384_v23 = vsel %vm3375_vm13, %v3381_v60, %v3383_v8 }
 0x482   :  { %v5695_v50 = vpack.i.bf16 %v3384_v23, %v3382_v28  ;;  %v8963_v12 = vmax.f32 %v3241_v55, 0.0  ;;  %v8965_v0 = vmax.f32 %v3242_v41, 0.0  ;;  %v3291_v20 = vrot.slane %v8915_v30, 2 }
 0x483   :  { %v5665_v56 = vpack.i.bf16 %v3257_v2, %v8949_v40  ;;  %v3293_v43 = vrot.slane %v8939_v15, 2  ;;  %v8973_v49 = vmax.f32 %v8893_v16, 0.0  ;;  %v3385_v19 = vrot.slane %v8939_v15, 6 }
 0x484   :  { %5681 = vrot.lane.b32.xlu0 %v5680_v52, %s5865_s22  ;;  %v3297_v3 = vrot.slane %v8963_v12, 2  ;;  %v5655_v21 = vpack.i.bf16 %v8965_v0, %v8963_v12  ;;  %v3391_v29 = vrot.slane %v8965_v0, 6  ;;  %v3292_v35 = vsel %vm9451_vm7, %v3289_v25, %v3291_v20  ;;  %vm9465_vm7 = vmmov %vm9458_vm0 }
 0x485   :  { %5641 = vrot.lane.b32.xlu1 %v5635_v57, %s5866_s14  ;;  %v3294_v48 = vsel %vm9452_vm9, %v3291_v20, %v3293_v43  ;;  %v3345_v24 = vrot.slane %v8965_v0, 4  ;;  %v3299_v16 = vrot.slane %v8965_v0, 2  ;;  %v3387_v18 = vrot.slane %v8941_v4, 6  ;;  %vm9466_vm9 = vmmov %vm9459_vm1  ;;  %v3270_v0 = vld [vmem:[%s9381_s6 + $0x8] sm:$0xff] }
 0x486   :  { %v3450_v37 = vrot.slane %v8949_v40, 2  ;;  %v3393_v61 = vrot.slane %v8949_v40, 6  ;;  %v3515_v5 = vrot.slane %v3257_v2, 6  ;;  %v3482_v45 = vrot.slane %v8949_v40, 4 }
 0x487   :  { %v8994_v38 = vsel %vm9453_vm11, %v3297_v3, %v3299_v16  ;;  %v3484_v22 = vrot.slane %v3257_v2, 4  ;;  %v3486_v46 = vrot.slane %v8973_v49, 4  ;;  %v3452_v36 = vrot.slane %v3257_v2, 2  ;;  %vm9467_vm11 = vmmov %vm9459_vm1 }
 0x488   :  { %5686 = vrot.lane.b32.xlu0 %v5685_v26, %s5867_s19  ;;  %v8998_v10 = vsel %vm9454_vm4, %v3299_v16, %v3450_v37  ;;  %v9003_v42 = vsel %vm3375_vm13, %v3391_v29, %v3393_v61  ;;  %v9010_v11 = vsel %vm3375_vm13, %v3393_v61, %v3515_v5  ;;  %v9015_v25 = vsel %vm9455_vm12, %v3345_v24, %v3482_v45  ;;  %vm9468_vm4 = vmmov %vm9459_vm1 }
 0x489   :  { %5646 = vrot.lane.b32.xlu1 %v5645_v27, %s5870_s1  ;;  %v5775_v32 = vpack.i.bf16 %v8998_v10, %v8994_v38  ;;  %v9018_v51 = vsel %vm9456_vm10, %v3482_v45, %v3484_v22  ;;  %v5785_v39 = vpack.i.bf16 %v9010_v11, %v9003_v42  ;;  %v9026_v1 = vsel %vm9457_vm15, %v3484_v22, %v3486_v46  ;;  %vm9469_vm12 = vmmov %vm9459_vm1 }
 0x48a   :  { %v5780_v57 = vpack.i.bf16 %v9018_v51, %v9015_v25  ;;  %v9029_v13 = vsel %vm9458_vm0, %v3450_v37, %v3452_v36  ;;  %v5715_v17 = vpack.i.bf16 %v3294_v48, %v3292_v35  ;;  %v3517_v52 = vrot.slane %v8973_v49, 6  ;;  %vm9470_vm10 = vmmov %vm9459_vm1 }
 0x48b   :  { %v3386_v34 = vsel %vm3375_vm13, %v3383_v8, %v3385_v19  ;;  %v3388_v60 = vsel %vm3375_vm13, %v3385_v19, %v3387_v18  ;;  %v3328_v58 = vrot.slane %v8908_v6, 4  ;;  %v3329_v54 = vrot.slane %v8910_v31, 4 }
 0x48c   :  { %5696 = vrot.lane.b32.xlu0 %v5695_v50, %s5869_s24  ;;  %v3331_v2 = vrot.slane %v8901_v33, 4  ;;  %v9041_v55 = vsel %vm3375_vm13, %v3515_v5, %v3517_v52  ;;  %v3333_v8 = vrot.slane %v8906_v63, 4  ;;  %v3335_v28 = vrot.slane %v8913_v62, 4 }
 0x48d   :  { %5651 = vrot.lane.b32.xlu1 %v5645_v27, %s5866_s14  ;;  %v3330_v41 = vsel %vm9459_vm1, %v3328_v58, %v3329_v54  ;;  %v3337_v23 = vrot.slane %v8915_v30, 4  ;;  %vm5874_vm6 = vmmov 0   ;;  %v3389_v19 = vrot.slane %v8963_v12, 6 }
 0x48e   :  { %v3332_v27 = vsel %vm9460_vm2, %v3329_v54, %v3331_v2  ;;  %v3336_v20 = vsel %vm9461_vm8, %v3333_v8, %v3335_v28  ;;  %4449 = vmatprep.mubr.msk.bf16.mxu0 %vm5874_vm6, %v5872_v44  ;;  %v3334_v37 = vsel %vm9466_vm9, %v3331_v2, %v3333_v8  ;;  %v3339_v61 = vrot.slane %v8939_v15, 4 }
 0x48f   :  { %v5675_v53 = vpack.i.bf16 %v3332_v27, %v3330_v41  ;;  %v3341_v5 = vrot.slane %v8941_v4, 4  ;;  %v3392_v22 = vsel %vm3375_vm13, %v3389_v19, %v3391_v29  ;;  %vm9471_vm15 = vcmask 64512  }
 0x490   :  { %5701 = vrot.lane.b32.xlu0 %v5685_v26, %s5864_s17  ;;  %v5725_v26 = vpack.i.bf16 %v3388_v60, %v3386_v34  ;;  %v3340_v46 = vsel %vm9467_vm11, %v3337_v23, %v3339_v61  ;;  %v3343_v34 = vrot.slane %v8963_v12, 4  ;;  %vm9472_vm0 = vmmov %vm9471_vm15  ;;  %vm9473_vm1 = vcmask 130048  }
 0x491   :  { %5656 = vrot.lane.b32.xlu1 %v5655_v21, %s5870_s1  ;;  %v3342_v36 = vsel %vm9468_vm4, %v3339_v61, %v3341_v5  ;;  %vm9474_vm2 = vmmov %vm9473_vm1  ;;  %vm9475_vm8 = vcmask 195584   ;;  %vm9481_vm11 = vcmask 392192  }
 0x492   :  { %v5720_v52 = vpack.i.bf16 %v3342_v36, %v3340_v46  ;;  %v3344_v29 = vsel %vm9469_vm12, %v3341_v5, %v3343_v34  ;;  %v3346_v60 = vsel %vm9470_vm10, %v3343_v34, %v3345_v24  ;;  %v3269_v24 = vld [vmem:[%s9381_s6] sm:$0xff]  ;;  %vm9482_vm4 = vmmov %vm9481_vm11  ;;  %vm9484_vm10 = vcmask 457728  }
 0x493   :  { %v5750_v58 = vpack.i.bf16 %v3346_v60, %v3344_v29  ;;  %v5765_v54 = vpack.i.bf16 %v3344_v29, %v3342_v36  ;;  %vm9483_vm12 = vmmov %vm9472_vm0 }
 0x494   :  { %5711 = vrot.lane.b32.xlu0 %v5695_v50, %s5865_s22  ;;  %v3295_v50 = vrot.slane %v8941_v4, 2 }
 0x495   :  { %5661 = vrot.lane.b32.xlu1 %v5655_v21, %s5866_s14  ;;  %v3338_v21 = vsel %vm9462_vm5, %v3335_v28, %v3337_v23  ;;  %vm9476_vm5 = vmmov %vm9475_vm8 }
 0x496   :  { %v5690_v35 = vpack.i.bf16 %v3338_v21, %v3336_v20  ;;  %v3296_v48 = vsel %vm9464_vm3, %v3293_v43, %v3295_v50  ;;  %v3298_v16 = vsel %vm9465_vm7, %v3295_v50, %v3297_v3  ;;  %v5705_v43 = vpack.i.bf16 %v3336_v20, %v3334_v37 }
 0x497   :  { %v5745_v45 = vpack.i.bf16 %v3298_v16, %v3296_v48  ;;  %v3390_v3 = vsel %vm3375_vm13, %v3387_v18, %v3389_v19  ;;  %v5735_v18 = vpack.i.bf16 %v3340_v46, %v3338_v21  ;;  %vm9479_vm7 = vcmask 326656  }
 0x498   :  { %5716 = vrot.lane.b32.xlu0 %v5715_v17, %s5867_s19  ;;  %vm9480_vm9 = vmmov %vm9479_vm7 }
 0x499   :  { %5666 = vrot.lane.b32.xlu1 %v5665_v56, %s5870_s1  ;;  %v5799_v56 = vld [vmem:[%s9379_s4 + $0x20] ss:$0 sps:$4 sm:$0xff]  }
 0x49c   :  { %5726 = vrot.lane.b32.xlu0 %v5725_v26, %s5869_s24 }
 0x49d   :  { %3438 = vrot.lane.b32.xlu1 %v8949_v40, %s5866_s14  ;;  %v3693_v40 = vsel %vm9463_vm14, %v5799_v56, 0  ;;  %vm9477_vm14 = vcmask 261120  }
 0x49e   :  { %4448 = vmatpush3.bf16.msra.mxu0 %v3693_v40  ;;  %vm9478_vm3 = vmmov %vm9477_vm14 }
 0x49f   :  { %4041 = vmatprep.subr.bf16.mxu0 %v5871_v7 }
 0x4a0   :  { %5731 = vrot.lane.b32.xlu0 %v5715_v17, %s5864_s17  ;;  %v5755_v17 = vpack.i.bf16 %v3392_v22, %v3390_v3 }
 0x4a1   :  { %5676 = vrot.lane.b32.xlu1 %v5675_v53, %s5863_s16 }
 0x4a4   :  { %5741 = vrot.lane.b32.xlu0 %v5725_v26, %s5865_s22 }
 0x4a5   :  { %5691 = vrot.lane.b32.xlu1 %v5690_v35, %s5868_s23 }
 0x4a8   :  { %5746 = vrot.lane.b32.xlu0 %v5745_v45, %s5867_s19 }
 0x4a9   :  { %5706 = vrot.lane.b32.xlu1 %v5705_v43, %s5863_s16 }
 0x4ac   :  { %5756 = vrot.lane.b32.xlu0 %v5755_v17, %s5869_s24 }
 0x4ad   :  { %5721 = vrot.lane.b32.xlu1 %v5720_v52, %s5868_s23 }
 0x4b0   :  { %5761 = vrot.lane.b32.xlu0 %v5745_v45, %s5864_s17 }
 0x4b1   :  { %5736 = vrot.lane.b32.xlu1 %v5735_v18, %s5863_s16 }
 0x4b4   :  { %5771 = vrot.lane.b32.xlu0 %v5755_v17, %s5865_s22 }
 0x4b5   :  { %5751 = vrot.lane.b32.xlu1 %v5750_v58, %s5868_s23 }
 0x4b8   :  { %5776 = vrot.lane.b32.xlu0 %v5775_v32, %s5867_s19 }
 0x4b9   :  { %5766 = vrot.lane.b32.xlu1 %v5765_v54, %s5863_s16 }
 0x4bc   :  { %5786 = vrot.lane.b32.xlu0 %v5785_v39, %s5869_s24 }
 0x4bd   :  { %5781 = vrot.lane.b32.xlu1 %v5780_v57, %s5868_s23 }
 0x4c0   :  { %3317 = vrot.lane.b32.xlu0 %v8994_v38, %s5864_s17  ;;  %v3271_v38 = vld [vmem:[%s9381_s6 + $0x10] sm:$0xff] }
 0x4c1   :  { %3363 = vrot.lane.b32.xlu1 %v3346_v60, %s5863_s16 }
 0x4c4   :  { %3411 = vrot.lane.b32.xlu0 %v9003_v42, %s5865_s22 }
 0x4c5   :  { %3504 = vrot.lane.b32.xlu1 %v9026_v1, %s5868_s23 }
 0x4c8   :  { %3470 = vrot.lane.b32.xlu0 %v9029_v13, %s5867_s19 }
 0x4c9   :  { %3562 = vrot.lane.b32.xlu1 %v8973_v49, %s5870_s1 }
 0x4cc   :  { %3535 = vrot.lane.b32.xlu0 %v9041_v55, %s5869_s24 }
 0x4cd   :  { %3771 = vperm.xlu1 %5629, %v3270_v0  }
 0x4d0   :  { %3768 = vperm.xlu0 %5628, %v3269_v24  }
 0x4d4   :  { %3774 = vperm.xlu0 %5628, %v3271_v38  }
 0x4ef   :  { %v5632_v10 = vpop.permute.xlu1 %5631 }
 0x4f0   :  { %v5634_v50 = vunpack.i.h.bf16 %v5632_v10  ;;  %v5633_v56 = vunpack.i.l.bf16 %v5632_v10 }
 0x4f2   :  { %v5672_v49 = vpop.permute.xlu0 %5671 }
 0x4f3   :  { %v5637_v42 = vpop.permute.xlu1 %5636  ;;  %v5674_v28 = vunpack.i.h.bf16 %v5672_v49  ;;  %v5673_v23 = vunpack.i.l.bf16 %v5672_v49 }
 0x4f4   :  { %v5639_v21 = vunpack.i.h.bf16 %v5637_v42  ;;  %v5638_v40 = vunpack.i.l.bf16 %v5637_v42 }
 0x4f5   :  { %v3574_v16 = vsel %vm9471_vm15, %v8910_v31, %v5674_v28  ;;  %v3573_v19 = vsel %vm9472_vm0, %v8908_v6, %v5673_v23  ;;  %vm9485_vm15 = vmmov %vm9484_vm10  ;;  %vm9486_vm0 = vcmask 523264  }
 0x4f6   :  { %v5682_v32 = vpop.permute.xlu0 %5681 }
 0x4f7   :  { %v9132_v11 = vpop.permute.xlu1 %5641  ;;  %v5684_v37 = vunpack.i.h.bf16 %v5682_v32  ;;  %v5683_v61 = vunpack.i.l.bf16 %v5682_v32 }
 0x4f8   :  { %v5644_v24 = vunpack.i.h.bf16 %v9132_v11  ;;  %v5643_v38 = vunpack.i.l.bf16 %v9132_v11 }
 0x4fa   :  { %v5687_v25 = vpop.permute.xlu0 %5686 }
 0x4fb   :  { %v9134_v51 = vpop.permute.xlu1 %5646  ;;  %v5689_v5 = vunpack.i.h.bf16 %v5687_v25  ;;  %v5688_v45 = vunpack.i.l.bf16 %v5687_v25 }
 0x4fc   :  { %v5649_v32 = vunpack.i.h.bf16 %v9134_v51 }
 0x4fe   :  { %v5697_v39 = vpop.permute.xlu0 %5696 }
 0x4ff   :  { %v9136_v57 = vpop.permute.xlu1 %5651  ;;  %v5699_v46 = vunpack.i.h.bf16 %v5697_v39  ;;  %v5698_v60 = vunpack.i.l.bf16 %v5697_v39 }
 0x502   :  { %v5702_v1 = vpop.permute.xlu0 %5701 }
 0x503   :  { %v9138_v13 = vpop.permute.xlu1 %5656  ;;  %v5704_v36 = vunpack.i.h.bf16 %v5702_v1  ;;  %v5703_v58 = vunpack.i.l.bf16 %v5702_v1 }
 0x505   :  { %v3576_v25 = vsel %vm9483_vm12, %v8906_v63, %v5704_v36 }
 0x506   :  { %v9140_v2 = vpop.permute.xlu0 %5711 }
 0x507   :  { %v9142_v55 = vpop.permute.xlu1 %5661 }
 0x50a   :  { %v9144_v26 = vpop.permute.xlu0 %5716 }
 0x50b   :  { %v9146_v8 = vpop.permute.xlu1 %5666  ;;  %v5719_v63 = vunpack.i.h.bf16 %v9144_v26 }
 0x50e   :  { %v9148_v41 = vpop.permute.xlu0 %5726 }
 0x50f   :  { %v9150_v27 = vpop.permute.xlu1 %3438  ;;  %v5728_v36 = vunpack.i.l.bf16 %v9148_v41 }
 0x512   :  { %v9152_v53 = vpop.permute.xlu0 %5731 }
 0x513   :  { %v5677_v20 = vpop.permute.xlu1 %5676 }
 0x514   :  { %v5679_v35 = vunpack.i.h.bf16 %v5677_v20  ;;  %v5678_v48 = vunpack.i.l.bf16 %v5677_v20 }
 0x516   :  { %v3582_v43 = vsel %vm9473_vm1, %v3573_v19, %v5678_v48  ;;  %v3583_v3 = vsel %vm9474_vm2, %v3574_v16, %v5679_v35  ;;  %v9160_v22 = vpop.permute.xlu0 %5741  ;;  %vm9487_vm1 = vmmov %vm9486_vm0  ;;  %v5714_v35 = vunpack.i.h.bf16 %v9140_v2  ;;  %v5713_v48 = vunpack.i.l.bf16 %v9140_v2 }
 0x517   :  { %v3591_v17 = vsel %vm9475_vm8, %v3582_v43, %v5683_v61  ;;  %v3592_v52 = vsel %vm9476_vm5, %v3583_v3, %v5684_v37  ;;  %v5692_v31 = vpop.permute.xlu1 %5691  ;;  %vm9488_vm2 = vmmov %vm9483_vm12  ;;  %v5718_v19 = vunpack.i.l.bf16 %v9144_v26  ;;  %vm9489_vm8 = vcmask 130048  }
 0x518   :  { %v5694_v34 = vunpack.i.h.bf16 %v5692_v31  ;;  %v5693_v18 = vunpack.i.l.bf16 %v5692_v31  ;;  %v3600_v6 = vsel %vm9477_vm14, %v3591_v17, %v5633_v56  ;;  %v3601_v29 = vsel %vm9478_vm3, %v3592_v52, %v5634_v50  ;;  %vm9490_vm5 = vmmov %vm9489_vm8 }
 0x519   :  { %v3609_v54 = vsel %vm9479_vm7, %v3600_v6, %v5688_v45  ;;  %v3610_v0 = vsel %vm9480_vm9, %v3601_v29, %v5689_v5  ;;  %v3575_v20 = vsel %vm9488_vm2, %v8901_v33, %v5703_v58  ;;  %v5734_v5 = vunpack.i.h.bf16 %v9152_v53 }
 0x51a   :  { %v3618_v10 = vsel %vm9481_vm11, %v3609_v54, %v5693_v18  ;;  %v3619_v49 = vsel %vm9482_vm4, %v3610_v0, %v5694_v34  ;;  %v9172_v42 = vpop.permute.xlu0 %5746  ;;  %vm9491_vm14 = vcmask 195584   ;;  %vm9493_vm7 = vcmask 588800  }
 0x51b   :  { %v3627_v39 = vsel %vm9484_vm10, %v3618_v10, %v5698_v60  ;;  %v3628_v1 = vsel %vm9485_vm15, %v3619_v49, %v5699_v46  ;;  %v5707_v28 = vpop.permute.xlu1 %5706  ;;  %vm9492_vm3 = vmmov %vm9491_vm14  ;;  %vm9494_vm9 = vcmask 261120   ;;  %v5733_v17 = vunpack.i.l.bf16 %v9152_v53 }
 0x51c   :  { %v3636_v23 = vsel %vm9486_vm0, %v3627_v39, %v5638_v40  ;;  %v3637_v11 = vsel %vm9487_vm1, %v3628_v1, %v5639_v21  ;;  %v5709_v50 = vunpack.i.h.bf16 %v5707_v28  ;;  %v5708_v56 = vunpack.i.l.bf16 %v5707_v28  ;;  %vm9495_vm11 = vmmov %vm9494_vm9 }
 0x51d   :  { %v3645_v16 = vpack.c.bf16 %v3637_v11, %v3636_v23  ;;  %v5729_v21 = vunpack.i.h.bf16 %v9148_v41  ;;  %vm9496_vm4 = vcmask 326656   ;;  %v5648_v34 = vunpack.i.l.bf16 %v9134_v51  ;;  %vm9500_vm0 = vmmov %vm9488_vm2 }
 0x51e   :  { %v3584_v37 = vsel %vm9489_vm8, %v3575_v20, %v5708_v56  ;;  %v3585_v40 = vsel %vm9490_vm5, %v3576_v25, %v5709_v50  ;;  %v9189_v61 = vpop.permute.xlu0 %5756  ;;  %vm9497_vm12 = vmmov %vm9496_vm4  ;;  %v5654_v18 = vunpack.i.h.bf16 %v9136_v57  ;;  %vm9498_vm10 = vcmask 392192  }
 0x51f   :  { %v3593_v33 = vsel %vm9491_vm14, %v3584_v37, %v5713_v48  ;;  %v3594_v45 = vsel %vm9492_vm3, %v3585_v40, %v5714_v35  ;;  %v5722_v2 = vpop.permute.xlu1 %5721  ;;  %4450 = vmatmul.mubr.msk.bf16.vlgmr.msra.gmra.mrb[56].mxu0 %vm9493_vm7, %v3645_v16  ;;  %vm9499_vm15 = vmmov %vm9498_vm10  ;;  %v5653_v58 = vunpack.i.l.bf16 %v9136_v57  ;;  %v3578_v41 = vsel %vm9500_vm0, %v8915_v30, %v5734_v5 }
 0x520   :  { %v5724_v43 = vunpack.i.h.bf16 %v5722_v2  ;;  %v5723_v3 = vunpack.i.l.bf16 %v5722_v2  ;;  %v3602_v26 = vsel %vm9494_vm9, %v3593_v33, %v5643_v38  ;;  %v3603_v46 = vsel %vm9495_vm11, %v3594_v45, %v5644_v24  ;;  %4453 = vmatprep.mubr.msk.bf16.mxu0 %vm5874_vm6, %v5872_v44  ;;  %vm9505_vm14 = vmmov %vm9500_vm0 }
 0x521   :  { %v3611_v52 = vsel %vm9496_vm4, %v3602_v26, %v5718_v19  ;;  %v3612_v31 = vsel %vm9497_vm12, %v3603_v46, %v5719_v63  ;;  %vm9501_vm1 = vcmask 457728   ;;  %vm9503_vm8 = vcmask 523264  }
 0x522   :  { %v3620_v6 = vsel %vm9498_vm10, %v3611_v52, %v5723_v3  ;;  %v3621_v29 = vsel %vm9499_vm15, %v3612_v31, %v5724_v43  ;;  %v5762_v60 = vpop.permute.xlu0 %5761  ;;  %vm9502_vm2 = vmmov %vm9501_vm1  ;;  %v3577_v49 = vsel %vm9505_vm14, %v8913_v62, %v5733_v17  ;;  %v5744_v25 = vunpack.i.h.bf16 %v9160_v22 }
 0x523   :  { %v3629_v53 = vsel %vm9501_vm1, %v3620_v6, %v5728_v36  ;;  %v3630_v54 = vsel %vm9502_vm2, %v3621_v29, %v5729_v21  ;;  %v5737_v0 = vpop.permute.xlu1 %5736  ;;  %vm9504_vm5 = vmmov %vm9503_vm8  ;;  %v5743_v57 = vunpack.i.l.bf16 %v9160_v22  ;;  %v5749_v30 = vunpack.i.h.bf16 %v9172_v42 }
 0x524   :  { %v5739_v24 = vunpack.i.h.bf16 %v5737_v0  ;;  %v5738_v38 = vunpack.i.l.bf16 %v5737_v0  ;;  %v3638_v51 = vsel %vm9503_vm8, %v3629_v53, %v5648_v34  ;;  %v3639_v10 = vsel %vm9504_vm5, %v3630_v54, %v5649_v32  ;;  %vm9517_vm8 = vmmov %vm9505_vm14 }
 0x525   :  { %v3646_v39 = vpack.c.bf16 %v3639_v10, %v3638_v51  ;;  %v5748_v1 = vunpack.i.l.bf16 %v9172_v42  ;;  %vm9506_vm3 = vcmask 130048   ;;  %v5759_v50 = vunpack.i.h.bf16 %v9189_v61 }
 0x526   :  { %v3586_v28 = vsel %vm9506_vm3, %v3577_v49, %v5738_v38  ;;  %vm9507_vm7 = vmmov %vm9506_vm3  ;;  %v5772_v11 = vpop.permute.xlu0 %5771  ;;  %v5764_v32 = vunpack.i.h.bf16 %v5762_v60  ;;  %vm9508_vm9 = vcmask 195584   ;;  %vm9510_vm4 = vcmask 588800  }
 0x527   :  { %v3587_v23 = vsel %vm9507_vm7, %v3578_v41, %v5739_v24  ;;  %v3595_v56 = vsel %vm9508_vm9, %v3586_v28, %v5743_v57  ;;  %vm9509_vm11 = vmmov %vm9508_vm9  ;;  %v5752_v20 = vpop.permute.xlu1 %5751  ;;  %4454 = vmatmul.mubr.msk.bf16.gmra.mrb[60].mxu0 %vm9510_vm4, %v3646_v39  ;;  %vm9511_vm12 = vcmask 261120   ;;  %v5758_v16 = vunpack.i.l.bf16 %v9189_v61 }
 0x528   :  { %v3596_v62 = vsel %vm9509_vm11, %v3587_v23, %v5744_v25  ;;  %v5754_v22 = vunpack.i.h.bf16 %v5752_v20  ;;  %v5753_v35 = vunpack.i.l.bf16 %v5752_v20  ;;  %v3604_v48 = vsel %vm9511_vm12, %v3595_v56, %v5653_v58  ;;  %vm9512_vm10 = vmmov %vm9511_vm12  ;;  %4457 = vmatprep.mubr.msk.bf16.mxu0 %vm5874_vm6, %v5872_v44 }
 0x529   :  { %v3605_v42 = vsel %vm9512_vm10, %v3596_v62, %v5654_v18  ;;  %v5763_v63 = vunpack.i.l.bf16 %v5762_v60  ;;  %vm9513_vm15 = vcmask 326656   ;;  %v5659_v40 = vunpack.i.h.bf16 %v9138_v13  ;;  %vm9522_vm9 = vmmov %vm9517_vm8 }
 0x52a   :  { %v3613_v19 = vsel %vm9513_vm15, %v3604_v48, %v5748_v1  ;;  %vm9514_vm0 = vmmov %vm9513_vm15  ;;  %v5658_v21 = vunpack.i.l.bf16 %v9138_v13  ;;  %vm9515_vm1 = vcmask 392192   ;;  %v5777_v45 = vpop.permute.xlu0 %5776  ;;  %v3580_v2 = vsel %vm9517_vm8, %v8941_v4, %v5764_v32 }
 0x52b   :  { %v3614_v37 = vsel %vm9514_vm0, %v3605_v42, %v5749_v30  ;;  %v3622_v5 = vsel %vm9515_vm1, %v3613_v19, %v5753_v35  ;;  %vm9516_vm2 = vmmov %vm9515_vm1  ;;  %vm9518_vm5 = vcmask 457728   ;;  %v5767_v3 = vpop.permute.xlu1 %5766  ;;  %vm9520_vm3 = vcmask 523264  }
 0x52c   :  { %v3623_v33 = vsel %vm9516_vm2, %v3614_v37, %v5754_v22  ;;  %v3631_v43 = vsel %vm9518_vm5, %v3622_v5, %v5758_v16  ;;  %vm9519_vm14 = vmmov %vm9518_vm5  ;;  %v5769_v26 = vunpack.i.h.bf16 %v5767_v3  ;;  %v5768_v46 = vunpack.i.l.bf16 %v5767_v3 }
 0x52d   :  { %v3632_v61 = vsel %vm9519_vm14, %v3623_v33, %v5759_v50  ;;  %v3640_v36 = vsel %vm9520_vm3, %v3631_v43, %v5658_v21  ;;  %vm9521_vm7 = vmmov %vm9520_vm3  ;;  %v3579_v13 = vsel %vm9522_vm9, %v8939_v15, %v5763_v63  ;;  %v5774_v52 = vunpack.i.h.bf16 %v5772_v11 }
 0x52e   :  { %v3641_v17 = vsel %vm9521_vm7, %v3632_v61, %v5659_v40  ;;  %v5773_v31 = vunpack.i.l.bf16 %v5772_v11  ;;  %v5664_v18 = vunpack.i.h.bf16 %v9142_v55  ;;  %v5663_v4 = vunpack.i.l.bf16 %v9142_v55  ;;  %v5787_v60 = vpop.permute.xlu0 %5786 }
 0x52f   :  { %v3647_v34 = vpack.c.bf16 %v3641_v17, %v3640_v36  ;;  %vm9523_vm11 = vcmask 130048   ;;  %v5779_v58 = vunpack.i.h.bf16 %v5777_v45  ;;  %v5778_v41 = vunpack.i.l.bf16 %v5777_v45  ;;  %v5782_v0 = vpop.permute.xlu1 %5781 }
 0x530   :  { %v3588_v6 = vsel %vm9523_vm11, %v3579_v13, %v5768_v46  ;;  %vm9524_vm4 = vmmov %vm9523_vm11  ;;  %vm9525_vm12 = vcmask 195584   ;;  %vm9527_vm15 = vcmask 588800   ;;  %v5784_v15 = vunpack.i.h.bf16 %v5782_v0 }
 0x531   :  { %v3589_v29 = vsel %vm9524_vm4, %v3580_v2, %v5769_v26  ;;  %v3597_v53 = vsel %vm9525_vm12, %v3588_v6, %v5773_v31  ;;  %vm9526_vm10 = vmmov %vm9525_vm12  ;;  %4458 = vmatmul.mubr.msk.bf16.gmra.mrb[64].mxu0 %vm9527_vm15, %v3647_v34  ;;  %v5783_v24 = vunpack.i.l.bf16 %v5782_v0  ;;  %vm9528_vm0 = vcmask 261120  }
 0x532   :  { %v3598_v54 = vsel %vm9526_vm10, %v3589_v29, %v5774_v52  ;;  %v3606_v38 = vsel %vm9528_vm0, %v3597_v53, %v5663_v4  ;;  %vm9529_vm1 = vmmov %vm9528_vm0  ;;  %4461 = vmatprep.mubr.msk.bf16.mxu0 %vm5874_vm6, %v5872_v44  ;;  %v5789_v51 = vunpack.i.h.bf16 %v5787_v60  ;;  %v5788_v10 = vunpack.i.l.bf16 %v5787_v60  ;;  %v3318_v28 = vpop.permute.xlu0 %3317 }
 0x533   :  { %v3607_v55 = vsel %vm9529_vm1, %v3598_v54, %v5664_v18  ;;  %vm9530_vm2 = vcmask 326656   ;;  %v5669_v57 = vunpack.i.h.bf16 %v9146_v8  ;;  %v5668_v39 = vunpack.i.l.bf16 %v9146_v8  ;;  %v3364_v32 = vpop.permute.xlu1 %3363 }
 0x534   :  { %v3615_v49 = vsel %vm9530_vm2, %v3606_v38, %v5778_v41  ;;  %vm9531_vm8 = vmmov %vm9530_vm2  ;;  %vm9532_vm5 = vcmask 392192   ;;  %vm9534_vm3 = vcmask 457728   ;;  %v3581_v50 = vsel %vm9522_vm9, %v8963_v12, %v3318_v28  ;;  %v5804_v28 = vld [vmem:[%s9382_s7 + $0x20] sm:$0xff]  }
 0x535   :  { %v3616_v25 = vsel %vm9531_vm8, %v3607_v55, %v5779_v58  ;;  %v3624_v30 = vsel %vm9532_vm5, %v3615_v49, %v5783_v24  ;;  %vm9533_vm14 = vmmov %vm9532_vm5  ;;  %vm9536_vm11 = vcmask 523264   ;;  %vm9538_vm12 = vcmask 130048  }
 0x536   :  { %v3625_v1 = vsel %vm9533_vm14, %v3616_v25, %v5784_v15  ;;  %v3633_v23 = vsel %vm9534_vm3, %v3624_v30, %v5788_v10  ;;  %vm9535_vm7 = vmmov %vm9534_vm3  ;;  %v3590_v8 = vsel %vm9538_vm12, %v3581_v50, %v3364_v32  ;;  %v3412_v22 = vpop.permute.xlu0 %3411  ;;  %v5802_v30 = vld [vmem:[%s9382_s7 + $0x10] sm:$0xff]  }
 0x537   :  { %v3634_v11 = vsel %vm9535_vm7, %v3625_v1, %v5789_v51  ;;  %v3642_v56 = vsel %vm9536_vm11, %v3633_v23, %v5668_v39  ;;  %vm9537_vm4 = vmmov %vm9536_vm11  ;;  %v3599_v35 = vsel %vm9526_vm10, %v3590_v8, %v3412_v22  ;;  %v3505_v48 = vpop.permute.xlu1 %3504  ;;  %v5801_v39 = vld [vmem:[%s9382_s7 + $0x8] sm:$0xff]   ;;  %v5803_v1 = vld [vmem:[%s9382_s7 + $0x18] sm:$0xff]   ;;  %v3056_v23 = vadd.s32 16, %v8783_v9 }
 0x538   :  { %v3643_v62 = vsel %vm9537_vm4, %v3634_v11, %v5669_v57  ;;  %v3608_v12 = vsel %vm9528_vm0, %v3599_v35, %v9150_v27  ;;  %vm9539_vm1 = vmmov %vm9530_vm2 }
 0x539   :  { %v3648_v20 = vpack.c.bf16 %v3643_v62, %v3642_v56  ;;  %vm9540_vm2 = vmmov %vm9532_vm5 }
 0x53a   :  { %v3471_v42 = vpop.permute.xlu0 %3470  ;;  %vm9541_vm8 = vmmov %vm9534_vm3 }
 0x53b   :  { %4462 = vmatmul.mubr.msk.bf16.gmra.mrb[68].mxu0 %vm9527_vm15, %v3648_v20  ;;  %v3617_v16 = vsel %vm9539_vm1, %v3608_v12, %v3471_v42  ;;  %v3563_v37 = vpop.permute.xlu1 %3562  ;;  %vm9542_vm5 = vmmov %vm9537_vm4  ;;  %vm9545_vm4 = vcmask 1043456  }
 0x53c   :  { %4465 = vmatprep.mubr.msk.bf16.mxu0 %vm5874_vm6, %v5872_v44  ;;  %v3626_v63 = vsel %vm9540_vm2, %v3617_v16, %v3505_v48  ;;  %vm9543_vm14 = vmmov %vm9527_vm15  ;;  %vm9548_vm15 = vcmask 130048  }
 0x53d   :  { %vm9544_vm9 = vmmov %vm9543_vm14 }
 0x53e   :  { %v3536_v19 = vpop.permute.xlu0 %3535  ;;  %vm9546_vm12 = vmmov %vm9545_vm4 }
 0x53f   :  { %v3635_v40 = vsel %vm9541_vm8, %v3626_v63, %v3536_v19  ;;  %vm9547_vm10 = vmmov %vm9544_vm9 }
 0x540   :  { %v3644_v21 = vsel %vm9542_vm5, %v3635_v40, %v3563_v37  ;;  %vm9549_vm0 = vmmov %vm9548_vm15 }
 0x541   :  { %v3649_v5 = vpack.c.bf16 %v3644_v21, %v3644_v21  ;;  %vm9550_vm1 = vmmov %vm9549_vm0 }
 0x542   :  { %vm9551_vm2 = vmmov %vm9549_vm0 }
 0x543   :  { %4466 = vmatmul.mubr.msk.bf16.gmra.mrb[72].mxu0 %vm9543_vm14, %v3649_v5  ;;  %vm9552_vm8 = vmmov %vm9549_vm0 }
 0x544   :  { %vm9553_vm5 = vmmov %vm9549_vm0 }
 0x545   :  { %vm9554_vm14 = vmmov %vm9549_vm0 }
 0x54c   :  { %v3772_v33 = vpop.permute.xlu1 %3771 }
 0x54d   :  { %vm3777_vm3 = vcmp.eq.s32.totalorder %v8454_v14, %v3772_v33 }
 0x54e   :  { %v3780_v27 = vsel %vm3777_vm3, 1.0, %v5872_v44  ;;  %vm9555_vm3 = vcmask 1045504  }
 0x54f   :  { %v3769_v45 = vpop.permute.xlu0 %3768 }
 0x550   :  { %vm3776_vm7 = vcmp.eq.s32.totalorder %v8454_v14, %v3769_v45 }
 0x551   :  { %v3779_v2 = vsel %vm3776_vm7, 1.0, %v5872_v44  ;;  %vm9556_vm7 = vmmov %vm9545_vm4 }
 0x552   :  { %v3782_v43 = vpack.c.bf16 %v3780_v27, %v3779_v2 }
 0x553   :  { %v3775_v15 = vpop.permute.xlu0 %3774 }
 0x554   :  { %4479 = vmatprep.mubr.msk.bf16.mxu1 %vm9544_vm9, %v3782_v43  ;;  %vm3778_vm11 = vcmp.eq.s32.totalorder %v8454_v14, %v3775_v15  ;;  %v5800_v14 = vld [vmem:[%s9382_s7] sm:$0xff]   ;;  %vm9557_vm9 = vmmov %vm9545_vm4 }
 0x555   :  { %v3781_v51 = vsel %vm3778_vm11, 1.0, %v5872_v44  ;;  %4042 = vmatpush1.bf16.msra.mxu0 %v5800_v14  ;;  %vm9558_vm11 = vmmov %vm9555_vm3 }
 0x556   :  { %v3783_v57 = vpack.c.bf16 %v3781_v51, %v3781_v51  ;;  %4043 = vmatprep.subr.bf16.mxu0 %v5871_v7 }
 0x559   :  { %4044 = vmatpush1.bf16.msra.mxu0 %v5801_v39 }
 0x55a   :  { %4045 = vmatprep.subr.bf16.mxu0 %v5871_v7 }
 0x55d   :  { %4046 = vmatpush1.bf16.msra.mxu0 %v5802_v30 }
 0x55e   :  { %4047 = vmatprep.subr.bf16.mxu0 %v5871_v7 }
 0x561   :  { %4048 = vmatpush1.bf16.msra.mxu0 %v5803_v1 }
 0x562   :  { %4049 = vmatprep.subr.bf16.mxu0 %v5871_v7 }
 0x565   :  { %4050 = vmatpush1.bf16.msra.mxu0 %v5804_v28 }
 0x566   :  { %4051 = vmatprep.subr.bf16.mxu0 %v5871_v7 }
 0x5f2   :  { %v3729_v61 = vpop.f32.mrb[56].mxu0 }
 0x5f3   :  { %v4451_v3 = vpop.f32.mrb[57].mxu0 }
 0x5f4   :  { %v3732_v26 = vpop.f32.mrb[58].mxu0 }
 0x5f5   :  { %v3784_v46 = vpack.c.bf16 %v3732_v26, %v3729_v61  ;;  %v4452_v36 = vpop.f32.mrb[59].mxu0 }
 0x5f7   :  { %4469 = vmatprep.subr.bf16.mxu1 %v3784_v46 }
 0x5f8   :  { %4470 = vmatpush3.bf16.msra.mxu1 %v3784_v46 }
 0x5fa   :  { %v3737_v17 = vpop.f32.mrb[60].mxu0 }
 0x5fb   :  { %v4455_v13 = vpop.f32.mrb[61].mxu0 }
 0x5fc   :  { %v3740_v52 = vpop.f32.mrb[62].mxu0 }
 0x5fd   :  { %v3785_v31 = vpack.c.bf16 %v3740_v52, %v3737_v17  ;;  %v4456_v34 = vpop.f32.mrb[63].mxu0 }
 0x5ff   :  { %4471 = vmatprep.subr.bf16.mxu1 %v3785_v31 }
 0x600   :  { %4472 = vmatpush3.bf16.msra.mxu1 %v3785_v31 }
 0x604   :  { %v3745_v18 = vpop.f32.mrb[64].mxu0 }
 0x605   :  { %v4459_v4 = vpop.f32.mrb[65].mxu0 }
 0x606   :  { %v3748_v6 = vpop.f32.mrb[66].mxu0 }
 0x607   :  { %v3786_v29 = vpack.c.bf16 %v3748_v6, %v3745_v18  ;;  %v4460_v60 = vpop.f32.mrb[67].mxu0 }
 0x608   :  { %v3268_v60 = vld [vmem:[%s9383_s5] sm:$0x3] }
 0x609   :  { %4473 = vmatprep.subr.bf16.mxu1 %v3786_v29 }
 0x60a   :  { %4474 = vmatpush3.bf16.msra.mxu1 %v3786_v29 }
 0x60e   :  { %v3753_v58 = vpop.f32.mrb[68].mxu0 }
 0x60f   :  { %v4463_v41 = vpop.f32.mrb[69].mxu0 }
 0x610   :  { %v3756_v53 = vpop.f32.mrb[70].mxu0 }
 0x611   :  { %v3787_v54 = vpack.c.bf16 %v3756_v53, %v3753_v58  ;;  %v4464_v0 = vpop.f32.mrb[71].mxu0  ;;  %v5805_v53 = vld [vmem:[%s9382_s7 + $0x28] sm:$0xff]  }
 0x612   :  { %v3901_v0 = vrot.slane %v3268_v60, %v3231_v59  ;;  %4052 = vmatpush1.bf16.msra.mxu0 %v5805_v53  ;;  %v5807_v59 = vld [vmem:[%s9382_s7 + $0x38] sm:$0xff]  }
 0x613   :  { %4475 = vmatprep.subr.bf16.mxu1 %v3787_v54  ;;  %4053 = vmatprep.subr.bf16.mxu0 %v5871_v7 }
 0x614   :  { %4476 = vmatpush3.bf16.msra.mxu1 %v3787_v54 }
 0x616   :  { %v3761_v24 = vpop.f32.mrb[72].mxu0 }
 0x617   :  { %v3788_v38 = vpack.c.bf16 %v3761_v24, %v3761_v24  ;;  %v4467_v55 = vpop.f32.mrb[73].mxu0 }
 0x618   :  { %v3764_v10 = vpop.f32.mrb[74].mxu0  ;;  %v5806_v55 = vld [vmem:[%s9382_s7 + $0x30] sm:$0xff]  }
 0x619   :  { %v3796_v49 = vsel %vm9545_vm4, %v3788_v38, 0  ;;  %v4468_v25 = vpop.f32.mrb[75].mxu0  ;;  %4492 = vmatprep.subr.msk.bf16.mxu1 %vm9546_vm12, %v3788_v38  ;;  %4054 = vmatpush1.bf16.msra.mxu0 %v5806_v55  ;;  %vm9559_vm4 = vmmov %vm9549_vm0  ;;  %vm9561_vm12 = vcmask 392192  }
 0x61a   :  { %4478 = vmatpush3.bf16.msra.mxu1 %v3796_v49  ;;  %4055 = vmatprep.subr.bf16.mxu0 %v5871_v7 }
 0x61b   :  { %4483 = vmatprep.subr.bf16.mxu1 %v5872_v44 }
 0x61d   :  { %4480 = vmatmul.mubr.msk.bf16.vlgmr.msra.gmra.mrb[56].mxu1 %vm9547_vm10, %v3783_v57  ;;  %4056 = vmatpush1.bf16.msra.mxu0 %v5807_v59  ;;  %vm3970_vm10 = vcmask 654336  }
 0x61e   :  { %4487 = vmatprep.mubr.msk.bf16.mxu1 %vm5874_vm6, %v5872_v44  ;;  %vm3848_vm6 = vcmp.lt.s32.totalorder %v3056_v23, 18  ;;  %4057 = vmatprep.subr.bf16.mxu0 %v5871_v7 }
 0x61f   :  { %v3851_v11 = vsel %vm3848_vm6, 1.0, %v5872_v44  ;;  %vm9562_vm6 = vcmask 523264  }
 0x6f0   :  { %v4481_v50 = vpop.f32.mrb[56].mxu1 }
 0x6f1   :  { %v3832_v32 = vpop.f32.mrb[57].mxu1  ;;  %v3854_v56 = vmul.f32 %v4481_v50, %v3851_v11 }
 0x6f2   :  { %v4482_v62 = vpop.f32.mrb[58].mxu1  ;;  %v3855_v8 = vsel %vm9548_vm15, %v3832_v32, 0.0  ;;  %vm3972_vm15 = vcmask 785408  }
 0x6f3   :  { %v3835_v20 = vpop.f32.mrb[59].mxu1  ;;  %v3858_v48 = vsel %vm9550_vm1, %v3854_v56, 0.0 }
 0x6f4   :  { %v3856_v22 = vsel %vm9549_vm0, %v3835_v20, 0.0  ;;  %vm3974_vm0 = vcmask 916480  }
 0x6f5   :  { %v3857_v35 = vadd.f32 %v3856_v22, %v3855_v8  ;;  %v5808_v8 = vld [vmem:[%s9382_s7 + $0x40] sm:$0xff]   ;;  %s5876_s7 = smov 80  }
 0x6f6   :  { %4058 = vmatpush1.bf16.msra.mxu0 %v5808_v8 }
 0x6f7   :  { %v3859_v12 = vadd.f32 %v3858_v48, %v3857_v35  ;;  %v5809_v48 = vld [vmem:[%s9384_s9] sm:$0xff]  }
 0x6f8   :  { %4484 = vmatpush3.bf16.msra.mxu1 %v5809_v48 }
 0x6f9   :  { %v3860_v42 = vrot.slane %v3859_v12, 4  ;;  %4485 = vmatprep.subr.bf16.mxu1 %v5872_v44 }
 0x6fb   :  { %v3861_v16 = vadd.f32 %v3860_v42, %v3859_v12 }
 0x6fd   :  { %v3862_v63 = vrot.slane %v3861_v16, 2 }
 0x6ff   :  { %v3863_v19 = vadd.f32 %v3862_v63, %v3861_v16 }
 0x701   :  { %v3864_v37 = vrot.slane %v3863_v19, 1 }
 0x703   :  { %v3865_v40 = vadd.f32 %v3864_v37, %v3863_v19 }
 0x705   :  { %v3866_v21 = vmul.f32 0.055555556, %v3865_v40 }
 0x707   :  { %v3867_v5 = vsub.f32 %v3832_v32, %v3866_v21  ;;  %v3868_v33 = vsub.f32 %v3835_v20, %v3866_v21  ;;  %v3869_v45 = vsub.f32 %v3854_v56, %v3866_v21 }
 0x709   :  { %v3872_v27 = vmul.f32 %v3869_v45, %v3851_v11  ;;  %v3873_v2 = vmul.f32 %v3867_v5, %v3867_v5  ;;  %v3874_v43 = vmul.f32 %v3868_v33, %v3868_v33 }
 0x70b   :  { %v3875_v61 = vmul.f32 %v3872_v27, %v3872_v27  ;;  %v3876_v3 = vsel %vm9551_vm2, %v3873_v2, 0.0  ;;  %v3877_v26 = vsel %vm9552_vm8, %v3874_v43, 0.0 }
 0x70c   :  { %v3878_v46 = vadd.f32 %v3877_v26, %v3876_v3  ;;  %v4247_v3 = vld [vmem:[%s9385_s8] ss:$0 sm:$0xff] }
 0x70d   :  { %v3879_v36 = vsel %vm9553_vm5, %v3875_v61, 0.0  ;;  %v5810_v61 = vld [vmem:[%s9384_s9 + $0x8] sm:$0xff]  }
 0x70e   :  { %v3880_v17 = vadd.f32 %v3879_v36, %v3878_v46  ;;  %4486 = vmatpush3.bf16.msra.mxu1 %v5810_v61 }
 0x710   :  { %v3881_v13 = vrot.slane %v3880_v17, 4 }
 0x712   :  { %v3882_v52 = vadd.f32 %v3881_v13, %v3880_v17 }
 0x714   :  { %v3883_v31 = vrot.slane %v3882_v52, 2 }
 0x716   :  { %v3884_v34 = vadd.f32 %v3883_v31, %v3882_v52  ;;  %v4258_v31 = vld [vmem:[%s9386_s10] ss:$0 sm:$0xff] }
 0x718   :  { %v3885_v18 = vrot.slane %v3884_v34, 1 }
 0x71a   :  { %v3886_v4 = vadd.f32 %v3885_v18, %v3884_v34 }
 0x71c   :  { %v3887_v6 = vmul.f32 0.055555556, %v3886_v4 }
 0x71e   :  { %v3888_v29 = vadd.f32 1e-05, %v3887_v6 }
 0x720   :  { %5813 = vrsqrt.f32 %v3888_v29 }
 0x72a   :  { %v5814_v58 = vpop.eup %5813 }
 0x72b   :  { %v3890_v41 = vmul.f32 %v5814_v58, %v3268_v60 }
 0x72d   :  { %v3894_v54 = vrot.slane %v3890_v41, %v3214_v47 }
 0x72f   :  { %v3895_v15 = vmul.f32 %v3894_v54, %v3867_v5  ;;  %v3896_v24 = vmul.f32 %v3894_v54, %v3868_v33  ;;  %v3897_v38 = vmul.f32 %v3894_v54, %v3869_v45 }
 0x731   :  { %v3902_v51 = vadd.f32 %v3901_v0, %v3895_v15  ;;  %v3903_v10 = vadd.f32 %v3901_v0, %v3896_v24  ;;  %v3904_v49 = vadd.f32 %v3901_v0, %v3897_v38 }
 0x733   :  { %v3905_v47 = vmax.f32 %v3902_v51, 0.0  ;;  %v3906_v25 = vmax.f32 %v3903_v10, 0.0  ;;  %v3907_v9 = vmax.f32 %v3904_v49, 0.0 }
 0x735   :  { %3947 = vrot.lane.b32.xlu0 %v3906_v25, %s5870_s1  ;;  %v3977_v57 = vpack.c.bf16 %v3907_v9, %v3907_v9  ;;  %v3929_v14 = vrot.slane %v3905_v47, 2  ;;  %v3930_v39 = vrot.slane %v3906_v25, 2  ;;  %v3935_v30 = vrot.slane %v3905_v47, 4 }
 0x736   :  { %v3936_v1 = vrot.slane %v3906_v25, 4  ;;  %v3942_v28 = vrot.slane %v3906_v25, 6  ;;  %v3956_v23 = vrot.slane %v3907_v9, 4  ;;  %v3941_v50 = vrot.slane %v3905_v47, 6 }
 0x737   :  { %4257 = vmatprep.mubr.msk.bf16.mxu0 %vm9554_vm14, %v3977_v57  ;;  %v3931_v11 = vsel %vm9555_vm3, %v3929_v14, %v3930_v39  ;;  %v3951_v32 = vrot.slane %v3907_v9, 2  ;;  %v3961_v56 = vrot.slane %v3907_v9, 6 }
 0x738   :  { %3932 = vrot.lane.b32.xlu1 %v3931_v11, %s5863_s16  ;;  %v3937_v62 = vsel %vm9556_vm7, %v3935_v30, %v3936_v1  ;;  %v3957_v20 = vsel %vm9557_vm9, %v3936_v1, %v3956_v23  ;;  %v3943_v35 = vsel %vm3375_vm13, %v3941_v50, %v3942_v28  ;;  %s5875_s16 = smov 96  }
 0x739   :  { %3938 = vrot.lane.b32.xlu0 %v3937_v62, %s5866_s14  ;;  %v3952_v7 = vsel %vm9558_vm11, %v3930_v39, %v3951_v32  ;;  %v3962_v22 = vsel %vm3375_vm13, %v3942_v28, %v3961_v56  ;;  %s5877_s14 = smov 112   ;;  %vm9560_vm13 = vcmask 261120  }
 0x73a   :  { %vm9563_vm1 = vmmov %vm9560_vm13 }
 0x73c   :  { %3944 = vrot.lane.b32.xlu1 %v3943_v35, %s5868_s23 }
 0x73d   :  { %3958 = vrot.lane.b32.xlu0 %v3957_v20, %s5875_s16 }
 0x740   :  { %3953 = vrot.lane.b32.xlu1 %v3952_v7, %s5876_s7 }
 0x744   :  { %3963 = vrot.lane.b32.xlu1 %v3962_v22, %s5877_s14 }
 0x7a7   :  { %v3948_v12 = vpop.permute.xlu0 %3947 }
 0x7aa   :  { %v3933_v42 = vpop.permute.xlu1 %3932 }
 0x7ab   :  { %v3966_v16 = vsel %vm9559_vm4, %v3905_v47, %v3933_v42  ;;  %v3939_v63 = vpop.permute.xlu0 %3938 }
 0x7ac   :  { %v3967_v19 = vsel %vm9560_vm13, %v3966_v16, %v3939_v63 }
 0x7ae   :  { %v3945_v37 = vpop.permute.xlu1 %3944 }
 0x7af   :  { %v3968_v40 = vsel %vm9561_vm12, %v3967_v19, %v3945_v37  ;;  %v3959_v44 = vpop.permute.xlu0 %3958 }
 0x7b0   :  { %v3969_v21 = vsel %vm9562_vm6, %v3968_v40, %v3948_v12 }
 0x7b2   :  { %v3954_v5 = vpop.permute.xlu1 %3953 }
 0x7b3   :  { %v3971_v33 = vsel %vm3970_vm10, %v3969_v21, %v3954_v5 }
 0x7b4   :  { %v3973_v45 = vsel %vm3972_vm15, %v3971_v33, %v3959_v44 }
 0x7b6   :  { %v3964_v27 = vpop.permute.xlu1 %3963 }
 0x7b7   :  { %v3975_v2 = vsel %vm3974_vm0, %v3973_v45, %v3964_v27 }
 0x7b8   :  { %v3976_v43 = vpack.c.bf16 %v3975_v2, %v3975_v2 }
 0x7ba   :  { %4074 = vmatmul.mubr.bf16.vlgmr.msra.gmra.mrb[76].mxu0 %v3976_v43 }
 0x88d   :  { %v4075_v26 = vpop.f32.mrb[76].mxu0 }
 0x88e   :  { %v4076_v46 = vadd.f32 %v4247_v3, %v4075_v26  ;;  %v4077_v36 = vpop.f32.mrb[77].mxu0 }
 0x88f   :  { %v4078_v17 = vpop.f32.mrb[78].mxu0 }
 0x890   :  { %v4086_v13 = vpack.c.bf16 %v4076_v46, %v4076_v46  ;;  %v4079_v52 = vpop.f32.mrb[79].mxu0 }
 0x892   :  { %4488 = vmatmul.mubr.msk.bf16.vlgmr.msra.gmra.mrb[60].mxu1 %vm9563_vm1, %v4086_v13 }
 0x965   :  { %v4142_v34 = vpop.f32.mrb[60].mxu1 }
 0x966   :  { %v4143_v18 = vadd.f32 %v4258_v31, %v4142_v34  ;;  %v4489_v4 = vpop.f32.mrb[61].mxu1 }
 0x967   :  { %v4145_v6 = vpop.f32.mrb[62].mxu1 }
 0x968   :  { %4148 = vst [vmem:[%s9387_s11] sm:$0xff] %v4143_v18  ;;  %v4490_v29 = vpop.f32.mrb[63].mxu1 }

</bundles_post_ra>
